<compile_context>
chip_gen: v7x
topology: tpu7x:2x2x1
jax: 0.10.0
libtpu: 0.0.40
codegen_flags: <defaults>
</compile_context>

<pallas_src>
import functools

import jax
import jax.numpy as jnp
from jax.experimental import pallas as pl
from jax.experimental.pallas import tpu as pltpu

LANE = 128
SUBLANE = 8
TILE_B_CAP = 1024  # multiple of 256: fills the MXU M dim on v6e/v7x


def _round_up(x, m):
    return ((x + m - 1) // m) * m


def _pad2(a, rows, cols):
    r, c = a.shape
    return jnp.pad(a, ((0, rows - r), (0, cols - c)))


# ---------------------------------------------------------------------------
# Fused Pallas kernel: full cascade in one call
# ---------------------------------------------------------------------------

def _make_fused_kernel(n_enc, n_dec, lat_pad):
    """Build a kernel closure over the (static) cascade structure.

    Ref layout (positional):
      inputs : x (bf16),
               [w1, b1, wml, bml, eps(bf16)]  * n_enc,
               [w1, b1, w2, b2]               * n_dec
      outputs: [mu|logvar]                    * n_enc   (width 2*lat_pad),
               recon
    """

    def kernel(*refs):
        idx = 0
        x_ref = refs[idx]; idx += 1
        enc_refs = []
        for _ in range(n_enc):
            enc_refs.append(refs[idx:idx + 5]); idx += 5
        dec_refs = []
        for _ in range(n_dec):
            dec_refs.append(refs[idx:idx + 4]); idx += 4
        out_refs = refs[idx:]

        acts = x_ref[...]                                   # bf16 (TILE_B, IN_PAD)
        for s in range(n_enc):
            w1_ref, b1_ref, wml_ref, bml_ref, eps_ref = enc_refs[s]
            # bf16 operands on the MXU, f32 accumulation; bias/ReLU in f32.
            h = jnp.dot(acts, w1_ref[...],
                        preferred_element_type=jnp.float32) + b1_ref[...]
            h = jnp.maximum(h, 0.0).astype(jnp.bfloat16)
            # One wide matmul for [mu | logvar]; one wide lane-dense store.
            ml = jnp.dot(h, wml_ref[...],
                         preferred_element_type=jnp.float32) + bml_ref[...]
            out_refs[s][...] = ml.astype(out_refs[s].dtype)
            mu = ml[:, :lat_pad]                             # 128-lane-aligned slice
            logvar = ml[:, lat_pad:]
            z = mu + eps_ref[...].astype(jnp.float32) * jnp.exp(0.5 * logvar)
            acts = z.astype(jnp.bfloat16)

        recon_bf16 = acts
        recon_f32 = None
        for d in range(n_dec):
            w1_ref, b1_ref, w2_ref, b2_ref = dec_refs[d]
            h = jnp.maximum(
                jnp.dot(recon_bf16, w1_ref[...],
                        preferred_element_type=jnp.float32) + b1_ref[...], 0.0)
            recon_f32 = jnp.dot(h.astype(jnp.bfloat16), w2_ref[...],
                                preferred_element_type=jnp.float32) + b2_ref[...]
            recon_bf16 = recon_f32.astype(jnp.bfloat16)
        out_refs[-1][...] = recon_f32.astype(out_refs[-1].dtype)

    return kernel


@functools.partial(jax.jit, static_argnames=("tile_b", "out_dtype"))
def _fused_forward(x_pad, packed_enc, packed_dec, eps_pad, *, tile_b,
                   out_dtype=jnp.float32):
    n_enc = len(packed_enc)
    n_dec = len(packed_dec)
    batch_pad, in_pad = x_pad.shape
    lat_pad = eps_pad[0].shape[1]
    hid_pad = packed_enc[0]["w1"].shape[1]
    grid = (batch_pad // tile_b,)

    def act_spec(width):
        return pl.BlockSpec((tile_b, width), lambda i: (i, 0))

    def const_spec(arr):
        # Weights / biases: full-array block, constant index_map -> stay resident
        # in VMEM across batch-grid steps (no re-DMA).
        return pl.BlockSpec(arr.shape, lambda i: (0,) * arr.ndim)

    inputs = [x_pad]
    in_specs = [act_spec(in_pad)]
    for p, eps in zip(packed_enc, eps_pad):
        for name in ("w1", "b1", "wml", "bml"):
            inputs.append(p[name]); in_specs.append(const_spec(p[name]))
        inputs.append(eps); in_specs.append(act_spec(lat_pad))
    for p in packed_dec:
        for name in ("w1", "b1", "w2", "b2"):
            inputs.append(p[name]); in_specs.append(const_spec(p[name]))

    out_shapes, out_specs = [], []
    for _ in range(n_enc):
        out_shapes.append(
            jax.ShapeDtypeStruct((batch_pad, 2 * lat_pad), out_dtype))
        out_specs.append(act_spec(2 * lat_pad))
    out_shapes.append(jax.ShapeDtypeStruct((batch_pad, in_pad), out_dtype))
    out_specs.append(act_spec(in_pad))

    # Advisory cost estimate (padded shapes) so XLA schedules around the call.
    flops = 0
    for p in packed_enc:
        flops += 2 * batch_pad * (p["w1"].shape[0] * hid_pad
                                  + hid_pad * p["wml"].shape[1])
    for p in packed_dec:
        flops += 2 * batch_pad * (p["w1"].shape[0] * hid_pad
                                  + hid_pad * p["w2"].shape[1])
    transcendentals = batch_pad * lat_pad * n_enc
    out_itemsize = jnp.dtype(out_dtype).itemsize
    bytes_accessed = sum(int(a.size) * a.dtype.itemsize for a in inputs)
    bytes_accessed += (n_enc * batch_pad * 2 * lat_pad
                       + batch_pad * in_pad) * out_itemsize

    return pl.pallas_call(
        _make_fused_kernel(n_enc, n_dec, lat_pad),
        grid=grid,
        in_specs=in_specs,
        out_specs=tuple(out_specs),
        out_shape=tuple(out_shapes),
        cost_estimate=pl.CostEstimate(flops=flops,
                                      transcendentals=transcendentals,
                                      bytes_accessed=bytes_accessed),
        compiler_params=pltpu.CompilerParams(
            dimension_semantics=("parallel",),     # shard batch over TCs (v7x)
            vmem_limit_bytes=48 * 1024 * 1024),    # fits v7x's 64 MiB VMEM
    )(*inputs)


# ---------------------------------------------------------------------------
# Parameter construction (mirrors CascadedVAE.__init__) and padding/packing
# ---------------------------------------------------------------------------

def _linear_params(key, in_dim, out_dim):
    kw, kb = jax.random.split(key)
    scale = 1.0 / jnp.sqrt(jnp.float32(in_dim))
    w = jax.random.uniform(kw, (in_dim, out_dim), jnp.float32, -scale, scale)
    b = jax.random.uniform(kb, (1, out_dim), jnp.float32, -scale, scale)
    return w, b


def make_cascaded_vae_params(key, input_channels, latent_dims, hidden_dim):
    assert len(latent_dims) == 1 or latent_dims[0] == latent_dims[-1], (
        "The reference decoder chain maps z back to latent_dims[0] before the "
        "final Decoder(latent_dims[-1], input_channels); the PyTorch module "
        "only runs when latent_dims[0] == latent_dims[-1].")

    enc_dims = [(input_channels, latent_dims[0])]
    for i in range(1, len(latent_dims)):
        enc_dims.append((latent_dims[i - 1], latent_dims[i]))

    # decoders = [Dec(lat[-1], in)]; insert(0, Dec(lat[i], lat[i-1])) for i=1..N-1.
    dec_dims = [(latent_dims[-1], input_channels)]
    for i in range(1, len(latent_dims)):
        dec_dims.insert(0, (latent_dims[i], latent_dims[i - 1]))

    keys = jax.random.split(key, 3 * len(enc_dims) + 2 * len(dec_dims))
    ki = 0
    enc_params, dec_params = [], []
    for din, dlat in enc_dims:
        w1, b1 = _linear_params(keys[ki], din, hidden_dim); ki += 1
        wmu, bmu = _linear_params(keys[ki], hidden_dim, dlat); ki += 1
        wlv, blv = _linear_params(keys[ki], hidden_dim, dlat); ki += 1
        enc_params.append(dict(w1=w1, b1=b1, wmu=wmu, bmu=bmu, wlv=wlv, blv=blv))
    for din, dout in dec_dims:
        w1, b1 = _linear_params(keys[ki], din, hidden_dim); ki += 1
        w2, b2 = _linear_params(keys[ki], hidden_dim, dout); ki += 1
        dec_params.append(dict(w1=w1, b1=b1, w2=w2, b2=b2))
    return enc_params, dec_params


def _pack_params(enc_params, dec_params, in_pad, lat_pad, hid_pad):
    """Zero-pad all dims to 128 lanes, concat Wmu|Wlv, cast weights to bf16.

    Zero padding is exact: padded hidden units are relu(0)=0, padded logvar
    lanes are 0 -> std=1 and z's padded lanes equal eps's padded lanes (zero),
    so padding never leaks into later stages.
    """
    packed_enc = []
    for s, p in enumerate(enc_params):
        din_pad = in_pad if s == 0 else lat_pad
        hid = p["wmu"].shape[0]
        dlat = p["wmu"].shape[1]
        wml = jnp.zeros((hid_pad, 2 * lat_pad), jnp.float32)
        wml = wml.at[:hid, :dlat].set(p["wmu"])
        wml = wml.at[:hid, lat_pad:lat_pad + dlat].set(p["wlv"])
        bml = jnp.zeros((1, 2 * lat_pad), jnp.float32)
        bml = bml.at[:, :dlat].set(p["bmu"])
        bml = bml.at[:, lat_pad:lat_pad + dlat].set(p["blv"])
        packed_enc.append(dict(
            w1=_pad2(p["w1"], din_pad, hid_pad).astype(jnp.bfloat16),
            b1=_pad2(p["b1"], 1, hid_pad),
            wml=wml.astype(jnp.bfloat16),
            bml=bml))
    packed_dec = []
    for d, p in enumerate(dec_params):
        dout_pad = in_pad if d == len(dec_params) - 1 else lat_pad
        packed_dec.append(dict(
            w1=_pad2(p["w1"], lat_pad, hid_pad).astype(jnp.bfloat16),
            b1=_pad2(p["b1"], 1, hid_pad),
            w2=_pad2(p["w2"], hid_pad, dout_pad).astype(jnp.bfloat16),
            b2=_pad2(p["b2"], 1, dout_pad)))
    return packed_enc, packed_dec


# ---------------------------------------------------------------------------
# Public forward (mirrors CascadedVAE.forward)
# ---------------------------------------------------------------------------

def _choose_batch_tiling(batch):
    """tile_b: big (MXU-filling, amortizes per-step overhead) but with >=2 grid
    steps whenever the batch allows, so v7x's second TensorCore gets work."""
    batch_pad = _round_up(batch, SUBLANE)
    if batch_pad > TILE_B_CAP:
        tile_b = TILE_B_CAP                      # multiple of 256
        batch_pad = _round_up(batch_pad, tile_b)
    else:
        tile_b = batch_pad
    if batch_pad // tile_b == 1 and batch_pad >= 2 * SUBLANE:
        tile_b = _round_up(batch_pad // 2, SUBLANE)
        batch_pad = _round_up(batch_pad, tile_b)
    return batch_pad, tile_b


def cascaded_vae_forward(x, enc_params, dec_params, eps_list, latent_dims,
                         out_dtype=jnp.float32):
    batch, in_dim = x.shape
    hidden = enc_params[0]["w1"].shape[1]
    in_pad = _round_up(in_dim, LANE)
    lat_pad = _round_up(max(latent_dims), LANE)
    hid_pad = _round_up(hidden, LANE)

    batch_pad, tile_b = _choose_batch_tiling(batch)

    # x and eps are only ever consumed as bf16 MXU / promoted-elementwise inputs:
    # pre-cast in the wrapper -> halves their HBM reads and VMEM double-buffers.
    x_pad = _pad2(x, batch_pad, in_pad).astype(jnp.bfloat16)
    eps_pad = [_pad2(e, batch_pad, lat_pad).astype(jnp.bfloat16) for e in eps_list]
    packed_enc, packed_dec = _pack_params(enc_params, dec_params,
                                          in_pad, lat_pad, hid_pad)

    outs = _fused_forward(x_pad, packed_enc, packed_dec, eps_pad,
                          tile_b=tile_b, out_dtype=out_dtype)

    n_enc = len(enc_params)
    mu_list = [outs[s][:batch, :latent_dims[s]] for s in range(n_enc)]
    logvar_list = [outs[s][:batch, lat_pad:lat_pad + latent_dims[s]]
                   for s in range(n_enc)]
    recon = outs[-1][:batch, :in_dim]
    return recon, mu_list, logvar_list


# ---------------------------------------------------------------------------
# Pure-JAX reference (same bf16-operand / f32-accumulate matmul recipe,
# same bf16-quantized eps as fed to the kernel)
# ---------------------------------------------------------------------------

def _reference_forward(x, enc_params, dec_params, eps_list):
    def mm(a, w):
        return jnp.dot(a.astype(jnp.bfloat16), w.astype(jnp.bfloat16),
                       preferred_element_type=jnp.float32)
    mu_list, logvar_list = [], []
    act = x
    for p, eps in zip(enc_params, eps_list):
        h = jnp.maximum(mm(act, p["w1"]) + p["b1"], 0.0)
        mu = mm(h, p["wmu"]) + p["bmu"]
        logvar = mm(h, p["wlv"]) + p["blv"]
        eps_q = eps.astype(jnp.bfloat16).astype(jnp.float32)   # kernel sees bf16 eps
        z = mu + eps_q * jnp.exp(0.5 * logvar)
        mu_list.append(mu); logvar_list.append(logvar)
        act = z
    recon = act
    for p in dec_params:
        h = jnp.maximum(mm(recon, p["w1"]) + p["b1"], 0.0)
        recon = mm(h, p["w2"]) + p["b2"]
    return recon, mu_list, logvar_list


# ---------------------------------------------------------------------------
# Main
# ---------------------------------------------------------------------------

if __name__ == "__main__":
    INPUT_CHANNELS = 16
    LATENT_DIMS = [16, 8, 16]   # lat[0] == lat[-1]: required by the module's decoder chain
    HIDDEN = 32
    BATCH = 64                  # pads to 64 rows -> tile_b=32, grid=(2,) exercises both TCs

    key = jax.random.PRNGKey(0)
    k_x, k_params, k_eps = jax.random.split(key, 3)

    x = jax.random.normal(k_x, (BATCH, INPUT_CHANNELS), jnp.float32)
    enc_params, dec_params = make_cascaded_vae_params(
        k_params, INPUT_CHANNELS, LATENT_DIMS, HIDDEN)

    # Deterministic "eps ~ N(0,1)" samples for the reparameterization trick.
    eps_keys = jax.random.split(k_eps, len(LATENT_DIMS))
    eps_list = [jax.random.normal(ek, (BATCH, lat), jnp.float32)
                for ek, lat in zip(eps_keys, LATENT_DIMS)]

    recon, mu_list, logvar_list = cascaded_vae_forward(
        x, enc_params, dec_params, eps_list, LATENT_DIMS)
    jax.block_until_ready(recon)

    # Cross-check against the pure-JAX reference.
    recon_ref, mu_ref, lv_ref = _reference_forward(x, enc_params, dec_params, eps_list)
    assert recon.shape == (BATCH, INPUT_CHANNELS)
    assert jnp.allclose(recon, recon_ref, atol=1e-2, rtol=1e-2)
    for a, b in zip(mu_list, mu_ref):
        assert a.shape == b.shape
        assert jnp.allclose(a, b, atol=1e-2, rtol=1e-2)
    for a, b in zip(logvar_list, lv_ref):
        assert jnp.allclose(a, b, atol=1e-2, rtol=1e-2)

    print("KERNEL_OK")
</pallas_src>

<mosaic_0001>
module attributes {stable_mosaic.version = 11 : i64} {
  func.func @kernel(%arg0: i32, %arg1: memref<32x128xbf16, #tpu.memory_space<vmem>>, %arg2: memref<128x128xbf16, #tpu.memory_space<vmem>>, %arg3: memref<1x128xf32, #tpu.memory_space<vmem>>, %arg4: memref<128x256xbf16, #tpu.memory_space<vmem>>, %arg5: memref<1x256xf32, #tpu.memory_space<vmem>>, %arg6: memref<32x128xbf16, #tpu.memory_space<vmem>>, %arg7: memref<128x128xbf16, #tpu.memory_space<vmem>>, %arg8: memref<1x128xf32, #tpu.memory_space<vmem>>, %arg9: memref<128x256xbf16, #tpu.memory_space<vmem>>, %arg10: memref<1x256xf32, #tpu.memory_space<vmem>>, %arg11: memref<32x128xbf16, #tpu.memory_space<vmem>>, %arg12: memref<128x128xbf16, #tpu.memory_space<vmem>>, %arg13: memref<1x128xf32, #tpu.memory_space<vmem>>, %arg14: memref<128x256xbf16, #tpu.memory_space<vmem>>, %arg15: memref<1x256xf32, #tpu.memory_space<vmem>>, %arg16: memref<32x128xbf16, #tpu.memory_space<vmem>>, %arg17: memref<128x128xbf16, #tpu.memory_space<vmem>>, %arg18: memref<1x128xf32, #tpu.memory_space<vmem>>, %arg19: memref<128x128xbf16, #tpu.memory_space<vmem>>, %arg20: memref<1x128xf32, #tpu.memory_space<vmem>>, %arg21: memref<128x128xbf16, #tpu.memory_space<vmem>>, %arg22: memref<1x128xf32, #tpu.memory_space<vmem>>, %arg23: memref<128x128xbf16, #tpu.memory_space<vmem>>, %arg24: memref<1x128xf32, #tpu.memory_space<vmem>>, %arg25: memref<128x128xbf16, #tpu.memory_space<vmem>>, %arg26: memref<1x128xf32, #tpu.memory_space<vmem>>, %arg27: memref<128x128xbf16, #tpu.memory_space<vmem>>, %arg28: memref<1x128xf32, #tpu.memory_space<vmem>>, %arg29: memref<32x256xf32, #tpu.memory_space<vmem>>, %arg30: memref<32x256xf32, #tpu.memory_space<vmem>>, %arg31: memref<32x256xf32, #tpu.memory_space<vmem>>, %arg32: memref<32x128xf32, #tpu.memory_space<vmem>>) attributes {dimension_semantics = [#tpu.dimension_semantics<parallel>], iteration_bounds = array<i64: 2>, scalar_prefetch = 0 : i64, scratch_operands = 0 : i64, tpu.core_type = #tpu.core_type<tc>, window_params = [{transform_indices = @transform_0, window_bounds = array<i64: 32, 128>}, {pipeline_mode = #tpu.pipeline_mode<synchronous>, transform_indices = @transform_1, window_bounds = array<i64: 128, 128>}, {pipeline_mode = #tpu.pipeline_mode<synchronous>, transform_indices = @transform_2, window_bounds = array<i64: 1, 128>}, {pipeline_mode = #tpu.pipeline_mode<synchronous>, transform_indices = @transform_3, window_bounds = array<i64: 128, 256>}, {pipeline_mode = #tpu.pipeline_mode<synchronous>, transform_indices = @transform_4, window_bounds = array<i64: 1, 256>}, {transform_indices = @transform_5, window_bounds = array<i64: 32, 128>}, {pipeline_mode = #tpu.pipeline_mode<synchronous>, transform_indices = @transform_6, window_bounds = array<i64: 128, 128>}, {pipeline_mode = #tpu.pipeline_mode<synchronous>, transform_indices = @transform_7, window_bounds = array<i64: 1, 128>}, {pipeline_mode = #tpu.pipeline_mode<synchronous>, transform_indices = @transform_8, window_bounds = array<i64: 128, 256>}, {pipeline_mode = #tpu.pipeline_mode<synchronous>, transform_indices = @transform_9, window_bounds = array<i64: 1, 256>}, {transform_indices = @transform_10, window_bounds = array<i64: 32, 128>}, {pipeline_mode = #tpu.pipeline_mode<synchronous>, transform_indices = @transform_11, window_bounds = array<i64: 128, 128>}, {pipeline_mode = #tpu.pipeline_mode<synchronous>, transform_indices = @transform_12, window_bounds = array<i64: 1, 128>}, {pipeline_mode = #tpu.pipeline_mode<synchronous>, transform_indices = @transform_13, window_bounds = array<i64: 128, 256>}, {pipeline_mode = #tpu.pipeline_mode<synchronous>, transform_indices = @transform_14, window_bounds = array<i64: 1, 256>}, {transform_indices = @transform_15, window_bounds = array<i64: 32, 128>}, {pipeline_mode = #tpu.pipeline_mode<synchronous>, transform_indices = @transform_16, window_bounds = array<i64: 128, 128>}, {pipeline_mode = #tpu.pipeline_mode<synchronous>, transform_indices = @transform_17, window_bounds = array<i64: 1, 128>}, {pipeline_mode = #tpu.pipeline_mode<synchronous>, transform_indices = @transform_18, window_bounds = array<i64: 128, 128>}, {pipeline_mode = #tpu.pipeline_mode<synchronous>, transform_indices = @transform_19, window_bounds = array<i64: 1, 128>}, {pipeline_mode = #tpu.pipeline_mode<synchronous>, transform_indices = @transform_20, window_bounds = array<i64: 128, 128>}, {pipeline_mode = #tpu.pipeline_mode<synchronous>, transform_indices = @transform_21, window_bounds = array<i64: 1, 128>}, {pipeline_mode = #tpu.pipeline_mode<synchronous>, transform_indices = @transform_22, window_bounds = array<i64: 128, 128>}, {pipeline_mode = #tpu.pipeline_mode<synchronous>, transform_indices = @transform_23, window_bounds = array<i64: 1, 128>}, {pipeline_mode = #tpu.pipeline_mode<synchronous>, transform_indices = @transform_24, window_bounds = array<i64: 128, 128>}, {pipeline_mode = #tpu.pipeline_mode<synchronous>, transform_indices = @transform_25, window_bounds = array<i64: 1, 128>}, {pipeline_mode = #tpu.pipeline_mode<synchronous>, transform_indices = @transform_26, window_bounds = array<i64: 128, 128>}, {pipeline_mode = #tpu.pipeline_mode<synchronous>, transform_indices = @transform_27, window_bounds = array<i64: 1, 128>}, {transform_indices = @transform_28, window_bounds = array<i64: 32, 256>}, {transform_indices = @transform_29, window_bounds = array<i64: 32, 256>}, {transform_indices = @transform_30, window_bounds = array<i64: 32, 256>}, {transform_indices = @transform_31, window_bounds = array<i64: 32, 128>}]} {
    %c0 = arith.constant 0 : index
    %c0_0 = arith.constant 0 : index
    %0 = vector.load %arg1[%c0, %c0_0] : memref<32x128xbf16, #tpu.memory_space<vmem>>, vector<32x128xbf16>
    %c0_1 = arith.constant 0 : index
    %c0_2 = arith.constant 0 : index
    %1 = vector.load %arg2[%c0_1, %c0_2] : memref<128x128xbf16, #tpu.memory_space<vmem>>, vector<128x128xbf16>
    %cst = arith.constant dense<0.000000e+00> : vector<32x128xf32>
    %2 = tpu.matmul %0, %1, %cst {dimension_numbers = #tpu.dot_dimension_numbers<[1], [0], [0], [1], [0, 0, 1, 1], [], []>} : vector<32x128xbf16>, vector<128x128xbf16>, vector<32x128xf32> -> vector<32x128xf32>
    %c0_3 = arith.constant 0 : index
    %c0_4 = arith.constant 0 : index
    %3 = vector.load %arg3[%c0_3, %c0_4] : memref<1x128xf32, #tpu.memory_space<vmem>>, vector<1x128xf32>
    %4 = vector.broadcast %3 : vector<1x128xf32> to vector<32x128xf32>
    %5 = arith.addf %2, %4 : vector<32x128xf32>
    %cst_5 = arith.constant 0.000000e+00 : f32
    %6 = vector.broadcast %cst_5 : f32 to vector<32x128xf32>
    %7 = arith.maximumf %5, %6 : vector<32x128xf32>
    %8 = arith.truncf %7 : vector<32x128xf32> to vector<32x128xbf16>
    %c0_6 = arith.constant 0 : index
    %c0_7 = arith.constant 0 : index
    %9 = vector.load %arg4[%c0_6, %c0_7] : memref<128x256xbf16, #tpu.memory_space<vmem>>, vector<128x256xbf16>
    %cst_8 = arith.constant dense<0.000000e+00> : vector<32x256xf32>
    %10 = tpu.matmul %8, %9, %cst_8 {dimension_numbers = #tpu.dot_dimension_numbers<[1], [0], [0], [1], [0, 0, 1, 1], [], []>} : vector<32x128xbf16>, vector<128x256xbf16>, vector<32x256xf32> -> vector<32x256xf32>
    %c0_9 = arith.constant 0 : index
    %c0_10 = arith.constant 0 : index
    %11 = vector.load %arg5[%c0_9, %c0_10] : memref<1x256xf32, #tpu.memory_space<vmem>>, vector<1x256xf32>
    %12 = vector.broadcast %11 : vector<1x256xf32> to vector<32x256xf32>
    %13 = arith.addf %10, %12 : vector<32x256xf32>
    %c0_11 = arith.constant 0 : index
    %c0_12 = arith.constant 0 : index
    %14 = vector.load %arg29[%c0_11, %c0_12] : memref<32x256xf32, #tpu.memory_space<vmem>>, vector<32x256xf32>
    tpu.vector_store %arg29[%c0_11, %c0_12], %13 {strides = array<i32>} : memref<32x256xf32, #tpu.memory_space<vmem>>, vector<32x256xf32>,
    %15 = vector.extract_strided_slice %13 {offsets = [0, 0], sizes = [32, 128], strides = [1, 1]} : vector<32x256xf32> to vector<32x128xf32>
    %16 = vector.extract_strided_slice %13 {offsets = [0, 128], sizes = [32, 128], strides = [1, 1]} : vector<32x256xf32> to vector<32x128xf32>
    %c0_13 = arith.constant 0 : index
    %c0_14 = arith.constant 0 : index
    %17 = vector.load %arg6[%c0_13, %c0_14] : memref<32x128xbf16, #tpu.memory_space<vmem>>, vector<32x128xbf16>
    %18 = arith.extf %17 : vector<32x128xbf16> to vector<32x128xf32>
    %cst_15 = arith.constant 5.000000e-01 : f32
    %19 = vector.broadcast %cst_15 : f32 to vector<32x128xf32>
    %20 = arith.mulf %19, %16 : vector<32x128xf32>
    %21 = math.exp %20 : vector<32x128xf32>
    %22 = arith.mulf %18, %21 : vector<32x128xf32>
    %23 = arith.addf %15, %22 : vector<32x128xf32>
    %24 = arith.truncf %23 : vector<32x128xf32> to vector<32x128xbf16>
    %c0_16 = arith.constant 0 : index
    %c0_17 = arith.constant 0 : index
    %25 = vector.load %arg7[%c0_16, %c0_17] : memref<128x128xbf16, #tpu.memory_space<vmem>>, vector<128x128xbf16>
    %cst_18 = arith.constant dense<0.000000e+00> : vector<32x128xf32>
    %26 = tpu.matmul %24, %25, %cst_18 {dimension_numbers = #tpu.dot_dimension_numbers<[1], [0], [0], [1], [0, 0, 1, 1], [], []>} : vector<32x128xbf16>, vector<128x128xbf16>, vector<32x128xf32> -> vector<32x128xf32>
    %c0_19 = arith.constant 0 : index
    %c0_20 = arith.constant 0 : index
    %27 = vector.load %arg8[%c0_19, %c0_20] : memref<1x128xf32, #tpu.memory_space<vmem>>, vector<1x128xf32>
    %28 = vector.broadcast %27 : vector<1x128xf32> to vector<32x128xf32>
    %29 = arith.addf %26, %28 : vector<32x128xf32>
    %cst_21 = arith.constant 0.000000e+00 : f32
    %30 = vector.broadcast %cst_21 : f32 to vector<32x128xf32>
    %31 = arith.maximumf %29, %30 : vector<32x128xf32>
    %32 = arith.truncf %31 : vector<32x128xf32> to vector<32x128xbf16>
    %c0_22 = arith.constant 0 : index
    %c0_23 = arith.constant 0 : index
    %33 = vector.load %arg9[%c0_22, %c0_23] : memref<128x256xbf16, #tpu.memory_space<vmem>>, vector<128x256xbf16>
    %cst_24 = arith.constant dense<0.000000e+00> : vector<32x256xf32>
    %34 = tpu.matmul %32, %33, %cst_24 {dimension_numbers = #tpu.dot_dimension_numbers<[1], [0], [0], [1], [0, 0, 1, 1], [], []>} : vector<32x128xbf16>, vector<128x256xbf16>, vector<32x256xf32> -> vector<32x256xf32>
    %c0_25 = arith.constant 0 : index
    %c0_26 = arith.constant 0 : index
    %35 = vector.load %arg10[%c0_25, %c0_26] : memref<1x256xf32, #tpu.memory_space<vmem>>, vector<1x256xf32>
    %36 = vector.broadcast %35 : vector<1x256xf32> to vector<32x256xf32>
    %37 = arith.addf %34, %36 : vector<32x256xf32>
    %c0_27 = arith.constant 0 : index
    %c0_28 = arith.constant 0 : index
    %38 = vector.load %arg30[%c0_27, %c0_28] : memref<32x256xf32, #tpu.memory_space<vmem>>, vector<32x256xf32>
    tpu.vector_store %arg30[%c0_27, %c0_28], %37 {strides = array<i32>} : memref<32x256xf32, #tpu.memory_space<vmem>>, vector<32x256xf32>,
    %39 = vector.extract_strided_slice %37 {offsets = [0, 0], sizes = [32, 128], strides = [1, 1]} : vector<32x256xf32> to vector<32x128xf32>
    %40 = vector.extract_strided_slice %37 {offsets = [0, 128], sizes = [32, 128], strides = [1, 1]} : vector<32x256xf32> to vector<32x128xf32>
    %c0_29 = arith.constant 0 : index
    %c0_30 = arith.constant 0 : index
    %41 = vector.load %arg11[%c0_29, %c0_30] : memref<32x128xbf16, #tpu.memory_space<vmem>>, vector<32x128xbf16>
    %42 = arith.extf %41 : vector<32x128xbf16> to vector<32x128xf32>
    %cst_31 = arith.constant 5.000000e-01 : f32
    %43 = vector.broadcast %cst_31 : f32 to vector<32x128xf32>
    %44 = arith.mulf %43, %40 : vector<32x128xf32>
    %45 = math.exp %44 : vector<32x128xf32>
    %46 = arith.mulf %42, %45 : vector<32x128xf32>
    %47 = arith.addf %39, %46 : vector<32x128xf32>
    %48 = arith.truncf %47 : vector<32x128xf32> to vector<32x128xbf16>
    %c0_32 = arith.constant 0 : index
    %c0_33 = arith.constant 0 : index
    %49 = vector.load %arg12[%c0_32, %c0_33] : memref<128x128xbf16, #tpu.memory_space<vmem>>, vector<128x128xbf16>
    %cst_34 = arith.constant dense<0.000000e+00> : vector<32x128xf32>
    %50 = tpu.matmul %48, %49, %cst_34 {dimension_numbers = #tpu.dot_dimension_numbers<[1], [0], [0], [1], [0, 0, 1, 1], [], []>} : vector<32x128xbf16>, vector<128x128xbf16>, vector<32x128xf32> -> vector<32x128xf32>
    %c0_35 = arith.constant 0 : index
    %c0_36 = arith.constant 0 : index
    %51 = vector.load %arg13[%c0_35, %c0_36] : memref<1x128xf32, #tpu.memory_space<vmem>>, vector<1x128xf32>
    %52 = vector.broadcast %51 : vector<1x128xf32> to vector<32x128xf32>
    %53 = arith.addf %50, %52 : vector<32x128xf32>
    %cst_37 = arith.constant 0.000000e+00 : f32
    %54 = vector.broadcast %cst_37 : f32 to vector<32x128xf32>
    %55 = arith.maximumf %53, %54 : vector<32x128xf32>
    %56 = arith.truncf %55 : vector<32x128xf32> to vector<32x128xbf16>
    %c0_38 = arith.constant 0 : index
    %c0_39 = arith.constant 0 : index
    %57 = vector.load %arg14[%c0_38, %c0_39] : memref<128x256xbf16, #tpu.memory_space<vmem>>, vector<128x256xbf16>
    %cst_40 = arith.constant dense<0.000000e+00> : vector<32x256xf32>
    %58 = tpu.matmul %56, %57, %cst_40 {dimension_numbers = #tpu.dot_dimension_numbers<[1], [0], [0], [1], [0, 0, 1, 1], [], []>} : vector<32x128xbf16>, vector<128x256xbf16>, vector<32x256xf32> -> vector<32x256xf32>
    %c0_41 = arith.constant 0 : index
    %c0_42 = arith.constant 0 : index
    %59 = vector.load %arg15[%c0_41, %c0_42] : memref<1x256xf32, #tpu.memory_space<vmem>>, vector<1x256xf32>
    %60 = vector.broadcast %59 : vector<1x256xf32> to vector<32x256xf32>
    %61 = arith.addf %58, %60 : vector<32x256xf32>
    %c0_43 = arith.constant 0 : index
    %c0_44 = arith.constant 0 : index
    %62 = vector.load %arg31[%c0_43, %c0_44] : memref<32x256xf32, #tpu.memory_space<vmem>>, vector<32x256xf32>
    tpu.vector_store %arg31[%c0_43, %c0_44], %61 {strides = array<i32>} : memref<32x256xf32, #tpu.memory_space<vmem>>, vector<32x256xf32>,
    %63 = vector.extract_strided_slice %61 {offsets = [0, 0], sizes = [32, 128], strides = [1, 1]} : vector<32x256xf32> to vector<32x128xf32>
    %64 = vector.extract_strided_slice %61 {offsets = [0, 128], sizes = [32, 128], strides = [1, 1]} : vector<32x256xf32> to vector<32x128xf32>
    %c0_45 = arith.constant 0 : index
    %c0_46 = arith.constant 0 : index
    %65 = vector.load %arg16[%c0_45, %c0_46] : memref<32x128xbf16, #tpu.memory_space<vmem>>, vector<32x128xbf16>
    %66 = arith.extf %65 : vector<32x128xbf16> to vector<32x128xf32>
    %cst_47 = arith.constant 5.000000e-01 : f32
    %67 = vector.broadcast %cst_47 : f32 to vector<32x128xf32>
    %68 = arith.mulf %67, %64 : vector<32x128xf32>
    %69 = math.exp %68 : vector<32x128xf32>
    %70 = arith.mulf %66, %69 : vector<32x128xf32>
    %71 = arith.addf %63, %70 : vector<32x128xf32>
    %72 = arith.truncf %71 : vector<32x128xf32> to vector<32x128xbf16>
    %c0_48 = arith.constant 0 : index
    %c0_49 = arith.constant 0 : index
    %73 = vector.load %arg17[%c0_48, %c0_49] : memref<128x128xbf16, #tpu.memory_space<vmem>>, vector<128x128xbf16>
    %cst_50 = arith.constant dense<0.000000e+00> : vector<32x128xf32>
    %74 = tpu.matmul %72, %73, %cst_50 {dimension_numbers = #tpu.dot_dimension_numbers<[1], [0], [0], [1], [0, 0, 1, 1], [], []>} : vector<32x128xbf16>, vector<128x128xbf16>, vector<32x128xf32> -> vector<32x128xf32>
    %c0_51 = arith.constant 0 : index
    %c0_52 = arith.constant 0 : index
    %75 = vector.load %arg18[%c0_51, %c0_52] : memref<1x128xf32, #tpu.memory_space<vmem>>, vector<1x128xf32>
    %76 = vector.broadcast %75 : vector<1x128xf32> to vector<32x128xf32>
    %77 = arith.addf %74, %76 : vector<32x128xf32>
    %cst_53 = arith.constant 0.000000e+00 : f32
    %78 = vector.broadcast %cst_53 : f32 to vector<32x128xf32>
    %79 = arith.maximumf %77, %78 : vector<32x128xf32>
    %80 = arith.truncf %79 : vector<32x128xf32> to vector<32x128xbf16>
    %c0_54 = arith.constant 0 : index
    %c0_55 = arith.constant 0 : index
    %81 = vector.load %arg19[%c0_54, %c0_55] : memref<128x128xbf16, #tpu.memory_space<vmem>>, vector<128x128xbf16>
    %cst_56 = arith.constant dense<0.000000e+00> : vector<32x128xf32>
    %82 = tpu.matmul %80, %81, %cst_56 {dimension_numbers = #tpu.dot_dimension_numbers<[1], [0], [0], [1], [0, 0, 1, 1], [], []>} : vector<32x128xbf16>, vector<128x128xbf16>, vector<32x128xf32> -> vector<32x128xf32>
    %c0_57 = arith.constant 0 : index
    %c0_58 = arith.constant 0 : index
    %83 = vector.load %arg20[%c0_57, %c0_58] : memref<1x128xf32, #tpu.memory_space<vmem>>, vector<1x128xf32>
    %84 = vector.broadcast %83 : vector<1x128xf32> to vector<32x128xf32>
    %85 = arith.addf %82, %84 : vector<32x128xf32>
    %86 = arith.truncf %85 : vector<32x128xf32> to vector<32x128xbf16>
    %c0_59 = arith.constant 0 : index
    %c0_60 = arith.constant 0 : index
    %87 = vector.load %arg21[%c0_59, %c0_60] : memref<128x128xbf16, #tpu.memory_space<vmem>>, vector<128x128xbf16>
    %cst_61 = arith.constant dense<0.000000e+00> : vector<32x128xf32>
    %88 = tpu.matmul %86, %87, %cst_61 {dimension_numbers = #tpu.dot_dimension_numbers<[1], [0], [0], [1], [0, 0, 1, 1], [], []>} : vector<32x128xbf16>, vector<128x128xbf16>, vector<32x128xf32> -> vector<32x128xf32>
    %c0_62 = arith.constant 0 : index
    %c0_63 = arith.constant 0 : index
    %89 = vector.load %arg22[%c0_62, %c0_63] : memref<1x128xf32, #tpu.memory_space<vmem>>, vector<1x128xf32>
    %90 = vector.broadcast %89 : vector<1x128xf32> to vector<32x128xf32>
    %91 = arith.addf %88, %90 : vector<32x128xf32>
    %cst_64 = arith.constant 0.000000e+00 : f32
    %92 = vector.broadcast %cst_64 : f32 to vector<32x128xf32>
    %93 = arith.maximumf %91, %92 : vector<32x128xf32>
    %94 = arith.truncf %93 : vector<32x128xf32> to vector<32x128xbf16>
    %c0_65 = arith.constant 0 : index
    %c0_66 = arith.constant 0 : index
    %95 = vector.load %arg23[%c0_65, %c0_66] : memref<128x128xbf16, #tpu.memory_space<vmem>>, vector<128x128xbf16>
    %cst_67 = arith.constant dense<0.000000e+00> : vector<32x128xf32>
    %96 = tpu.matmul %94, %95, %cst_67 {dimension_numbers = #tpu.dot_dimension_numbers<[1], [0], [0], [1], [0, 0, 1, 1], [], []>} : vector<32x128xbf16>, vector<128x128xbf16>, vector<32x128xf32> -> vector<32x128xf32>
    %c0_68 = arith.constant 0 : index
    %c0_69 = arith.constant 0 : index
    %97 = vector.load %arg24[%c0_68, %c0_69] : memref<1x128xf32, #tpu.memory_space<vmem>>, vector<1x128xf32>
    %98 = vector.broadcast %97 : vector<1x128xf32> to vector<32x128xf32>
    %99 = arith.addf %96, %98 : vector<32x128xf32>
    %100 = arith.truncf %99 : vector<32x128xf32> to vector<32x128xbf16>
    %c0_70 = arith.constant 0 : index
    %c0_71 = arith.constant 0 : index
    %101 = vector.load %arg25[%c0_70, %c0_71] : memref<128x128xbf16, #tpu.memory_space<vmem>>, vector<128x128xbf16>
    %cst_72 = arith.constant dense<0.000000e+00> : vector<32x128xf32>
    %102 = tpu.matmul %100, %101, %cst_72 {dimension_numbers = #tpu.dot_dimension_numbers<[1], [0], [0], [1], [0, 0, 1, 1], [], []>} : vector<32x128xbf16>, vector<128x128xbf16>, vector<32x128xf32> -> vector<32x128xf32>
    %c0_73 = arith.constant 0 : index
    %c0_74 = arith.constant 0 : index
    %103 = vector.load %arg26[%c0_73, %c0_74] : memref<1x128xf32, #tpu.memory_space<vmem>>, vector<1x128xf32>
    %104 = vector.broadcast %103 : vector<1x128xf32> to vector<32x128xf32>
    %105 = arith.addf %102, %104 : vector<32x128xf32>
    %cst_75 = arith.constant 0.000000e+00 : f32
    %106 = vector.broadcast %cst_75 : f32 to vector<32x128xf32>
    %107 = arith.maximumf %105, %106 : vector<32x128xf32>
    %108 = arith.truncf %107 : vector<32x128xf32> to vector<32x128xbf16>
    %c0_76 = arith.constant 0 : index
    %c0_77 = arith.constant 0 : index
    %109 = vector.load %arg27[%c0_76, %c0_77] : memref<128x128xbf16, #tpu.memory_space<vmem>>, vector<128x128xbf16>
    %cst_78 = arith.constant dense<0.000000e+00> : vector<32x128xf32>
    %110 = tpu.matmul %108, %109, %cst_78 {dimension_numbers = #tpu.dot_dimension_numbers<[1], [0], [0], [1], [0, 0, 1, 1], [], []>} : vector<32x128xbf16>, vector<128x128xbf16>, vector<32x128xf32> -> vector<32x128xf32>
    %c0_79 = arith.constant 0 : index
    %c0_80 = arith.constant 0 : index
    %111 = vector.load %arg28[%c0_79, %c0_80] : memref<1x128xf32, #tpu.memory_space<vmem>>, vector<1x128xf32>
    %112 = vector.broadcast %111 : vector<1x128xf32> to vector<32x128xf32>
    %113 = arith.addf %110, %112 : vector<32x128xf32>
    %c0_81 = arith.constant 0 : index
    %c0_82 = arith.constant 0 : index
    %114 = vector.load %arg32[%c0_81, %c0_82] : memref<32x128xf32, #tpu.memory_space<vmem>>, vector<32x128xf32>
    tpu.vector_store %arg32[%c0_81, %c0_82], %113 {strides = array<i32>} : memref<32x128xf32, #tpu.memory_space<vmem>>, vector<32x128xf32>,
    return
  }
  func.func @transform_0(%arg0: i32) -> (i32, i32) {
    %c0_i32 = arith.constant 0 : i32
    %c0_i32_0 = arith.constant 0 : i32
    return %arg0, %c0_i32 : i32, i32
  }
  func.func @transform_1(%arg0: i32) -> (i32, i32) {
    %c0_i32 = arith.constant 0 : i32
    %c0_i32_0 = arith.constant 0 : i32
    %c0_i32_1 = arith.constant 0 : i32
    return %c0_i32, %c0_i32_0 : i32, i32
  }
  func.func @transform_2(%arg0: i32) -> (i32, i32) {
    %c0_i32 = arith.constant 0 : i32
    %c0_i32_0 = arith.constant 0 : i32
    %c0_i32_1 = arith.constant 0 : i32
    return %c0_i32, %c0_i32_0 : i32, i32
  }
  func.func @transform_3(%arg0: i32) -> (i32, i32) {
    %c0_i32 = arith.constant 0 : i32
    %c0_i32_0 = arith.constant 0 : i32
    %c0_i32_1 = arith.constant 0 : i32
    return %c0_i32, %c0_i32_0 : i32, i32
  }
  func.func @transform_4(%arg0: i32) -> (i32, i32) {
    %c0_i32 = arith.constant 0 : i32
    %c0_i32_0 = arith.constant 0 : i32
    %c0_i32_1 = arith.constant 0 : i32
    return %c0_i32, %c0_i32_0 : i32, i32
  }
  func.func @transform_5(%arg0: i32) -> (i32, i32) {
    %c0_i32 = arith.constant 0 : i32
    %c0_i32_0 = arith.constant 0 : i32
    return %arg0, %c0_i32 : i32, i32
  }
  func.func @transform_6(%arg0: i32) -> (i32, i32) {
    %c0_i32 = arith.constant 0 : i32
    %c0_i32_0 = arith.constant 0 : i32
    %c0_i32_1 = arith.constant 0 : i32
    return %c0_i32, %c0_i32_0 : i32, i32
  }
  func.func @transform_7(%arg0: i32) -> (i32, i32) {
    %c0_i32 = arith.constant 0 : i32
    %c0_i32_0 = arith.constant 0 : i32
    %c0_i32_1 = arith.constant 0 : i32
    return %c0_i32, %c0_i32_0 : i32, i32
  }
  func.func @transform_8(%arg0: i32) -> (i32, i32) {
    %c0_i32 = arith.constant 0 : i32
    %c0_i32_0 = arith.constant 0 : i32
    %c0_i32_1 = arith.constant 0 : i32
    return %c0_i32, %c0_i32_0 : i32, i32
  }
  func.func @transform_9(%arg0: i32) -> (i32, i32) {
    %c0_i32 = arith.constant 0 : i32
    %c0_i32_0 = arith.constant 0 : i32
    %c0_i32_1 = arith.constant 0 : i32
    return %c0_i32, %c0_i32_0 : i32, i32
  }
  func.func @transform_10(%arg0: i32) -> (i32, i32) {
    %c0_i32 = arith.constant 0 : i32
    %c0_i32_0 = arith.constant 0 : i32
    return %arg0, %c0_i32 : i32, i32
  }
  func.func @transform_11(%arg0: i32) -> (i32, i32) {
    %c0_i32 = arith.constant 0 : i32
    %c0_i32_0 = arith.constant 0 : i32
    %c0_i32_1 = arith.constant 0 : i32
    return %c0_i32, %c0_i32_0 : i32, i32
  }
  func.func @transform_12(%arg0: i32) -> (i32, i32) {
    %c0_i32 = arith.constant 0 : i32
    %c0_i32_0 = arith.constant 0 : i32
    %c0_i32_1 = arith.constant 0 : i32
    return %c0_i32, %c0_i32_0 : i32, i32
  }
  func.func @transform_13(%arg0: i32) -> (i32, i32) {
    %c0_i32 = arith.constant 0 : i32
    %c0_i32_0 = arith.constant 0 : i32
    %c0_i32_1 = arith.constant 0 : i32
    return %c0_i32, %c0_i32_0 : i32, i32
  }
  func.func @transform_14(%arg0: i32) -> (i32, i32) {
    %c0_i32 = arith.constant 0 : i32
    %c0_i32_0 = arith.constant 0 : i32
    %c0_i32_1 = arith.constant 0 : i32
    return %c0_i32, %c0_i32_0 : i32, i32
  }
  func.func @transform_15(%arg0: i32) -> (i32, i32) {
    %c0_i32 = arith.constant 0 : i32
    %c0_i32_0 = arith.constant 0 : i32
    return %arg0, %c0_i32 : i32, i32
  }
  func.func @transform_16(%arg0: i32) -> (i32, i32) {
    %c0_i32 = arith.constant 0 : i32
    %c0_i32_0 = arith.constant 0 : i32
    %c0_i32_1 = arith.constant 0 : i32
    return %c0_i32, %c0_i32_0 : i32, i32
  }
  func.func @transform_17(%arg0: i32) -> (i32, i32) {
    %c0_i32 = arith.constant 0 : i32
    %c0_i32_0 = arith.constant 0 : i32
    %c0_i32_1 = arith.constant 0 : i32
    return %c0_i32, %c0_i32_0 : i32, i32
  }
  func.func @transform_18(%arg0: i32) -> (i32, i32) {
    %c0_i32 = arith.constant 0 : i32
    %c0_i32_0 = arith.constant 0 : i32
    %c0_i32_1 = arith.constant 0 : i32
    return %c0_i32, %c0_i32_0 : i32, i32
  }
  func.func @transform_19(%arg0: i32) -> (i32, i32) {
    %c0_i32 = arith.constant 0 : i32
    %c0_i32_0 = arith.constant 0 : i32
    %c0_i32_1 = arith.constant 0 : i32
    return %c0_i32, %c0_i32_0 : i32, i32
  }
  func.func @transform_20(%arg0: i32) -> (i32, i32) {
    %c0_i32 = arith.constant 0 : i32
    %c0_i32_0 = arith.constant 0 : i32
    %c0_i32_1 = arith.constant 0 : i32
    return %c0_i32, %c0_i32_0 : i32, i32
  }
  func.func @transform_21(%arg0: i32) -> (i32, i32) {
    %c0_i32 = arith.constant 0 : i32
    %c0_i32_0 = arith.constant 0 : i32
    %c0_i32_1 = arith.constant 0 : i32
    return %c0_i32, %c0_i32_0 : i32, i32
  }
  func.func @transform_22(%arg0: i32) -> (i32, i32) {
    %c0_i32 = arith.constant 0 : i32
    %c0_i32_0 = arith.constant 0 : i32
    %c0_i32_1 = arith.constant 0 : i32
    return %c0_i32, %c0_i32_0 : i32, i32
  }
  func.func @transform_23(%arg0: i32) -> (i32, i32) {
    %c0_i32 = arith.constant 0 : i32
    %c0_i32_0 = arith.constant 0 : i32
    %c0_i32_1 = arith.constant 0 : i32
    return %c0_i32, %c0_i32_0 : i32, i32
  }
  func.func @transform_24(%arg0: i32) -> (i32, i32) {
    %c0_i32 = arith.constant 0 : i32
    %c0_i32_0 = arith.constant 0 : i32
    %c0_i32_1 = arith.constant 0 : i32
    return %c0_i32, %c0_i32_0 : i32, i32
  }
  func.func @transform_25(%arg0: i32) -> (i32, i32) {
    %c0_i32 = arith.constant 0 : i32
    %c0_i32_0 = arith.constant 0 : i32
    %c0_i32_1 = arith.constant 0 : i32
    return %c0_i32, %c0_i32_0 : i32, i32
  }
  func.func @transform_26(%arg0: i32) -> (i32, i32) {
    %c0_i32 = arith.constant 0 : i32
    %c0_i32_0 = arith.constant 0 : i32
    %c0_i32_1 = arith.constant 0 : i32
    return %c0_i32, %c0_i32_0 : i32, i32
  }
  func.func @transform_27(%arg0: i32) -> (i32, i32) {
    %c0_i32 = arith.constant 0 : i32
    %c0_i32_0 = arith.constant 0 : i32
    %c0_i32_1 = arith.constant 0 : i32
    return %c0_i32, %c0_i32_0 : i32, i32
  }
  func.func @transform_28(%arg0: i32) -> (i32, i32) {
    %c0_i32 = arith.constant 0 : i32
    %c0_i32_0 = arith.constant 0 : i32
    return %arg0, %c0_i32 : i32, i32
  }
  func.func @transform_29(%arg0: i32) -> (i32, i32) {
    %c0_i32 = arith.constant 0 : i32
    %c0_i32_0 = arith.constant 0 : i32
    return %arg0, %c0_i32 : i32, i32
  }
  func.func @transform_30(%arg0: i32) -> (i32, i32) {
    %c0_i32 = arith.constant 0 : i32
    %c0_i32_0 = arith.constant 0 : i32
    return %arg0, %c0_i32 : i32, i32
  }
  func.func @transform_31(%arg0: i32) -> (i32, i32) {
    %c0_i32 = arith.constant 0 : i32
    %c0_i32_0 = arith.constant 0 : i32
    return %arg0, %c0_i32 : i32, i32
  }
}

</mosaic_0001>

<bundles_post_ra>
// kernel: _fused_forward.1
= control target key start
LH: loop header
LB: loop body
LE: loop exit
PB: predicated region body
PF: predicated region fallthrough
CT: control target
= control target key end

     0   :  { %s5634_s6 = smov 1   ;;  %s5635_s10 = smov 2   ;;  %s6630_s0 = inlined_call_operand.smem [shape: u32[32], index: -1, kind: input, shape index: {}] }
   0x1   :  { %s5711_s5 = sld [smem:[%s6630_s0]]   ;;  %s5636_s14 = smov 3  }
   0x2   :  { %s5716_s9 = sld [smem:[%s6630_s0 + %s5634_s6]]   ;;  %s5637_s18 = smov 4  }
   0x3   :  { %s5721_s13 = sld [smem:[%s6630_s0 + %s5635_s10]]   ;;  %s5638_s22 = smov 5  }
   0x4   :  { %s5726_s17 = sld [smem:[%s6630_s0 + %s5636_s14]]   ;;  %s5639_s26 = smov 6  }
   0x5   :  { %s5731_s21 = sld [smem:[%s6630_s0 + %s5637_s18]]   ;;  %s5640_s30 = smov 7  }
   0x6   :  { %s5736_s25 = sld [smem:[%s6630_s0 + %s5638_s22]]   ;;  %s5641_s4 = smov 8  }
   0x7   :  { %6689 = sst [smem:[#allocation65_spill]] %s5711_s5  ;;  %s5642_s10 = smov 9  }
   0x8   :  { %6690 = sst [smem:[#allocation66_spill]] %s5716_s9  ;;  %s5643_s15 = smov 10  }
   0x9   :  { %6691 = sst [smem:[#allocation67_spill]] %s5721_s13  ;;  %s5644_s20 = smov 11  }
   0xa   :  { %6692 = sst [smem:[#allocation68_spill]] %s5726_s17  ;;  %s5646_s1 = smov 13  }
   0xb   :  { %6693 = sst [smem:[#allocation69_spill]] %s5731_s21  ;;  %s5647_s7 = smov 14  }
   0xc   :  { %6694 = sst [smem:[#allocation70_spill]] %s5736_s25  ;;  %s5649_s22 = smov 16  }
   0xd   :  { %s5741_s29 = sld [smem:[%s6630_s0 + %s5639_s26]]   ;;  %s5645_s26 = smov 12  }
   0xe   :  { %s5746_s3 = sld [smem:[%s6630_s0 + %s5640_s30]]   ;;  %s5650_s28 = smov 17  }
   0xf   :  { %s5751_s8 = sld [smem:[%s6630_s0 + %s5641_s4]]  }
  0x10   :  { %s5756_s14 = sld [smem:[%s6630_s0 + %s5642_s10]]  }
  0x11   :  { %s5761_s19 = sld [smem:[%s6630_s0 + %s5643_s15]]   ;;  %s5648_s15 = smov 15  }
  0x12   :  { %s5766_s24 = sld [smem:[%s6630_s0 + %s5644_s20]]  }
  0x13   :  { %6695 = sst [smem:[#allocation71_spill]] %s5741_s29 }
  0x14   :  { %6696 = sst [smem:[#allocation72_spill]] %s5746_s3 }
  0x15   :  { %6697 = sst [smem:[#allocation73_spill]] %s5751_s8 }
  0x16   :  { %6698 = sst [smem:[#allocation74_spill]] %s5756_s14 }
  0x17   :  { %6699 = sst [smem:[#allocation75_spill]] %s5761_s19 }
  0x18   :  { %6700 = sst [smem:[#allocation76_spill]] %s5766_s24 }
  0x19   :  { %s5771_s30 = sld [smem:[%s6630_s0 + %s5645_s26]]  }
  0x1a   :  { %s5776_s6 = sld [smem:[%s6630_s0 + %s5646_s1]]  }
  0x1b   :  { %s5781_s12 = sld [smem:[%s6630_s0 + %s5647_s7]]   ;;  %s5651_s7 = smov 18  }
  0x1c   :  { %s5786_s20 = sld [smem:[%s6630_s0 + %s5648_s15]]   ;;  %s5652_s15 = smov 19  }
  0x1d   :  { %s5791_s27 = sld [smem:[%s6630_s0 + %s5649_s22]]   ;;  %s5653_s22 = smov 20  }
  0x1e   :  { %s5796_s4 = sld [smem:[%s6630_s0 + %s5650_s28]]   ;;  %s5654_s28 = smov 21  }
  0x1f   :  { %6701 = sst [smem:[#allocation77_spill]] %s5771_s30 }
  0x20   :  { %6702 = sst [smem:[#allocation78_spill]] %s5776_s6 }
  0x21   :  { %6703 = sst [smem:[#allocation79_spill]] %s5781_s12 }
  0x22   :  { %6704 = sst [smem:[#allocation80_spill]] %s5786_s20 }
  0x23   :  { %6705 = sst [smem:[#allocation81_spill]] %s5791_s27 }
  0x24   :  { %6706 = sst [smem:[#allocation82_spill]] %s5796_s4 }
  0x25   :  { %s5801_s19 = sld [smem:[%s6630_s0 + %s5651_s7]]   ;;  %s5655_s7 = smov 22  }
  0x26   :  { %s5806_s21 = sld [smem:[%s6630_s0 + %s5652_s15]]   ;;  %s5656_s15 = smov 23  }
  0x27   :  { %s5811_s20 = sld [smem:[%s6630_s0 + %s5653_s22]]   ;;  %s5657_s22 = smov 24  }
  0x28   :  { %s5816_s25 = sld [smem:[%s6630_s0 + %s5654_s28]]   ;;  %s5658_s28 = smov 25  }
  0x29   :  { %s5826_s12 = sld [smem:[%s6630_s0 + %s5656_s15]]   ;;  %s5660_s15 = smov 27  }
  0x2b   :  { %6707 = sst [smem:[#allocation83_spill]] %s5801_s19 }
  0x2c   :  { %6708 = sst [smem:[#allocation84_spill]] %s5806_s21 }
  0x2d   :  { %6709 = sst [smem:[#allocation85_spill]] %s5811_s20 }
  0x2e   :  { %6710 = sst [smem:[#allocation86_spill]] %s5816_s25 }
  0x2f   :  { %s5821_s19 = sld [smem:[%s6630_s0 + %s5655_s7]]   ;;  %s5659_s7 = smov 26  }
  0x30   :  { %6712 = sst [smem:[#allocation88_spill]] %s5826_s12 }
  0x31   :  { %s5831_s20 = sld [smem:[%s6630_s0 + %s5657_s22]]   ;;  %s5661_s22 = smov 28  }
  0x32   :  { %s5836_s25 = sld [smem:[%s6630_s0 + %s5658_s28]]   ;;  %s5662_s28 = smov 29  }
  0x33   :  { %s5841_s30 = sld [smem:[%s6630_s0 + %s5659_s7]]   ;;  %s5663_s7 = smov 30  }
  0x34   :  { %s5846_s12 = sld [smem:[%s6630_s0 + %s5660_s15]]   ;;  %s5664_s15 = smov 31  }
  0x35   :  { %6711 = sst [smem:[#allocation87_spill]] %s5821_s19 }
  0x36   :  { %s5851_s14 = sld [smem:[%s6630_s0 + %s5661_s22]]  }
  0x37   :  { %6713 = sst [smem:[#allocation89_spill]] %s5831_s20 }
  0x38   :  { %6714 = sst [smem:[#allocation90_spill]] %s5836_s25 }
  0x39   :  { %6715 = sst [smem:[#allocation91_spill]] %s5841_s30 }
  0x3a   :  { %6716 = sst [smem:[#allocation92_spill]] %s5846_s12 }
  0x3b   :  { %s5856_s25 = sld [smem:[%s6630_s0 + %s5662_s28]]  }
  0x3c   :  { %6717 = sst [smem:[#allocation93_spill]] %s5851_s14 }
  0x3d   :  { %s5861_s3 = sld [smem:[%s6630_s0 + %s5663_s7]]  }
  0x3e   :  { %s5866_s12 = sld [smem:[%s6630_s0 + %s5664_s15]]  }
  0x41   :  { %6718 = sst [smem:[#allocation94_spill]] %s5856_s25 }
  0x43   :  { %6719 = sst [smem:[#allocation95_spill]] %s5861_s3 }
  0x44   :  { %6720 = sst [smem:[#allocation96_spill]] %s5866_s12 }
  0x45   :  { %69 = vsyncpa [#allocation3], 0 }
  0x46   :  { %71 = vsyncpa [#allocation3 + $0x1], 0 }
  0x47   :  { %72 = vsyncpa [#allocation6], 0 }
  0x48   :  { %73 = vsyncpa [#allocation9], 0 }
  0x49   :  { %74 = vsyncpa [#allocation14], 0 }
  0x4a   :  { %75 = vsyncpa [#allocation17], 0 }
  0x4b   :  { %76 = vsyncpa [#allocation20], 0 }
  0x4c   :  { %77 = vsyncpa [#allocation23], 0 }
  0x4d   :  { %79 = vsyncpa [#allocation23 + $0x1], 0 }
  0x4e   :  { %80 = vsyncpa [#allocation26], 0 }
  0x4f   :  { %81 = vsyncpa [#allocation29], 0 }
  0x50   :  { %82 = vsyncpa [#allocation32], 0 }
  0x51   :  { %83 = vsyncpa [#allocation35], 0 }
  0x52   :  { %84 = vsyncpa [#allocation38], 0 }
  0x53   :  { %85 = vsyncpa [#allocation4], 0 }
  0x54   :  { %87 = vsyncpa [#allocation4 + $0x1], 0 }
  0x55   :  { %88 = vsyncpa [#allocation42], 0 }
  0x56   :  { %90 = vsyncpa [#allocation42 + $0x1], 0 }
  0x57   :  { %91 = vsyncpa [#allocation45], 0 }
  0x58   :  { %93 = vsyncpa [#allocation45 + $0x1], 0  ;;  %s5868_s0 = smov 0   ;;  %s5870_s22 = smov 0  }
  0x59   :  { %s5872_s23 = smov 0   ;;  %s5874_s26 = smov 0  }
  0x5a LB: > { %s6721_s25 = sld [smem:[#allocation94_spill]]  ;;  %s6722_s29 = sld [smem:[#allocation71_spill]]  ;;  %s5628_s23 = sphi %s5872_s23, %s6806_s23   ;;  %s5624_s22 = sphi %s5870_s22, %s6805_s22   ;;  %s5620_s0 = sphi %s5868_s0, %s6804_s0   ;;  %s5632_s26 = sphi %s5874_s26, %s6807_s26  }
  0x5b   : > { %s6723_s5 = sld [smem:[#allocation65_spill]]  ;;  %s6724_s30 = sld [smem:[#allocation91_spill]] }
  0x5c   : > { %s6725_s27 = sld [smem:[#allocation81_spill]]  ;;  %s6726_s24 = sld [smem:[#allocation76_spill]] }
  0x5d   : > { %s6727_s21 = sld [smem:[#allocation84_spill]]  ;;  %s6728_s20 = sld [smem:[#allocation89_spill]] }
  0x5e   : > { %s6729_s19 = sld [smem:[#allocation87_spill]]  ;;  %s6730_s17 = sld [smem:[#allocation68_spill]] }
  0x5f   : > { %s6731_s13 = sld [smem:[#allocation67_spill]]  ;;  %s6732_s8 = sld [smem:[#allocation73_spill]] }
  0x60   : > { %s6733_s6 = sld [smem:[#allocation78_spill]]  ;;  %s6734_s4 = sld [smem:[#allocation82_spill]] }
  0x61   : > { %s6735_s9 = sld [smem:[#allocation66_spill]]  ;;  %s5665_s28 = smov [#allocation5]  }
  0x62   : > { %s828_s1 = sshll.u32 %s5665_s28, 4  ;;  %s5889_s2 = sadd.s32 4294967295, %s5632_s26   ;;  %s5894_s1 = int_to_ptr.vmem [resolvable:$true] %s828_s1 }
  0x63   : > { %p3686_p0 = scmp.ge.s32.totalorder %s5632_s26, 1  ;;  %p6644_p1 = scmp.eq.s32.totalorder %s5889_s2, 0 }
  0x64   : > { %p816_p2 = scmp.lt.s32.totalorder %s5632_s26, 3  ;;  %s5666_s10 = smov [#allocation7]  }
  0x65   : > { %s842_s11 = sshll.u32 %s5666_s10, 4  ;;  %s5667_s16 = smov [#allocation8]   ;;  %s5909_s11 = int_to_ptr.vmem [resolvable:$true] %s842_s11 }
  0x66   : > { %p5896_p3 = pnand %p3686_p0, %p816_p2  ;;  %s852_s18 = sshll.u32 %s5667_s16, 4  ;;  %s5911_s18 = int_to_ptr.vmem [resolvable:$true] %s852_s18 }
  0x67   : > { %s4708_s28 = scalar_lea.hbm %s6735_s9, 1024 }
  0x68   : > { %s6736_s7 = scalar_select %p5896_p3, 1, 0 }
  0x69   : > { %p4308_p5 = pneg %p5896_p3  ;;  %p4709_p7 = scmp.ne.s32.totalorder %s6735_s9, %s4708_s28 }
  0x6a   : > { %p4715_p11 = scmp.lt.u32.totalorder %s4708_s28, %s6735_s9 }
  0x6b   : > { %p5905_p6 = pnand %p4308_p5, %p6644_p1 }
  0x6d   : > { %s6737_s15 = scalar_select %p5905_p6, 1, 0 }
  0x6e   : > { %p5917_p8 = pneg %p5905_p6 }
  0x70   : > { %s6738_s12 = scalar_select %p5917_p8, 1, 0 }
  0x71   : > { %p4711_p9 = pnand %p5917_p8, %p4709_p7 }
  0x73   : > { %p4712_p10 = pneg %p4711_p9 }
  0x75   : > { %p4717_p12 = pnand %p4715_p11, %p4712_p10 }
  0x77   : > { %4720 = shalt.err (!%p4717_p12)
}
  0x78   : > { %s4721_s10 = scalar_lea.vmem %s5894_s1, 1024  ;;  %p4729_p5 = scmp.lt.s32.totalorder %s5894_s1, %s5894_s1 }
  0x79   : > { %p4722_p13 = scmp.ne.s32.totalorder %s5894_s1, %s4721_s10  ;;  %p4730_p4 = scmp.lt.s32.totalorder %s4721_s10, %s4721_s10 }
  0x7b   : > { %p4724_p0 = pnand %p4722_p13, %p5917_p8  ;;  %p4731_p1 = por %p4730_p4, %p4729_p5 }
  0x7d   : > { %p4725_p2 = pneg %p4724_p0 }
  0x7f   : > { %p4732_p3 = pnand %p4731_p1, %p4725_p2 }
  0x81   : > { %4735 = shalt.err (!%p4732_p3)
}
  0x82   : > { %s6648_s16 = smov 64   ;;  %s6650_s28 = smov 4  }
  0x83   : > { %4311 = dma.hbm_to_vmem [thread:$0]  (!%p5905_p6), %s6735_s9, 1024, %s5894_s1, [#allocation6], %s6648_s16, %s6648_s16, %s6650_s28  }
  0x84   : > { %s4736_s14 = scalar_lea.hbm %s6731_s13, 16 }
  0x85   : > { %p4737_p7 = scmp.ne.s32.totalorder %s6731_s13, %s4736_s14  ;;  %p4743_p3 = scmp.lt.u32.totalorder %s4736_s14, %s6731_s13 }
  0x87   : > { %p4739_p4 = pnand %p4737_p7, %p5917_p8 }
  0x89   : > { %p4740_p1 = pneg %p4739_p4 }
  0x8b   : > { %p4745_p9 = pnand %p4743_p3, %p4740_p1 }
  0x8d   : > { %4748 = shalt.err (!%p4745_p9)
}
  0x8e   : > { %s4749_s10 = scalar_lea.vmem %s5909_s11, 16  ;;  %s4756_s3 = scalar_lea.vmem %s5909_s11, 32 }
  0x8f   : > { %p4750_p10 = scmp.ne.s32.totalorder %s5909_s11, %s4749_s10  ;;  %p4757_p13 = scmp.lt.s32.totalorder %s5909_s11, %s5909_s11 }
  0x90   : > { %p4758_p0 = scmp.lt.s32.totalorder %s4756_s3, %s4749_s10 }
  0x91   : > { %p4752_p11 = pnand %p4750_p10, %p5917_p8 }
  0x92   : > { %p4759_p2 = por %p4758_p0, %p4757_p13 }
  0x93   : > { %p4753_p12 = pneg %p4752_p11 }
  0x95   : > { %p4760_p5 = pnand %p4759_p2, %p4753_p12 }
  0x97   : > { %4763 = shalt.err (!%p4760_p5)
}
  0x98   : > { %4314 = dma.hbm_to_vmem [thread:$0]  (!%p5905_p6), %s6731_s13, 16, %s5909_s11, [#allocation6]  }
  0x99   : > { %s4764_s14 = scalar_lea.hbm %s6730_s17, 2048 }
  0x9a   : > { %p4765_p7 = scmp.ne.s32.totalorder %s6730_s17, %s4764_s14  ;;  %p4771_p3 = scmp.lt.u32.totalorder %s4764_s14, %s6730_s17 }
  0x9c   : > { %p4767_p4 = pnand %p4765_p7, %p5917_p8 }
  0x9e   : > { %p4768_p1 = pneg %p4767_p4 }
  0xa0   : > { %p4773_p9 = pnand %p4771_p3, %p4768_p1 }
  0xa2   : > { %4776 = shalt.err (!%p4773_p9)
}
  0xa3   : > { %s4777_s3 = scalar_lea.vmem %s5911_s18, 2048  ;;  %p4785_p13 = scmp.lt.s32.totalorder %s5911_s18, %s5911_s18 }
  0xa4   : > { %p4778_p10 = scmp.ne.s32.totalorder %s5911_s18, %s4777_s3  ;;  %p4786_p0 = scmp.lt.s32.totalorder %s4777_s3, %s4777_s3 }
  0xa6   : > { %p4780_p11 = pnand %p4778_p10, %p5917_p8  ;;  %p4787_p2 = por %p4786_p0, %p4785_p13 }
  0xa8   : > { %p4781_p12 = pneg %p4780_p11 }
  0xaa   : > { %p4788_p5 = pnand %p4787_p2, %p4781_p12 }
  0xac   : > { %4791 = shalt.err (!%p4788_p5)
}
  0xad   : > { %s6653_s1 = smov 128   ;;  %s6654_s11 = smov 8  }
  0xae   : > { %4317 = dma.hbm_to_vmem [thread:$0]  (!%p5905_p6), %s6730_s17, 2048, %s5911_s18, [#allocation9], %s6653_s1, %s6653_s1, %s6654_s11  }
  0xaf   : > { %s5672_s10 = smov [#allocation13]   ;;  %s5673_s3 = smov [#allocation16]  }
  0xb0   : > { %s892_s14 = sshll.u32 %s5672_s10, 4  ;;  %s916_s16 = sshll.u32 %s5673_s3, 4  ;;  %s893_s14 = int_to_ptr.vmem [resolvable:$true] %s892_s14  ;;  %s917_s16 = int_to_ptr.vmem [resolvable:$true] %s916_s16 }
  0xb1   : > { %s4792_s28 = scalar_lea.hbm %s6732_s8, 2048 }
  0xb2   : > { %p4793_p7 = scmp.ne.s32.totalorder %s6732_s8, %s4792_s28  ;;  %p4799_p3 = scmp.lt.u32.totalorder %s4792_s28, %s6732_s8 }
  0xb4   : > { %p4795_p4 = pnand %p4793_p7, %p5917_p8 }
  0xb6   : > { %p4796_p1 = pneg %p4795_p4 }
  0xb8   : > { %p4801_p9 = pnand %p4799_p3, %p4796_p1 }
  0xba   : > { %4804 = shalt.err (!%p4801_p9)
}
  0xbb   : > { %s4805_s9 = scalar_lea.vmem %s893_s14, 2048  ;;  %p4813_p13 = scmp.lt.s32.totalorder %s893_s14, %s893_s14 }
  0xbc   : > { %p4806_p10 = scmp.ne.s32.totalorder %s893_s14, %s4805_s9  ;;  %p4814_p0 = scmp.lt.s32.totalorder %s4805_s9, %s4805_s9 }
  0xbe   : > { %p4808_p11 = pnand %p4806_p10, %p5917_p8  ;;  %p4815_p2 = por %p4814_p0, %p4813_p13 }
  0xc0   : > { %p4809_p12 = pneg %p4808_p11 }
  0xc2   : > { %p4816_p5 = pnand %p4815_p2, %p4809_p12 }
  0xc4   : > { %4819 = shalt.err (!%p4816_p5)
}
  0xc5   : > { %4326 = dma.hbm_to_vmem [thread:$0]  (!%p5905_p6), %s6732_s8, 2048, %s893_s14, [#allocation14], %s6653_s1, %s6653_s1, %s6654_s11  }
  0xc6   : > { %s4820_s18 = scalar_lea.hbm %s6726_s24, 1024 }
  0xc7   : > { %p4821_p7 = scmp.ne.s32.totalorder %s6726_s24, %s4820_s18  ;;  %p4827_p3 = scmp.lt.u32.totalorder %s4820_s18, %s6726_s24 }
  0xc9   : > { %p4823_p4 = pnand %p4821_p7, %p5917_p8 }
  0xcb   : > { %p4824_p1 = pneg %p4823_p4 }
  0xcd   : > { %p4829_p9 = pnand %p4827_p3, %p4824_p1 }
  0xcf   : > { %4832 = shalt.err (!%p4829_p9)
}
  0xd0   : > { %s4833_s9 = scalar_lea.vmem %s917_s16, 1024  ;;  %p4841_p13 = scmp.lt.s32.totalorder %s917_s16, %s917_s16 }
  0xd1   : > { %p4834_p10 = scmp.ne.s32.totalorder %s917_s16, %s4833_s9  ;;  %p4842_p0 = scmp.lt.s32.totalorder %s4833_s9, %s4833_s9 }
  0xd3   : > { %p4836_p11 = pnand %p4834_p10, %p5917_p8  ;;  %p4843_p2 = por %p4842_p0, %p4841_p13 }
  0xd5   : > { %p4837_p12 = pneg %p4836_p11 }
  0xd7   : > { %p4844_p5 = pnand %p4843_p2, %p4837_p12 }
  0xd9   : > { %4847 = shalt.err (!%p4844_p5)
}
  0xda   : > { %s6739_s28 = smov 4   ;;  %s6740_s10 = smov 64  }
  0xdb   : > { %4332 = dma.hbm_to_vmem [thread:$0]  (!%p5905_p6), %s6726_s24, 1024, %s917_s16, [#allocation17], %s6740_s10, %s6740_s10, %s6739_s28  }
  0xdc   : > { %s5674_s14 = smov [#allocation19]   ;;  %s5675_s18 = smov [#allocation24]  }
  0xdd   : > { %s940_s3 = sshll.u32 %s5674_s14, 4  ;;  %s964_s1 = sshll.u32 %s5675_s18, 4  ;;  %s941_s3 = int_to_ptr.vmem [resolvable:$true] %s940_s3  ;;  %s965_s1 = int_to_ptr.vmem [resolvable:$true] %s964_s1 }
  0xde   : > { %s4848_s9 = scalar_lea.hbm %s6733_s6, 2048 }
  0xdf   : > { %p4849_p7 = scmp.ne.s32.totalorder %s6733_s6, %s4848_s9  ;;  %p4855_p3 = scmp.lt.u32.totalorder %s4848_s9, %s6733_s6 }
  0xe1   : > { %p4851_p4 = pnand %p4849_p7, %p5917_p8 }
  0xe3   : > { %p4852_p1 = pneg %p4851_p4 }
  0xe5   : > { %p4857_p9 = pnand %p4855_p3, %p4852_p1 }
  0xe7   : > { %4860 = shalt.err (!%p4857_p9)
}
  0xe8   : > { %s4861_s11 = scalar_lea.vmem %s941_s3, 2048  ;;  %p4869_p13 = scmp.lt.s32.totalorder %s941_s3, %s941_s3 }
  0xe9   : > { %p4862_p10 = scmp.ne.s32.totalorder %s941_s3, %s4861_s11  ;;  %p4870_p0 = scmp.lt.s32.totalorder %s4861_s11, %s4861_s11 }
  0xeb   : > { %p4864_p11 = pnand %p4862_p10, %p5917_p8  ;;  %p4871_p2 = por %p4870_p0, %p4869_p13 }
  0xed   : > { %p4865_p12 = pneg %p4864_p11 }
  0xef   : > { %p4872_p5 = pnand %p4871_p2, %p4865_p12 }
  0xf1   : > { %4875 = shalt.err (!%p4872_p5)
}
  0xf2   : > { %s6741_s16 = smov 8   ;;  %s6742_s14 = smov 128  }
  0xf3   : > { %4338 = dma.hbm_to_vmem [thread:$0]  (!%p5905_p6), %s6733_s6, 2048, %s941_s3, [#allocation20], %s6742_s14, %s6742_s14, %s6741_s16  }
  0xf4   : > { %s4876_s18 = scalar_lea.hbm %s6725_s27, 1024 }
  0xf5   : > { %p4877_p7 = scmp.ne.s32.totalorder %s6725_s27, %s4876_s18  ;;  %p4883_p3 = scmp.lt.u32.totalorder %s4876_s18, %s6725_s27 }
  0xf7   : > { %p4879_p4 = pnand %p4877_p7, %p5917_p8 }
  0xf9   : > { %p4880_p1 = pneg %p4879_p4 }
  0xfb   : > { %p4885_p9 = pnand %p4883_p3, %p4880_p1 }
  0xfd   : > { %4888 = shalt.err (!%p4885_p9)
}
  0xfe   : > { %s4889_s11 = scalar_lea.vmem %s965_s1, 1024  ;;  %p4897_p13 = scmp.lt.s32.totalorder %s965_s1, %s965_s1 }
  0xff   : > { %p4890_p10 = scmp.ne.s32.totalorder %s965_s1, %s4889_s11  ;;  %p4898_p0 = scmp.lt.s32.totalorder %s4889_s11, %s4889_s11 }
 0x101   : > { %p4892_p11 = pnand %p4890_p10, %p5917_p8  ;;  %p4899_p2 = por %p4898_p0, %p4897_p13 }
 0x103   : > { %p4893_p12 = pneg %p4892_p11 }
 0x105   : > { %p4900_p5 = pnand %p4899_p2, %p4893_p12 }
 0x107   : > { %4903 = shalt.err (!%p4900_p5)
}
 0x108   : > { %4344 = dma.hbm_to_vmem [thread:$0]  (!%p5905_p6), %s6725_s27, 1024, %s965_s1, [#allocation23], %s6740_s10, %s6740_s10, %s6739_s28  }
 0x109   : > { %s5676_s3 = smov [#allocation25]   ;;  %s5677_s16 = smov [#allocation28]  }
 0x10a   : > { %s978_s9 = sshll.u32 %s5676_s3, 4  ;;  %s1002_s14 = sshll.u32 %s5677_s16, 4  ;;  %s979_s9 = int_to_ptr.vmem [resolvable:$true] %s978_s9  ;;  %s1003_s14 = int_to_ptr.vmem [resolvable:$true] %s1002_s14 }
 0x10b   : > { %s4904_s18 = scalar_lea.hbm %s6734_s4, 16 }
 0x10c   : > { %p4905_p7 = scmp.ne.s32.totalorder %s6734_s4, %s4904_s18  ;;  %p4911_p3 = scmp.lt.u32.totalorder %s4904_s18, %s6734_s4 }
 0x10e   : > { %p4907_p4 = pnand %p4905_p7, %p5917_p8 }
 0x110   : > { %p4908_p1 = pneg %p4907_p4 }
 0x112   : > { %p4913_p9 = pnand %p4911_p3, %p4908_p1 }
 0x114   : > { %4916 = shalt.err (!%p4913_p9)
}
 0x115   : > { %s4917_s11 = scalar_lea.vmem %s979_s9, 16  ;;  %s4924_s1 = scalar_lea.vmem %s979_s9, 32 }
 0x116   : > { %p4918_p10 = scmp.ne.s32.totalorder %s979_s9, %s4917_s11  ;;  %p4925_p13 = scmp.lt.s32.totalorder %s979_s9, %s979_s9 }
 0x117   : > { %p4926_p0 = scmp.lt.s32.totalorder %s4924_s1, %s4917_s11 }
 0x118   : > { %p4920_p11 = pnand %p4918_p10, %p5917_p8 }
 0x119   : > { %p4927_p2 = por %p4926_p0, %p4925_p13 }
 0x11a   : > { %p4921_p12 = pneg %p4920_p11 }
 0x11c   : > { %p4928_p5 = pnand %p4927_p2, %p4921_p12 }
 0x11e   : > { %4931 = shalt.err (!%p4928_p5)
}
 0x11f   : > { %4347 = dma.hbm_to_vmem [thread:$0]  (!%p5905_p6), %s6734_s4, 16, %s979_s9, [#allocation26]  }
 0x120   : > { %s4932_s3 = scalar_lea.hbm %s6727_s21, 16 }
 0x121   : > { %p4933_p7 = scmp.ne.s32.totalorder %s6727_s21, %s4932_s3  ;;  %p4939_p3 = scmp.lt.u32.totalorder %s4932_s3, %s6727_s21 }
 0x123   : > { %p4935_p4 = pnand %p4933_p7, %p5917_p8 }
 0x125   : > { %p4936_p1 = pneg %p4935_p4 }
 0x127   : > { %p4941_p9 = pnand %p4939_p3, %p4936_p1 }
 0x129   : > { %4944 = shalt.err (!%p4941_p9)
}
 0x12a   : > { %s4945_s16 = scalar_lea.vmem %s1003_s14, 16  ;;  %s4952_s18 = scalar_lea.vmem %s1003_s14, 32 }
 0x12b   : > { %p4946_p10 = scmp.ne.s32.totalorder %s1003_s14, %s4945_s16  ;;  %p4953_p13 = scmp.lt.s32.totalorder %s1003_s14, %s1003_s14 }
 0x12c   : > { %p4954_p0 = scmp.lt.s32.totalorder %s4952_s18, %s4945_s16 }
 0x12d   : > { %p4948_p11 = pnand %p4946_p10, %p5917_p8 }
 0x12e   : > { %p4955_p2 = por %p4954_p0, %p4953_p13 }
 0x12f   : > { %p4949_p12 = pneg %p4948_p11 }
 0x131   : > { %p4956_p5 = pnand %p4955_p2, %p4949_p12 }
 0x133   : > { %4959 = shalt.err (!%p4956_p5)
}
 0x134   : > { %4353 = dma.hbm_to_vmem [thread:$0]  (!%p5905_p6), %s6727_s21, 16, %s1003_s14, [#allocation29]  }
 0x135   : > { %s5678_s9 = smov [#allocation31]   ;;  %s5679_s1 = smov [#allocation34]  }
 0x136   : > { %s1026_s11 = sshll.u32 %s5678_s9, 4  ;;  %s1050_s3 = sshll.u32 %s5679_s1, 4  ;;  %s1027_s11 = int_to_ptr.vmem [resolvable:$true] %s1026_s11  ;;  %s1051_s3 = int_to_ptr.vmem [resolvable:$true] %s1050_s3 }
 0x137   : > { %s4960_s4 = scalar_lea.hbm %s6729_s19, 1024 }
 0x138   : > { %p4961_p7 = scmp.ne.s32.totalorder %s6729_s19, %s4960_s4  ;;  %p4967_p3 = scmp.lt.u32.totalorder %s4960_s4, %s6729_s19 }
 0x13a   : > { %p4963_p4 = pnand %p4961_p7, %p5917_p8 }
 0x13c   : > { %p4964_p1 = pneg %p4963_p4 }
 0x13e   : > { %p4969_p9 = pnand %p4967_p3, %p4964_p1 }
 0x140   : > { %4972 = shalt.err (!%p4969_p9)
}
 0x141   : > { %s4973_s16 = scalar_lea.vmem %s1027_s11, 1024  ;;  %p4981_p13 = scmp.lt.s32.totalorder %s1027_s11, %s1027_s11 }
 0x142   : > { %p4974_p10 = scmp.ne.s32.totalorder %s1027_s11, %s4973_s16  ;;  %p4982_p0 = scmp.lt.s32.totalorder %s4973_s16, %s4973_s16 }
 0x144   : > { %p4976_p11 = pnand %p4974_p10, %p5917_p8  ;;  %p4983_p2 = por %p4982_p0, %p4981_p13 }
 0x146   : > { %p4977_p12 = pneg %p4976_p11 }
 0x148   : > { %p4984_p5 = pnand %p4983_p2, %p4977_p12 }
 0x14a   : > { %4987 = shalt.err (!%p4984_p5)
}
 0x14b   : > { %4359 = dma.hbm_to_vmem [thread:$0]  (!%p5905_p6), %s6729_s19, 1024, %s1027_s11, [#allocation32], %s6740_s10, %s6740_s10, %s6739_s28  }
 0x14c   : > { %s4988_s4 = scalar_lea.hbm %s6728_s20, 1024 }
 0x14d   : > { %p4989_p7 = scmp.ne.s32.totalorder %s6728_s20, %s4988_s4  ;;  %p4995_p3 = scmp.lt.u32.totalorder %s4988_s4, %s6728_s20 }
 0x14f   : > { %p4991_p4 = pnand %p4989_p7, %p5917_p8 }
 0x151   : > { %p4992_p1 = pneg %p4991_p4 }
 0x153   : > { %p4997_p9 = pnand %p4995_p3, %p4992_p1 }
 0x155   : > { %5000 = shalt.err (!%p4997_p9)
}
 0x156   : > { %s5001_s14 = scalar_lea.vmem %s1051_s3, 1024  ;;  %p5009_p13 = scmp.lt.s32.totalorder %s1051_s3, %s1051_s3 }
 0x157   : > { %p5002_p10 = scmp.ne.s32.totalorder %s1051_s3, %s5001_s14  ;;  %p5010_p0 = scmp.lt.s32.totalorder %s5001_s14, %s5001_s14 }
 0x159   : > { %p5004_p11 = pnand %p5002_p10, %p5917_p8  ;;  %p5011_p2 = por %p5010_p0, %p5009_p13 }
 0x15b   : > { %p5005_p12 = pneg %p5004_p11 }
 0x15d   : > { %p5012_p5 = pnand %p5011_p2, %p5005_p12 }
 0x15f   : > { %5015 = shalt.err (!%p5012_p5)
}
 0x160   : > { %4365 = dma.hbm_to_vmem [thread:$0]  (!%p5905_p6), %s6728_s20, 1024, %s1051_s3, [#allocation35], %s6740_s10, %s6740_s10, %s6739_s28  }
 0x161   : > { %s5680_s18 = smov [#allocation37]   ;;  %s5016_s11 = scalar_lea.hbm %s6724_s30, 1024 }
 0x162   : > { %s1074_s9 = sshll.u32 %s5680_s18, 4  ;;  %p5017_p7 = scmp.ne.s32.totalorder %s6724_s30, %s5016_s11  ;;  %s1075_s9 = int_to_ptr.vmem [resolvable:$true] %s1074_s9 }
 0x163   : > { %p5023_p3 = scmp.lt.u32.totalorder %s5016_s11, %s6724_s30 }
 0x164   : > { %p5019_p4 = pnand %p5017_p7, %p5917_p8 }
 0x166   : > { %p5020_p1 = pneg %p5019_p4 }
 0x168   : > { %p5025_p9 = pnand %p5023_p3, %p5020_p1 }
 0x16a   : > { %5028 = shalt.err (!%p5025_p9)
}
 0x16b   : > { %s5029_s1 = scalar_lea.vmem %s1075_s9, 1024  ;;  %p5037_p13 = scmp.lt.s32.totalorder %s1075_s9, %s1075_s9 }
 0x16c   : > { %p5030_p10 = scmp.ne.s32.totalorder %s1075_s9, %s5029_s1  ;;  %p5038_p0 = scmp.lt.s32.totalorder %s5029_s1, %s5029_s1 }
 0x16e   : > { %p5032_p11 = pnand %p5030_p10, %p5917_p8  ;;  %p5039_p2 = por %p5038_p0, %p5037_p13 }
 0x170   : > { %p5033_p12 = pneg %p5032_p11 }
 0x172   : > { %p5040_p5 = pnand %p5039_p2, %p5033_p12 }
 0x174   : > { %5043 = shalt.err (!%p5040_p5)
}
 0x175   : > { %4371 = dma.hbm_to_vmem [thread:$0]  (!%p5905_p6), %s6724_s30, 1024, %s1075_s9, [#allocation38], %s6740_s10, %s6740_s10, %s6739_s28  }
 0x176   : > { %s6659_s3 = sadd.s32 4294967294, %s5632_s26   ;;  %s6084_s16 = sadd.s32 1, %s5632_s26  }
 0x177   : > { %s103_s4 = ssub.s32 %s5632_s26, %s6084_s16  ;;  %s106_s14 = sadd.s32 1, %s5628_s23 }
 0x178   : > { %p104_p7 = scmp.eq.s32.totalorder %s103_s4, 0  ;;  %p113_p4 = scmp.ne.s32.totalorder %s5628_s23, %s5624_s22 }
 0x179   : > { %p114_p1 = scmp.eq.s32.totalorder %s5632_s26, 0  ;;  %p119_p3 = scmp.ne.s32.totalorder %s5624_s22, %s5620_s0 }
 0x17a   : > { %s6095_s18 = scalar_select %p104_p7, %s5628_s23, %s106_s14  }
 0x17b   : > { %p6097_p9 = por %p114_p1, %p113_p4  ;;  %p6744_p10 = scmp.eq.s32.totalorder %s5889_s2, 0 }
 0x17c   : > { %p725_p12 = scmp.eq.s32.totalorder %s5889_s2, 1  ;;  %p731_p13 = scmp.eq.s32.totalorder %s6659_s3, 1 }
 0x17d   : > { %p6103_p11 = por %p6744_p10, %p119_p3  ;;  %p4420_p0 = scmp.lt.s32.totalorder %s5632_s26, 2 }
 0x17e   : > { %p6112_p2 = por %p725_p12, %p113_p4  ;;  %p6116_p5 = por %p731_p13, %p119_p3 }
 0x17f   : > { %s6745_s9 = scalar_select %p6103_p11, 1, 0 }
 0x180   : > { %s6746_s4 = scalar_select %p6112_p2, 1, 0 }
 0x181   : > { %s6747_s14 = scalar_select %p6116_p5, 1, 0 }
 0x182   : > { %s1101_s6 = sand.u32 1, %s5628_s23   ;;  %s6124_s13 = sshll.u32 %s5632_s26, 8 }
 0x183   : > { %s6121_s8 = sshll.u32 %s1101_s6, 4  ;;  %s6128_s3 = scalar_lea.hbm %s6723_s5, %s6124_s13 }
 0x184   : > { %s1103_s1 = scalar_lea.vmem [#allocation2], %s6121_s8  ;;  %p6133_p7 = pnand %p4420_p0, %p6097_p9 }
 0x185   : > { %s1110_s17 = sshll.u32 %s1103_s1, 4  ;;  %s6749_s6 = sand.u32 1, %s5632_s26   ;;  %s6137_s17 = int_to_ptr.vmem [resolvable:$true] %s1110_s17 }
 0x186   : > { %s6748_s19 = scalar_select %p6133_p7, 1, 0 }
 0x187   : > { %s6141_s20 = scalar_lea.sflag [#allocation3], %s6749_s6  ;;  %s5044_s21 = scalar_lea.hbm %s6128_s3, 256 }
 0x188   : > { %p5045_p4 = scmp.ne.s32.totalorder %s6128_s3, %s5044_s21  ;;  %p6147_p1 = pneg %p6133_p7 }
 0x189   : > { %s5049_s11 = scalar_lea.hbm %s6723_s5, 512  ;;  %p5050_p10 = scmp.lt.u32.totalorder %s6128_s3, %s6723_s5 }
 0x18a   : > { %s6750_s24 = scalar_select %p6147_p1, 1, 0 }
 0x18b   : > { %p5047_p3 = pnand %p6147_p1, %p5045_p4  ;;  %p5051_p12 = scmp.lt.u32.totalorder %s5049_s11, %s5044_s21 }
 0x18c   : > { %p5053_p0 = scmp.lt.u32.totalorder %s5044_s21, %s6128_s3 }
 0x18d   : > { %p5048_p9 = pneg %p5047_p3  ;;  %p5052_p13 = por %p5051_p12, %p5050_p10 }
 0x18f   : > { %p5054_p5 = por %p5053_p0, %p5052_p13 }
 0x191   : > { %p5055_p2 = pnand %p5054_p5, %p5048_p9 }
 0x193   : > { %5058 = shalt.err (!%p5055_p2)
}
 0x194   : > { %s5059_s1 = scalar_lea.vmem %s6137_s17, 256  ;;  %s5681_s6 = smov [#allocation2]  }
 0x195   : > { %p5060_p11 = scmp.ne.s32.totalorder %s6137_s17, %s5059_s1  ;;  %s5064_s27 = sshll.u32 %s5681_s6, 4  ;;  %s5065_s27 = int_to_ptr.vmem [resolvable:$false] %s5064_s27 }
 0x196   : > { %s5066_s30 = scalar_lea.vmem %s5065_s27, 512  ;;  %p5067_p4 = scmp.lt.s32.totalorder %s6137_s17, %s5065_s27 }
 0x197   : > { %p5062_p6 = pnand %p5060_p11, %p6147_p1  ;;  %p5068_p3 = scmp.lt.s32.totalorder %s5066_s30, %s5059_s1 }
 0x199   : > { %p5063_p8 = pneg %p5062_p6  ;;  %p5069_p10 = por %p5068_p3, %p5067_p4 }
 0x19b   : > { %p5070_p12 = pnand %p5069_p10, %p5063_p8 }
 0x19d   : > { %5073 = shalt.err (!%p5070_p12)
}
 0x19e   : > { %4378 = dma.hbm_to_vmem [thread:$0]  (!%p6133_p7), %s6128_s3, 256, %s6137_s17, %s6141_s20, %s6740_s10, %s6740_s10, %s6739_s28  }
 0x19f   : > { %s5682_s21 = smov [#allocation11]   ;;  %s5683_s30 = smov [#allocation12]  }
 0x1a0   : > { %s868_s11 = sshll.u32 %s5682_s21, 4  ;;  %s882_s27 = sshll.u32 %s5683_s30, 4  ;;  %s869_s11 = int_to_ptr.vmem [resolvable:$true] %s868_s11  ;;  %s883_s27 = int_to_ptr.vmem [resolvable:$true] %s882_s27 }
 0x1a1   : > { %s5074_s1 = scalar_lea.hbm %s6722_s29, 1024  ;;  %p6751_p8 = scmp.ne.s32.totalorder %s6738_s12, 0 }
 0x1a2   : > { %p5075_p6 = scmp.ne.s32.totalorder %s6722_s29, %s5074_s1  ;;  %p5081_p5 = scmp.lt.u32.totalorder %s5074_s1, %s6722_s29 }
 0x1a4   : > { %p5077_p11 = pnand %p5075_p6, %p6751_p8 }
 0x1a6   : > { %p5078_p2 = pneg %p5077_p11 }
 0x1a8   : > { %p5083_p9 = pnand %p5081_p5, %p5078_p2 }
 0x1aa   : > { %5086 = shalt.err (!%p5083_p9)
}
 0x1ab   : > { %s5087_s6 = scalar_lea.vmem %s869_s11, 1024  ;;  %p5095_p3 = scmp.lt.s32.totalorder %s869_s11, %s869_s11 }
 0x1ac   : > { %p5088_p13 = scmp.ne.s32.totalorder %s869_s11, %s5087_s6  ;;  %p5096_p10 = scmp.lt.s32.totalorder %s5087_s6, %s5087_s6 }
 0x1ae   : > { %p5090_p0 = pnand %p5088_p13, %p6751_p8  ;;  %p5097_p12 = por %p5096_p10, %p5095_p3 }
 0x1b0   : > { %p5091_p4 = pneg %p5090_p0 }
 0x1b2   : > { %p5098_p7 = pnand %p5097_p12, %p5091_p4 }
 0x1b4   : > { %5101 = shalt.err (!%p5098_p7)
}
 0x1b5   : > { %p6752_p1 = scmp.ne.s32.totalorder %s6737_s15, 0  ;;  %s6753_s17 = sld [smem:[#allocation72_spill]] }
 0x1b7   : > { %4320 = dma.hbm_to_vmem [thread:$0]  (!%p6752_p1), %s6722_s29, 1024, %s869_s11, [#allocation6], %s6740_s10, %s6740_s10, %s6739_s28  }
 0x1bb   : > { %s5102_s3 = scalar_lea.hbm %s6753_s17, 16 }
 0x1bc   : > { %p5103_p6 = scmp.ne.s32.totalorder %s6753_s17, %s5102_s3  ;;  %p5109_p5 = scmp.lt.u32.totalorder %s5102_s3, %s6753_s17 }
 0x1be   : > { %p5105_p11 = pnand %p5103_p6, %p6751_p8 }
 0x1c0   : > { %p5106_p2 = pneg %p5105_p11 }
 0x1c2   : > { %p5111_p9 = pnand %p5109_p5, %p5106_p2 }
 0x1c4   : > { %5114 = shalt.err (!%p5111_p9)
}
 0x1c5   : > { %s5115_s21 = scalar_lea.vmem %s883_s27, 16  ;;  %s5122_s30 = scalar_lea.vmem %s883_s27, 32 }
 0x1c6   : > { %p5116_p7 = scmp.ne.s32.totalorder %s883_s27, %s5115_s21  ;;  %p5123_p4 = scmp.lt.s32.totalorder %s883_s27, %s883_s27 }
 0x1c7   : > { %p5124_p3 = scmp.lt.s32.totalorder %s5122_s30, %s5115_s21 }
 0x1c8   : > { %p5118_p13 = pnand %p5116_p7, %p6751_p8 }
 0x1c9   : > { %p5125_p10 = por %p5124_p3, %p5123_p4 }
 0x1ca   : > { %p5119_p0 = pneg %p5118_p13 }
 0x1cc   : > { %p5126_p12 = pnand %p5125_p10, %p5119_p0 }
 0x1ce   : > { %5129 = shalt.err (!%p5126_p12)
}
 0x1cf   : > { %s6754_s11 = sld [smem:[#allocation74_spill]]  ;;  %s5684_s1 = smov [#allocation15]  }
 0x1d0   : > { %4323 = dma.hbm_to_vmem [thread:$0]  (!%p6752_p1), %s6753_s17, 16, %s883_s27, [#allocation9]  }
 0x1d1   : > { %s906_s6 = sshll.u32 %s5684_s1, 4  ;;  %s5685_s3 = smov [#allocation18]   ;;  %s907_s6 = int_to_ptr.vmem [resolvable:$true] %s906_s6 }
 0x1d2   : > { %s930_s5 = sshll.u32 %s5685_s3, 4  ;;  %s931_s5 = int_to_ptr.vmem [resolvable:$true] %s930_s5 }
 0x1d5   : > { %s5130_s29 = scalar_lea.hbm %s6754_s11, 32 }
 0x1d6   : > { %p5131_p6 = scmp.ne.s32.totalorder %s6754_s11, %s5130_s29  ;;  %p5137_p5 = scmp.lt.u32.totalorder %s5130_s29, %s6754_s11 }
 0x1d8   : > { %p5133_p11 = pnand %p5131_p6, %p6751_p8 }
 0x1da   : > { %p5134_p2 = pneg %p5133_p11 }
 0x1dc   : > { %p5139_p9 = pnand %p5137_p5, %p5134_p2 }
 0x1de   : > { %5142 = shalt.err (!%p5139_p9)
}
 0x1df   : > { %s5143_s21 = scalar_lea.vmem %s907_s6, 32  ;;  %p5151_p4 = scmp.lt.s32.totalorder %s907_s6, %s907_s6 }
 0x1e0   : > { %p5144_p7 = scmp.ne.s32.totalorder %s907_s6, %s5143_s21  ;;  %p5152_p3 = scmp.lt.s32.totalorder %s5143_s21, %s5143_s21 }
 0x1e2   : > { %p5146_p13 = pnand %p5144_p7, %p6751_p8  ;;  %p5153_p10 = por %p5152_p3, %p5151_p4 }
 0x1e4   : > { %p5147_p0 = pneg %p5146_p13 }
 0x1e6   : > { %p5154_p12 = pnand %p5153_p10, %p5147_p0 }
 0x1e8   : > { %5157 = shalt.err (!%p5154_p12)
}
 0x1e9   : > { %s6755_s27 = sld [smem:[#allocation77_spill]] }
 0x1ea   : > { %4329 = dma.hbm_to_vmem [thread:$0]  (!%p6752_p1), %s6754_s11, 32, %s907_s6, [#allocation14]  }
 0x1ef   : > { %s5158_s29 = scalar_lea.hbm %s6755_s27, 16 }
 0x1f0   : > { %p5159_p6 = scmp.ne.s32.totalorder %s6755_s27, %s5158_s29  ;;  %p5165_p5 = scmp.lt.u32.totalorder %s5158_s29, %s6755_s27 }
 0x1f2   : > { %p5161_p11 = pnand %p5159_p6, %p6751_p8 }
 0x1f4   : > { %p5162_p2 = pneg %p5161_p11 }
 0x1f6   : > { %p5167_p9 = pnand %p5165_p5, %p5162_p2 }
 0x1f8   : > { %5170 = shalt.err (!%p5167_p9)
}
 0x1f9   : > { %s5171_s30 = scalar_lea.vmem %s931_s5, 16  ;;  %s5178_s1 = scalar_lea.vmem %s931_s5, 32 }
 0x1fa   : > { %p5172_p7 = scmp.ne.s32.totalorder %s931_s5, %s5171_s30  ;;  %p5179_p4 = scmp.lt.s32.totalorder %s931_s5, %s931_s5 }
 0x1fb   : > { %p5180_p3 = scmp.lt.s32.totalorder %s5178_s1, %s5171_s30 }
 0x1fc   : > { %p5174_p13 = pnand %p5172_p7, %p6751_p8 }
 0x1fd   : > { %p5181_p10 = por %p5180_p3, %p5179_p4 }
 0x1fe   : > { %p5175_p0 = pneg %p5174_p13 }
 0x200   : > { %p5182_p12 = pnand %p5181_p10, %p5175_p0 }
 0x202   : > { %5185 = shalt.err (!%p5182_p12)
}
 0x203   : > { %s6756_s6 = sld [smem:[#allocation79_spill]]  ;;  %s5686_s3 = smov [#allocation21]  }
 0x204   : > { %4335 = dma.hbm_to_vmem [thread:$0]  (!%p6752_p1), %s6755_s27, 16, %s931_s5, [#allocation17]  }
 0x205   : > { %s954_s21 = sshll.u32 %s5686_s3, 4  ;;  %s5687_s29 = smov [#allocation27]   ;;  %s955_s21 = int_to_ptr.vmem [resolvable:$true] %s954_s21 }
 0x206   : > { %s988_s11 = sshll.u32 %s5687_s29, 4  ;;  %s989_s11 = int_to_ptr.vmem [resolvable:$true] %s988_s11 }
 0x209   : > { %s5186_s17 = scalar_lea.hbm %s6756_s6, 32 }
 0x20a   : > { %p5187_p6 = scmp.ne.s32.totalorder %s6756_s6, %s5186_s17  ;;  %p5193_p5 = scmp.lt.u32.totalorder %s5186_s17, %s6756_s6 }
 0x20c   : > { %p5189_p11 = pnand %p5187_p6, %p6751_p8 }
 0x20e   : > { %p5190_p2 = pneg %p5189_p11 }
 0x210   : > { %p5195_p9 = pnand %p5193_p5, %p5190_p2 }
 0x212   : > { %5198 = shalt.err (!%p5195_p9)
}
 0x213   : > { %s5199_s30 = scalar_lea.vmem %s955_s21, 32  ;;  %p5207_p4 = scmp.lt.s32.totalorder %s955_s21, %s955_s21 }
 0x214   : > { %p5200_p7 = scmp.ne.s32.totalorder %s955_s21, %s5199_s30  ;;  %p5208_p3 = scmp.lt.s32.totalorder %s5199_s30, %s5199_s30 }
 0x216   : > { %p5202_p13 = pnand %p5200_p7, %p6751_p8  ;;  %p5209_p10 = por %p5208_p3, %p5207_p4 }
 0x218   : > { %p5203_p0 = pneg %p5202_p13 }
 0x21a   : > { %p5210_p12 = pnand %p5209_p10, %p5203_p0 }
 0x21c   : > { %5213 = shalt.err (!%p5210_p12)
}
 0x21d   : > { %s6757_s5 = sld [smem:[#allocation83_spill]] }
 0x21e   : > { %4341 = dma.hbm_to_vmem [thread:$0]  (!%p6752_p1), %s6756_s6, 32, %s955_s21, [#allocation20]  }
 0x223   : > { %s5214_s17 = scalar_lea.hbm %s6757_s5, 1024 }
 0x224   : > { %p5215_p6 = scmp.ne.s32.totalorder %s6757_s5, %s5214_s17  ;;  %p5221_p5 = scmp.lt.u32.totalorder %s5214_s17, %s6757_s5 }
 0x226   : > { %p5217_p11 = pnand %p5215_p6, %p6751_p8 }
 0x228   : > { %p5218_p2 = pneg %p5217_p11 }
 0x22a   : > { %p5223_p9 = pnand %p5221_p5, %p5218_p2 }
 0x22c   : > { %5226 = shalt.err (!%p5223_p9)
}
 0x22d   : > { %s5227_s1 = scalar_lea.vmem %s989_s11, 1024  ;;  %p5235_p4 = scmp.lt.s32.totalorder %s989_s11, %s989_s11 }
 0x22e   : > { %p5228_p7 = scmp.ne.s32.totalorder %s989_s11, %s5227_s1  ;;  %p5236_p3 = scmp.lt.s32.totalorder %s5227_s1, %s5227_s1 }
 0x230   : > { %p5230_p13 = pnand %p5228_p7, %p6751_p8  ;;  %p5237_p10 = por %p5236_p3, %p5235_p4 }
 0x232   : > { %p5231_p0 = pneg %p5230_p13 }
 0x234   : > { %p5238_p12 = pnand %p5237_p10, %p5231_p0 }
 0x236   : > { %5241 = shalt.err (!%p5238_p12)
}
 0x237   : > { %s6758_s3 = sld [smem:[#allocation86_spill]]  ;;  %s5688_s21 = smov [#allocation30]  }
 0x238   : > { %4350 = dma.hbm_to_vmem [thread:$0]  (!%p6752_p1), %s6757_s5, 1024, %s989_s11, [#allocation26], %s6740_s10, %s6740_s10, %s6739_s28  }
 0x239   : > { %s1016_s29 = sshll.u32 %s5688_s21, 4  ;;  %s5689_s30 = smov [#allocation33]   ;;  %s1017_s29 = int_to_ptr.vmem [resolvable:$true] %s1016_s29 }
 0x23a   : > { %s1040_s17 = sshll.u32 %s5689_s30, 4  ;;  %s1041_s17 = int_to_ptr.vmem [resolvable:$true] %s1040_s17 }
 0x23d   : > { %s5242_s1 = scalar_lea.hbm %s6758_s3, 16 }
 0x23e   : > { %p5243_p6 = scmp.ne.s32.totalorder %s6758_s3, %s5242_s1  ;;  %p5249_p5 = scmp.lt.u32.totalorder %s5242_s1, %s6758_s3 }
 0x240   : > { %p5245_p11 = pnand %p5243_p6, %p6751_p8 }
 0x242   : > { %p5246_p2 = pneg %p5245_p11 }
 0x244   : > { %p5251_p9 = pnand %p5249_p5, %p5246_p2 }
 0x246   : > { %5254 = shalt.err (!%p5251_p9)
}
 0x247   : > { %s5255_s6 = scalar_lea.vmem %s1017_s29, 16  ;;  %s5262_s11 = scalar_lea.vmem %s1017_s29, 32 }
 0x248   : > { %p5256_p7 = scmp.ne.s32.totalorder %s1017_s29, %s5255_s6  ;;  %p5263_p4 = scmp.lt.s32.totalorder %s1017_s29, %s1017_s29 }
 0x249   : > { %p5264_p3 = scmp.lt.s32.totalorder %s5262_s11, %s5255_s6 }
 0x24a   : > { %p5258_p13 = pnand %p5256_p7, %p6751_p8 }
 0x24b   : > { %p5265_p10 = por %p5264_p3, %p5263_p4 }
 0x24c   : > { %p5259_p0 = pneg %p5258_p13 }
 0x24e   : > { %p5266_p12 = pnand %p5265_p10, %p5259_p0 }
 0x250   : > { %5269 = shalt.err (!%p5266_p12)
}
 0x251   : > { %s6759_s21 = sld [smem:[#allocation88_spill]] }
 0x252   : > { %4356 = dma.hbm_to_vmem [thread:$0]  (!%p6752_p1), %s6758_s3, 16, %s1017_s29, [#allocation29]  }
 0x257   : > { %s5270_s30 = scalar_lea.hbm %s6759_s21, 16 }
 0x258   : > { %p5271_p6 = scmp.ne.s32.totalorder %s6759_s21, %s5270_s30  ;;  %p5277_p5 = scmp.lt.u32.totalorder %s5270_s30, %s6759_s21 }
 0x25a   : > { %p5273_p11 = pnand %p5271_p6, %p6751_p8 }
 0x25c   : > { %p5274_p2 = pneg %p5273_p11 }
 0x25e   : > { %p5279_p9 = pnand %p5277_p5, %p5274_p2 }
 0x260   : > { %5282 = shalt.err (!%p5279_p9)
}
 0x261   : > { %s5283_s6 = scalar_lea.vmem %s1041_s17, 16  ;;  %s5290_s1 = scalar_lea.vmem %s1041_s17, 32 }
 0x262   : > { %p5284_p7 = scmp.ne.s32.totalorder %s1041_s17, %s5283_s6  ;;  %p5291_p4 = scmp.lt.s32.totalorder %s1041_s17, %s1041_s17 }
 0x263   : > { %p5292_p3 = scmp.lt.s32.totalorder %s5290_s1, %s5283_s6 }
 0x264   : > { %p5286_p13 = pnand %p5284_p7, %p6751_p8 }
 0x265   : > { %p5293_p10 = por %p5292_p3, %p5291_p4 }
 0x266   : > { %p5287_p0 = pneg %p5286_p13 }
 0x268   : > { %p5294_p12 = pnand %p5293_p10, %p5287_p0 }
 0x26a   : > { %5297 = shalt.err (!%p5294_p12)
}
 0x26b   : > { %s6760_s29 = sld [smem:[#allocation90_spill]]  ;;  %s5690_s11 = smov [#allocation36]  }
 0x26c   : > { %4362 = dma.hbm_to_vmem [thread:$0]  (!%p6752_p1), %s6759_s21, 16, %s1041_s17, [#allocation32]  }
 0x26d   : > { %s1064_s30 = sshll.u32 %s5690_s11, 4  ;;  %s5691_s3 = smov [#allocation39]   ;;  %s1065_s30 = int_to_ptr.vmem [resolvable:$true] %s1064_s30 }
 0x26e   : > { %s1088_s5 = sshll.u32 %s5691_s3, 4  ;;  %s1089_s5 = int_to_ptr.vmem [resolvable:$true] %s1088_s5 }
 0x271   : > { %s5298_s27 = scalar_lea.hbm %s6760_s29, 16 }
 0x272   : > { %p5299_p6 = scmp.ne.s32.totalorder %s6760_s29, %s5298_s27  ;;  %p5305_p5 = scmp.lt.u32.totalorder %s5298_s27, %s6760_s29 }
 0x274   : > { %p5301_p11 = pnand %p5299_p6, %p6751_p8 }
 0x276   : > { %p5302_p2 = pneg %p5301_p11 }
 0x278   : > { %p5307_p9 = pnand %p5305_p5, %p5302_p2 }
 0x27a   : > { %5310 = shalt.err (!%p5307_p9)
}
 0x27b   : > { %s5311_s6 = scalar_lea.vmem %s1065_s30, 16  ;;  %s5318_s17 = scalar_lea.vmem %s1065_s30, 32 }
 0x27c   : > { %p5312_p7 = scmp.ne.s32.totalorder %s1065_s30, %s5311_s6  ;;  %p5319_p4 = scmp.lt.s32.totalorder %s1065_s30, %s1065_s30 }
 0x27d   : > { %p5320_p3 = scmp.lt.s32.totalorder %s5318_s17, %s5311_s6 }
 0x27e   : > { %p5314_p13 = pnand %p5312_p7, %p6751_p8 }
 0x27f   : > { %p5321_p10 = por %p5320_p3, %p5319_p4 }
 0x280   : > { %p5315_p0 = pneg %p5314_p13 }
 0x282   : > { %p5322_p12 = pnand %p5321_p10, %p5315_p0 }
 0x284   : > { %5325 = shalt.err (!%p5322_p12)
}
 0x285   : > { %s6761_s3 = sld [smem:[#allocation92_spill]] }
 0x286   : > { %4368 = dma.hbm_to_vmem [thread:$0]  (!%p6752_p1), %s6760_s29, 16, %s1065_s30, [#allocation35]  }
 0x28b   : > { %s5326_s27 = scalar_lea.hbm %s6761_s3, 16 }
 0x28c   : > { %p5327_p6 = scmp.ne.s32.totalorder %s6761_s3, %s5326_s27  ;;  %p5333_p5 = scmp.lt.u32.totalorder %s5326_s27, %s6761_s3 }
 0x28e   : > { %p5329_p11 = pnand %p5327_p6, %p6751_p8 }
 0x290   : > { %p5330_p2 = pneg %p5329_p11 }
 0x292   : > { %p5335_p9 = pnand %p5333_p5, %p5330_p2 }
 0x294   : > { %5338 = shalt.err (!%p5335_p9)
}
 0x295   : > { %s5339_s1 = scalar_lea.vmem %s1089_s5, 16  ;;  %s5346_s11 = scalar_lea.vmem %s1089_s5, 32 }
 0x296   : > { %p5340_p7 = scmp.ne.s32.totalorder %s1089_s5, %s5339_s1  ;;  %p5347_p4 = scmp.lt.s32.totalorder %s1089_s5, %s1089_s5 }
 0x297   : > { %p5348_p3 = scmp.lt.s32.totalorder %s5346_s11, %s5339_s1 }
 0x298   : > { %p5342_p13 = pnand %p5340_p7, %p6751_p8 }
 0x299   : > { %p5349_p10 = por %p5348_p3, %p5347_p4 }
 0x29a   : > { %p5343_p0 = pneg %p5342_p13 }
 0x29c   : > { %p5350_p12 = pnand %p5349_p10, %p5343_p0 }
 0x29e   : > { %5353 = shalt.err (!%p5350_p12)
}
 0x29f   : > { %s6762_s30 = sld [smem:[#allocation70_spill]]  ;;  %s1124_s12 = scalar_lea.vmem [#allocation10], %s6121_s8 }
 0x2a0   : > { %4374 = dma.hbm_to_vmem [thread:$0]  (!%p6752_p1), %s6761_s3, 16, %s1089_s5, [#allocation38]  }
 0x2a1   : > { %s1131_s17 = sshll.u32 %s1124_s12, 4  ;;  %p6763_p6 = scmp.ne.s32.totalorder %s6750_s24, 0  ;;  %s6281_s17 = int_to_ptr.vmem [resolvable:$true] %s1131_s17 }
 0x2a5   : > { %s6278_s6 = scalar_lea.hbm %s6762_s30, %s6124_s13  ;;  %s5359_s15 = scalar_lea.hbm %s6762_s30, 512 }
 0x2a6   : > { %s5354_s27 = scalar_lea.hbm %s6278_s6, 256  ;;  %p5360_p5 = scmp.lt.u32.totalorder %s6278_s6, %s6762_s30 }
 0x2a7   : > { %p5355_p8 = scmp.ne.s32.totalorder %s6278_s6, %s5354_s27  ;;  %p5361_p9 = scmp.lt.u32.totalorder %s5359_s15, %s5354_s27 }
 0x2a8   : > { %p5363_p1 = scmp.lt.u32.totalorder %s5354_s27, %s6278_s6 }
 0x2a9   : > { %p5357_p11 = pnand %p5355_p8, %p6763_p6  ;;  %p5362_p7 = por %p5361_p9, %p5360_p5 }
 0x2ab   : > { %p5358_p2 = pneg %p5357_p11  ;;  %p5364_p13 = por %p5363_p1, %p5362_p7 }
 0x2ad   : > { %p5365_p0 = pnand %p5364_p13, %p5358_p2 }
 0x2af   : > { %5368 = shalt.err (!%p5365_p0)
}
 0x2b0   : > { %s5369_s5 = scalar_lea.vmem %s6281_s17, 256  ;;  %s5692_s1 = smov [#allocation10]  }
 0x2b1   : > { %p5370_p4 = scmp.ne.s32.totalorder %s6281_s17, %s5369_s5  ;;  %s5374_s11 = sshll.u32 %s5692_s1, 4  ;;  %s5375_s11 = int_to_ptr.vmem [resolvable:$false] %s5374_s11 }
 0x2b2   : > { %s5376_s12 = scalar_lea.vmem %s5375_s11, 512  ;;  %p5377_p12 = scmp.lt.s32.totalorder %s6281_s17, %s5375_s11 }
 0x2b3   : > { %p5372_p3 = pnand %p5370_p4, %p6763_p6  ;;  %p5378_p8 = scmp.lt.s32.totalorder %s5376_s12, %s5369_s5 }
 0x2b5   : > { %p5373_p10 = pneg %p5372_p3  ;;  %p5379_p11 = por %p5378_p8, %p5377_p12 }
 0x2b7   : > { %p5380_p5 = pnand %p5379_p11, %p5373_p10 }
 0x2b9   : > { %5383 = shalt.err (!%p5380_p5)
}
 0x2ba   : > { %p6764_p2 = scmp.ne.s32.totalorder %s6748_s19, 0  ;;  %s6765_s27 = sld [smem:[#allocation80_spill]] }
 0x2bb   : > { %s1154_s5 = scalar_lea.vmem [#allocation22], %s6121_s8  ;;  %s6766_s11 = sand.u32 1, %s5632_s26  }
 0x2bc   : > { %4381 = dma.hbm_to_vmem [thread:$0]  (!%p6764_p2), %s6278_s6, 256, %s6281_s17, %s6141_s20, %s6740_s10, %s6740_s10, %s6739_s28  }
 0x2bd   : > { %s1161_s1 = sshll.u32 %s1154_s5, 4  ;;  %s6313_s12 = scalar_lea.sflag [#allocation23], %s6766_s11  ;;  %s6309_s1 = int_to_ptr.vmem [resolvable:$true] %s1161_s1 }
 0x2c0   : > { %s6306_s15 = scalar_lea.hbm %s6765_s27, %s6124_s13  ;;  %s5389_s21 = scalar_lea.hbm %s6765_s27, 512 }
 0x2c1   : > { %s5384_s3 = scalar_lea.hbm %s6306_s15, 256  ;;  %p5390_p13 = scmp.lt.u32.totalorder %s6306_s15, %s6765_s27 }
 0x2c2   : > { %p5385_p9 = scmp.ne.s32.totalorder %s6306_s15, %s5384_s3  ;;  %p5391_p0 = scmp.lt.u32.totalorder %s5389_s21, %s5384_s3 }
 0x2c3   : > { %p5393_p3 = scmp.lt.u32.totalorder %s5384_s3, %s6306_s15 }
 0x2c4   : > { %p5387_p7 = pnand %p5385_p9, %p6763_p6  ;;  %p5392_p4 = por %p5391_p0, %p5390_p13 }
 0x2c6   : > { %p5388_p1 = pneg %p5387_p7  ;;  %p5394_p10 = por %p5393_p3, %p5392_p4 }
 0x2c8   : > { %p5395_p12 = pnand %p5394_p10, %p5388_p1 }
 0x2ca   : > { %5398 = shalt.err (!%p5395_p12)
}
 0x2cb   : > { %s5399_s13 = scalar_lea.vmem %s6309_s1, 256  ;;  %s5693_s8 = smov [#allocation22]  }
 0x2cc   : > { %p5400_p8 = scmp.ne.s32.totalorder %s6309_s1, %s5399_s13  ;;  %s5404_s20 = sshll.u32 %s5693_s8, 4  ;;  %s5405_s20 = int_to_ptr.vmem [resolvable:$false] %s5404_s20 }
 0x2cd   : > { %s5406_s6 = scalar_lea.vmem %s5405_s20, 512  ;;  %p5407_p9 = scmp.lt.s32.totalorder %s6309_s1, %s5405_s20 }
 0x2ce   : > { %p5402_p11 = pnand %p5400_p8, %p6763_p6  ;;  %p5408_p7 = scmp.lt.s32.totalorder %s5406_s6, %s5399_s13 }
 0x2d0   : > { %p5403_p5 = pneg %p5402_p11  ;;  %p5409_p13 = por %p5408_p7, %p5407_p9 }
 0x2d2   : > { %p5410_p0 = pnand %p5409_p13, %p5403_p5 }
 0x2d4   : > { %5413 = shalt.err (!%p5410_p0)
}
 0x2d5   : > { %4384 = dma.hbm_to_vmem [thread:$0]  (!%p6764_p2), %s6306_s15, 256, %s6309_s1, %s6313_s12, %s6740_s10, %s6740_s10, %s6739_s28  }
 0x2d6   : > { %p6767_p6 = scmp.ne.s32.totalorder %s6736_s7, 0 }
 0x2d7   : > { %s6339_s24 = sand.u32 (!%p6767_p6), 1, %s5889_s2   ;;  %s6342_s21 = sand.u32 (!%p6767_p6), 1, %s5624_s22  }
 0x2d8   : > { %1173 = sbr.rel (%p6767_p6) target bundleno = 3552 (0xde0), region = 132  ;;  %s6345_s19 = sshll.u32 (!%p6767_p6), %s6342_s21, 4 }
 0x2d9   : > { %s1176_s3 = scalar_lea.sflag (!%p6767_p6), [#allocation3], %s6339_s24  ;;  %s1179_s17 = scalar_lea.vmem (!%p6767_p6), [#allocation2], %s6345_s19 }
 0x2da   : > { %p6768_p1 = scmp.ne.s32.totalorder (!%p6767_p6), %s6745_s9, 0 }
 0x2df   : > { %5543 = dma.done.wait (%p6768_p1), %s1176_s3, 256  }
 0x2e0   : > { %5545 = vsyncadd (%p6768_p1), %s1176_s3, 4294967040  ;;  %p6769_p2 = scmp.eq.s32.totalorder %s5889_s2, 0 }
 0x2e2   : > { %5547 = dma.done.wait (%p6769_p2), [#allocation6], 1040   ;;  %p6770_p4 = pmov %p6769_p2 }
 0x2e3   : > { %p6771_p3 = pmov %p6769_p2 }
 0x2e4   : > { %5549 = vsyncadd (%p6770_p4), [#allocation6], 4294966256 }
 0x2e5   : > { %5551 = dma.done.wait (%p6771_p3), [#allocation9], 2048   ;;  %p6772_p10 = pmov %p6769_p2 }
 0x2e6   : > { %s1200_s7 = scalar_lea.vmem [#allocation10], %s6345_s19 }
 0x2e7   : > { %5553 = vsyncadd (%p6772_p10), [#allocation9], 4294965248 }
 0x2e8   : > { %5555 = dma.done.wait (%p6768_p1), %s1176_s3, 256  }
 0x2e9   : > { %5557 = vsyncadd (%p6768_p1), %s1176_s3, 4294967040  ;;  %p6773_p12 = pmov %p6769_p2 }
 0x2ea   : > { %p6774_p8 = pmov %p6769_p2 }
 0x2eb   : > { %5559 = dma.done.wait (%p6773_p12), [#allocation6], 1024  }
 0x2ec   : > { %5561 = vsyncadd (%p6774_p8), [#allocation6], 4294966272  ;;  %p6775_p11 = pmov %p6769_p2 }
 0x2ed   : > { %p6776_p5 = pmov %p6769_p2 }
 0x2ee   : > { %5563 = dma.done.wait (%p6775_p11), [#allocation9], 16  }
 0x2ef   : > { %5565 = vsyncadd (%p6776_p5), [#allocation9], 4294967280  ;;  %p6777_p9 = pmov %p6769_p2 }
 0x2f0   : > { %p6778_p7 = pmov %p6769_p2 }
 0x2f1   : > { %5567 = dma.done.wait (%p6777_p9), [#allocation14], 2080  }
 0x2f2   : > { %5569 = vsyncadd (%p6778_p7), [#allocation14], 4294965216  ;;  %p6779_p13 = pmov %p6769_p2 }
 0x2f3   : > { %p6780_p0 = pmov %p6769_p2 }
 0x2f4   : > { %5571 = dma.done.wait (%p6779_p13), [#allocation17], 1040  }
 0x2f5   : > { %5573 = vsyncadd (%p6780_p0), [#allocation17], 4294966256  ;;  %p6781_p6 = pmov %p6780_p0 }
 0x2f6   : > { %p6782_p2 = pmov %p6780_p0 }
 0x2f7   : > { %5575 = dma.done.wait (%p6781_p6), [#allocation20], 2080  }
 0x2f8   : > { %5577 = vsyncadd (%p6782_p2), [#allocation20], 4294965216  ;;  %s1238_s28 = scalar_lea.sflag [#allocation23], %s6339_s24  ;;  %s1241_s10 = scalar_lea.vmem [#allocation22], %s6345_s19 }
 0x2f9   : > { %5579 = dma.done.wait (%p6768_p1), %s1238_s28, 256  }
 0x2fa   : > { %5581 = vsyncadd (%p6768_p1), %s1238_s28, 4294967040  ;;  %p6783_p4 = pmov %p6780_p0 }
 0x2fb   : > { %p6784_p3 = pmov %p6780_p0 }
 0x2fc   : > { %5583 = dma.done.wait (%p6783_p4), [#allocation23], 1024  }
 0x2fd   : > { %5585 = vsyncadd (%p6784_p3), [#allocation23], 4294966272  ;;  %p6785_p10 = pmov %p6780_p0 }
 0x2fe   : > { %p6786_p12 = pmov %p6780_p0 }
 0x2ff   : > { %5587 = dma.done.wait (%p6785_p10), [#allocation26], 1040  }
 0x300   : > { %5589 = vsyncadd (%p6786_p12), [#allocation26], 4294966256  ;;  %p6787_p8 = pmov %p6780_p0 }
 0x301   : > { %p6788_p11 = pmov %p6780_p0 }
 0x302   : > { %5591 = dma.done.wait (%p6787_p8), [#allocation29], 32  }
 0x303   : > { %5593 = vsyncadd (%p6788_p11), [#allocation29], 4294967264  ;;  %p6789_p1 = pmov %p6780_p0 }
 0x304   : > { %p6790_p5 = pmov %p6780_p0 }
 0x305   : > { %5595 = dma.done.wait (%p6789_p1), [#allocation32], 1040  }
 0x306   : > { %5597 = vsyncadd (%p6790_p5), [#allocation32], 4294966256  ;;  %p6791_p9 = pmov %p6780_p0 }
 0x307   : > { %p6792_p7 = pmov %p6780_p0 }
 0x308   : > { %5599 = dma.done.wait (%p6791_p9), [#allocation35], 1040  }
 0x309   : > { %5601 = vsyncadd (%p6792_p7), [#allocation35], 4294966256  ;;  %p6793_p13 = pmov %p6780_p0 }
 0x30b   : > { %5603 = dma.done.wait (%p6793_p13), [#allocation38], 1040  }
 0x30c   : > { %5605 = vsyncadd (%p6780_p0), [#allocation38], 4294966256  ;;  %v4538_v0 = vld [vmem:[#allocation5] sm:$0xff]   ;;  %v4539_v1 = vld [vmem:[#allocation5 + $0x8] sm:$0xff]   ;;  %v5694_v26 = vmov 0   ;;  %s6794_s9 = sld [smem:[#allocation69_spill]]  ;;  %v1568_v62 = vlaneseq }
 0x30d   : > { %4026 = vmatprep.subr.bf16.mxu0 %v4538_v0  ;;  %v4540_v2 = vld [vmem:[#allocation5 + $0x10] sm:$0xff]   ;;  %v4541_v3 = vld [vmem:[#allocation5 + $0x18] sm:$0xff]   ;;  %v4550_v6 = vld [vmem:[#allocation8] ss:$8 sps:$4 sm:$0xff]   ;;  %1690 = vmatprep.mubr.bf16.mxu1 %v5694_v26  ;;  %s6429_s15 = sshll.u32 %s6342_s21, 6  ;;  %s3749_s1 = sshll.u32 %s5889_s2, 2 }
 0x30e   : > { %4027 = vmatpush3.bf16.msra.mxu0 %v4538_v0  ;;  %v4546_v4 = vld [vmem:[%s1179_s17] sm:$0xff]   ;;  %v4543_v11 = vld [vmem:[#allocation5 + $0x28] sm:$0xff]   ;;  %v4545_v17 = vld [vmem:[#allocation5 + $0x38] sm:$0xff]   ;;  %v1569_v63 = vshrl.u32 %v1568_v62, 7  ;;  %s6434_s5 = scalar_lea.vmem [#allocation40], %s6429_s15  ;;  %p1397_p6 = scmp.lt.s32.totalorder %s3749_s1, 7 }
 0x30f   : > { %4028 = vmatprep.subr.bf16.mxu0 %v4539_v1  ;;  %4042 = vmatprep.mubr.bf16.mxu0 %v4546_v4  ;;  %v4548_v5 = vld [vmem:[#allocation8 + $0x4] ss:$8 sps:$4 sm:$0xff]   ;;  %v4551_v8 = vld [vmem:[#allocation8 + $0x14] ss:$8 sps:$4 sm:$0xff]   ;;  %v4553_v9 = vld [vmem:[#allocation8 + $0x10] ss:$8 sps:$4 sm:$0xff]  }
 0x310   : > { %v4542_v7 = vld [vmem:[#allocation5 + $0x20] sm:$0xff]   ;;  %1658 = vmatprep.subr.bf16.mxu1 %v4548_v5  ;;  %v4544_v14 = vld [vmem:[#allocation5 + $0x30] sm:$0xff]   ;;  %v4547_v21 = vld [vmem:[%s1179_s17 + $0x8] sm:$0xff]   ;;  %v6423_v0 = vsub.s32 0, %v1569_v63  ;;  %s6809_s1 = smov (!%p1397_p6, %s3749_s1), 7  ;;  %s6454_s11 = scalar_lea.vmem [#allocation41], %s6429_s15 }
 0x311   : > { %1659 = vmatpush1.bf16.msra.mxu1 %v4550_v6  ;;  %v4554_v10 = vld [vmem:[#allocation8 + $0x24] ss:$8 sps:$4 sm:$0xff]   ;;  %v4556_v12 = vld [vmem:[#allocation8 + $0x20] ss:$8 sps:$4 sm:$0xff]   ;;  %v4557_v13 = vld [vmem:[#allocation8 + $0x34] ss:$8 sps:$4 sm:$0xff]  }
 0x312   : > { %4029 = vmatpush3.bf16.msra.mxu0 %v4539_v1  ;;  %1660 = vmatprep.subr.bf16.mxu1 %v4551_v8  ;;  %v4559_v15 = vld [vmem:[#allocation8 + $0x30] ss:$8 sps:$4 sm:$0xff]   ;;  %v4560_v16 = vld [vmem:[#allocation8 + $0x44] ss:$8 sps:$4 sm:$0xff]   ;;  %v4562_v18 = vld [vmem:[#allocation8 + $0x40] ss:$8 sps:$4 sm:$0xff]  }
 0x313   : > { %4030 = vmatprep.subr.bf16.mxu0 %v4540_v2  ;;  %v4563_v19 = vld [vmem:[#allocation8 + $0x54] ss:$8 sps:$4 sm:$0xff]   ;;  %v4565_v20 = vld [vmem:[#allocation8 + $0x50] ss:$8 sps:$4 sm:$0xff]   ;;  %v4566_v22 = vld [vmem:[#allocation8 + $0x64] ss:$8 sps:$4 sm:$0xff]  }
 0x314   : > { %v4568_v23 = vld [vmem:[#allocation8 + $0x60] ss:$8 sps:$4 sm:$0xff]   ;;  %v4569_v24 = vld [vmem:[#allocation8 + $0x74] ss:$8 sps:$4 sm:$0xff]   ;;  %v4571_v25 = vld [vmem:[#allocation8 + $0x70] ss:$8 sps:$4 sm:$0xff]  }
 0x315   : > { %1661 = vmatpush1.bf16.msra.mxu1 %v4553_v9  ;;  %v3751_v27 = vld [vmem:[#allocation7] ss:$0 sm:$0xff]  ;;  %v4572_v42 = vld [vmem:[#allocation11] sm:$0xff]   ;;  %v4573_v43 = vld [vmem:[#allocation11 + $0x8] sm:$0xff]   ;;  %s6795_s12 = sld [smem:[#allocation75_spill]]  ;;  %s3750_s13 = sshll.u32 %s6809_s1, 2 }
 0x316   : > { %4031 = vmatpush3.bf16.msra.mxu0 %v4540_v2  ;;  %1662 = vmatprep.subr.bf16.mxu1 %v4554_v10  ;;  %v4574_v44 = vld [vmem:[#allocation11 + $0x10] sm:$0xff]   ;;  %v4575_v45 = vld [vmem:[#allocation11 + $0x18] sm:$0xff]   ;;  %v4576_v46 = vld [vmem:[#allocation11 + $0x20] sm:$0xff]   ;;  %v6426_v2 = vsub.s32 1, %v1569_v63  ;;  %s6469_s20 = scalar_lea.vmem [#allocation43], %s6429_s15  ;;  %s6796_s6 = sld [smem:[#allocation85_spill]] }
 0x317   : > { %4032 = vmatprep.subr.bf16.mxu0 %v4541_v3  ;;  %v4577_v47 = vld [vmem:[#allocation11 + $0x28] sm:$0xff]   ;;  %v4578_v48 = vld [vmem:[#allocation11 + $0x30] sm:$0xff]   ;;  %v4579_v49 = vld [vmem:[#allocation11 + $0x38] sm:$0xff]   ;;  %s3175_s19 = sshll.u32 %s6434_s5, 4  ;;  %s3192_s3 = sshll.u32 %s6454_s11, 4  ;;  %s6494_s19 = int_to_ptr.vmem [resolvable:$true] %s3175_s19  ;;  %s6496_s3 = int_to_ptr.vmem [resolvable:$true] %s3192_s3 }
 0x318   : > { %v4580_v50 = vld [vmem:[#allocation13] ss:$8 sps:$4 sm:$0xff]   ;;  %v4582_v51 = vld [vmem:[#allocation13 + $0x4] ss:$8 sps:$4 sm:$0xff]   ;;  %v4585_v52 = vld [vmem:[#allocation13 + $0x14] ss:$8 sps:$4 sm:$0xff]  }
 0x319   : > { %1663 = vmatpush1.bf16.msra.mxu1 %v4556_v12  ;;  %v4583_v53 = vld [vmem:[#allocation13 + $0x10] ss:$8 sps:$4 sm:$0xff]   ;;  %v4588_v54 = vld [vmem:[#allocation13 + $0x24] ss:$8 sps:$4 sm:$0xff]   ;;  %v4586_v55 = vld [vmem:[#allocation13 + $0x20] ss:$8 sps:$4 sm:$0xff]  }
 0x31a   : > { %4033 = vmatpush3.bf16.msra.mxu0 %v4541_v3  ;;  %1664 = vmatprep.subr.bf16.mxu1 %v4557_v13  ;;  %v4591_v56 = vld [vmem:[#allocation13 + $0x34] ss:$8 sps:$4 sm:$0xff]   ;;  %v4589_v57 = vld [vmem:[#allocation13 + $0x30] ss:$8 sps:$4 sm:$0xff]   ;;  %v4594_v58 = vld [vmem:[#allocation13 + $0x44] ss:$8 sps:$4 sm:$0xff]  }
 0x31b   : > { %4034 = vmatprep.subr.bf16.mxu0 %v4542_v7  ;;  %v4592_v59 = vld [vmem:[#allocation13 + $0x40] ss:$8 sps:$4 sm:$0xff]   ;;  %v4597_v60 = vld [vmem:[#allocation13 + $0x54] ss:$8 sps:$4 sm:$0xff]   ;;  %v4595_v61 = vld [vmem:[#allocation13 + $0x50] ss:$8 sps:$4 sm:$0xff]   ;;  %s1400_s8 = scalar_lea.vmem %s6795_s12, %s3750_s13 }
 0x31c   : > { %v1566_v1 = vld [vmem:[%s6794_s9] sm:$0x3]  ;;  %s3209_s17 = sshll.u32 %s6469_s20, 4  ;;  %s5414_s9 = scalar_lea.vmem %s6496_s3, 1024  ;;  %s6498_s17 = int_to_ptr.vmem [resolvable:$true] %s3209_s17 }
 0x31d   : > { %1665 = vmatpush1.bf16.msra.mxu1 %v4559_v15  ;;  %v1571_v3 = vrot.slane %v1566_v1, %v6423_v0  ;;  %v1575_v4 = vrot.slane %v1566_v1, %v6426_v2  ;;  %p5415_p2 = scmp.ne.s32.totalorder %s6496_s3, %s5414_s9  ;;  %p6797_p4 = scmp.ne.s32.totalorder %s6746_s4, 0 }
 0x31e   : > { %4035 = vmatpush3.bf16.msra.mxu0 %v4542_v7  ;;  %1666 = vmatprep.subr.bf16.mxu1 %v4560_v16  ;;  %s5695_s15 = smov [#allocation41]  }
 0x31f   : > { %4036 = vmatprep.subr.bf16.mxu0 %v4543_v11  ;;  %p5416_p3 = pnand %p5415_p2, %p6797_p4 }
 0x321   : > { %1667 = vmatpush1.bf16.msra.mxu1 %v4562_v18  ;;  %p5417_p10 = pneg %p5416_p3 }
 0x322   : > { %4037 = vmatpush3.bf16.msra.mxu0 %v4543_v11  ;;  %1668 = vmatprep.subr.bf16.mxu1 %v4563_v19 }
 0x323   : > { %4038 = vmatprep.subr.bf16.mxu0 %v4544_v14 }
 0x325   : > { %1669 = vmatpush1.bf16.msra.mxu1 %v4565_v20 }
 0x326   : > { %4039 = vmatpush3.bf16.msra.mxu0 %v4544_v14  ;;  %1670 = vmatprep.subr.bf16.mxu1 %v4566_v22 }
 0x327   : > { %4040 = vmatprep.subr.bf16.mxu0 %v4545_v17 }
 0x329   : > { %1671 = vmatpush1.bf16.msra.mxu1 %v4568_v23 }
 0x32a   : > { %4041 = vmatpush3.bf16.msra.mxu0 %v4545_v17  ;;  %1672 = vmatprep.subr.bf16.mxu1 %v4569_v24 }
 0x32b   : > { %4046 = vmatprep.subr.bf16.mxu0 %v4572_v42 }
 0x32d   : > { %4043 = vmatmul.mubr.bf16.vlgmr.msra.gmra.mrb[0].mxu0 %v4547_v21  ;;  %1673 = vmatpush1.bf16.msra.mxu1 %v4571_v25 }
 0x32e   : > { %4047 = vmatpush3.bf16.msra.mxu0 %v4572_v42  ;;  %1983 = vmatprep.subr.bf16.mxu1 %v4582_v51  ;;  %v4598_v51 = vld [vmem:[#allocation13 + $0x60] ss:$8 sps:$4 sm:$0xff]  }
 0x32f   : > { %4048 = vmatprep.subr.bf16.mxu0 %v4573_v43 }
 0x332   : > { %4049 = vmatpush3.bf16.msra.mxu0 %v4573_v43 }
 0x333   : > { %4050 = vmatprep.subr.bf16.mxu0 %v4574_v44 }
 0x336   : > { %4051 = vmatpush3.bf16.msra.mxu0 %v4574_v44 }
 0x337   : > { %4052 = vmatprep.subr.bf16.mxu0 %v4575_v45 }
 0x33a   : > { %4053 = vmatpush3.bf16.msra.mxu0 %v4575_v45 }
 0x33b   : > { %4054 = vmatprep.subr.bf16.mxu0 %v4576_v46 }
 0x33e   : > { %4055 = vmatpush3.bf16.msra.mxu0 %v4576_v46 }
 0x33f   : > { %4056 = vmatprep.subr.bf16.mxu0 %v4577_v47 }
 0x342   : > { %4057 = vmatpush3.bf16.msra.mxu0 %v4577_v47 }
 0x343   : > { %4058 = vmatprep.subr.bf16.mxu0 %v4578_v48 }
 0x346   : > { %4059 = vmatpush3.bf16.msra.mxu0 %v4578_v48 }
 0x347   : > { %4060 = vmatprep.subr.bf16.mxu0 %v4579_v49 }
 0x34a   : > { %4061 = vmatpush3.bf16.msra.mxu0 %v4579_v49 }
 0x400   : > { %v4044_v28 = vpop.f32.mrb[0].mxu0 }
 0x401   : > { %v1538_v29 = vadd.f32 %v4044_v28, %v3751_v27  ;;  %v1529_v30 = vpop.f32.mrb[1].mxu0 }
 0x402   : > { %v1530_v31 = vadd.f32 %v3751_v27, %v1529_v30  ;;  %v4045_v32 = vpop.f32.mrb[2].mxu0 }
 0x403   : > { %v1541_v33 = vadd.f32 %v4045_v32, %v3751_v27  ;;  %v1532_v34 = vpop.f32.mrb[3].mxu0  ;;  %v1546_v36 = vmax.f32 %v1538_v29, 0.0 }
 0x404   : > { %v1533_v35 = vadd.f32 %v3751_v27, %v1532_v34  ;;  %v1544_v38 = vmax.f32 %v1530_v31, 0.0  ;;  %v3910_v27 = vld [vmem:[%s1200_s7] sm:$0xff]  }
 0x405   : > { %v1547_v37 = vmax.f32 %v1541_v33, 0.0  ;;  %v3911_v30 = vunpack.c.l.bf16 %v3910_v27  ;;  %v3912_v32 = vunpack.c.h.bf16 %v3910_v27  ;;  %v4627_v27 = vld [vmem:[#allocation19 + $0x50] ss:$8 sps:$4 sm:$0xff]  }
 0x406   : > { %v1545_v39 = vmax.f32 %v1533_v35, 0.0 }
 0x407   : > { %v1549_v40 = vpack.c.bf16 %v1547_v37, %v1546_v36  ;;  %v3933_v36 = vld [vmem:[%s1200_s7 + $0x8] sm:$0xff]   ;;  %s6501_s7 = sshll.u32 %s5889_s2, 10 }
 0x408   : > { %v1548_v41 = vpack.c.bf16 %v1545_v39, %v1544_v38  ;;  %v3916_v42 = vunpack.c.h.bf16 %v3933_v36  ;;  %s6505_s28 = scalar_lea.hbm %s6721_s25, %s6501_s7 }
 0x40a   : > { %1691 = vmatmul.mubr.bf16.vlgmr.msra.gmra.mrb[0].mxu1 %v1548_v41 }
 0x40b   : > { %1700 = vmatprep.mubr.bf16.mxu1 %v5694_v26  ;;  %1984 = vmatpush1.bf16.msra.mxu1 %v4580_v50  ;;  %v4600_v50 = vld [vmem:[#allocation13 + $0x64] ss:$8 sps:$4 sm:$0xff]  }
 0x40c   : > { %1985 = vmatprep.subr.bf16.mxu1 %v4585_v52  ;;  %v4603_v52 = vld [vmem:[#allocation13 + $0x74] ss:$8 sps:$4 sm:$0xff]  }
 0x40f   : > { %1986 = vmatpush1.bf16.msra.mxu1 %v4583_v53  ;;  %v4601_v53 = vld [vmem:[#allocation13 + $0x70] ss:$8 sps:$4 sm:$0xff]  }
 0x410   : > { %1987 = vmatprep.subr.bf16.mxu1 %v4588_v54  ;;  %v3778_v54 = vld [vmem:[#allocation12] ss:$0 sm:$0xff] }
 0x412   : > { %1701 = vmatmul.mubr.bf16.gmra.mrb[4].mxu1 %v1549_v40  ;;  %v3915_v40 = vunpack.c.l.bf16 %v3933_v36 }
 0x413   : > { %2015 = vmatprep.mubr.bf16.mxu1 %v5694_v26  ;;  %1988 = vmatpush1.bf16.msra.mxu1 %v4586_v55 }
 0x414   : > { %1989 = vmatprep.subr.bf16.mxu1 %v4591_v56 }
 0x417   : > { %1990 = vmatpush1.bf16.msra.mxu1 %v4589_v57 }
 0x418   : > { %1991 = vmatprep.subr.bf16.mxu1 %v4594_v58 }
 0x41b   : > { %1992 = vmatpush1.bf16.msra.mxu1 %v4592_v59 }
 0x41c   : > { %1993 = vmatprep.subr.bf16.mxu1 %v4597_v60 }
 0x41f   : > { %1994 = vmatpush1.bf16.msra.mxu1 %v4595_v61 }
 0x420   : > { %1995 = vmatprep.subr.bf16.mxu1 %v4600_v50 }
 0x423   : > { %1996 = vmatpush1.bf16.msra.mxu1 %v4598_v51 }
 0x424   : > { %1997 = vmatprep.subr.bf16.mxu1 %v4603_v52  ;;  %v3918_v52 = vld [vmem:[%s1400_s8] sm:$0xff]  }
 0x427   : > { %1998 = vmatpush1.bf16.msra.mxu1 %v4601_v53 }
 0x4dd   : > { %v1692_v5 = vpop.f32.mrb[0].mxu1 }
 0x4de   : > { %v1693_v6 = vadd.f32 %v1692_v5, %v1571_v3  ;;  %v1694_v7 = vpop.f32.mrb[1].mxu1 }
 0x4df   : > { %v1695_v8 = vadd.f32 %v1694_v7, %v1575_v4  ;;  %v1696_v9 = vpop.f32.mrb[2].mxu1  ;;  %v4604_v7 = vld [vmem:[#allocation16] sm:$0xff]  }
 0x4e0   : > { %1711 = vst [vmem:[%s6434_s5] sm:$0xff] %v1693_v6  ;;  %v1697_v10 = vadd.f32 %v1696_v9, %v1571_v3  ;;  %v1698_v11 = vpop.f32.mrb[3].mxu1  ;;  %4066 = vmatprep.subr.bf16.mxu0 %v4604_v7  ;;  %v4606_v9 = vld [vmem:[#allocation16 + $0x10] sm:$0xff]  }
 0x4e1   : > { %1712 = vst [vmem:[%s6434_s5 + $0x8] sm:$0xff] %v1695_v8  ;;  %v1727_v12 = vmul.f32 0.5, %v1695_v8  ;;  %v1699_v13 = vadd.f32 %v1698_v11, %v1575_v4  ;;  %v4605_v8 = vld [vmem:[#allocation16 + $0x8] sm:$0xff]   ;;  %v4608_v11 = vld [vmem:[#allocation16 + $0x20] sm:$0xff]  }
 0x4e2   : > { %1713 = vst [vmem:[%s6434_s5 + $0x10] sm:$0xff] %v1697_v10 }
 0x4e3   : > { %v1731_v14 = vmul.f32 1.442695, %v1727_v12  ;;  %1714 = vst [vmem:[%s6434_s5 + $0x18] sm:$0xff] %v1699_v13  ;;  %v1728_v15 = vmul.f32 0.5, %v1699_v13  ;;  %v4609_v12 = vld [vmem:[#allocation16 + $0x28] sm:$0xff]   ;;  %v4610_v13 = vld [vmem:[#allocation16 + $0x30] sm:$0xff]  }
 0x4e5   : > { %4684 = vpow2.f32 %v1731_v14  ;;  %v1733_v16 = vmul.f32 1.442695, %v1728_v15  ;;  %v1702_v17 = vpop.f32.mrb[4].mxu1  ;;  %v4611_v14 = vld [vmem:[#allocation16 + $0x38] sm:$0xff]   ;;  %v4612_v15 = vld [vmem:[#allocation19] ss:$8 sps:$4 sm:$0xff]  }
 0x4e6   : > { %v1703_v18 = vadd.f32 %v1702_v17, %v1571_v3  ;;  %v1704_v19 = vpop.f32.mrb[5].mxu1  ;;  %v4617_v17 = vld [vmem:[#allocation19 + $0x14] ss:$8 sps:$4 sm:$0xff]  }
 0x4e7   : > { %4686 = vpow2.f32 %v1733_v16  ;;  %v1705_v20 = vadd.f32 %v1704_v19, %v1575_v4  ;;  %v1706_v21 = vpop.f32.mrb[6].mxu1  ;;  %v4614_v16 = vld [vmem:[#allocation19 + $0x4] ss:$8 sps:$4 sm:$0xff]  }
 0x4e8   : > { %1715 = vst [vmem:[%s6434_s5 + $0x20] sm:$0xff] %v1703_v18  ;;  %v1707_v22 = vadd.f32 %v1706_v21, %v1571_v3  ;;  %v1708_v23 = vpop.f32.mrb[7].mxu1  ;;  %2308 = vmatprep.subr.bf16.mxu1 %v4614_v16  ;;  %v4620_v19 = vld [vmem:[#allocation19 + $0x24] ss:$8 sps:$4 sm:$0xff]   ;;  %v4623_v21 = vld [vmem:[#allocation19 + $0x34] ss:$8 sps:$4 sm:$0xff]  }
 0x4e9   : > { %1716 = vst [vmem:[%s6434_s5 + $0x28] sm:$0xff] %v1705_v20  ;;  %v1729_v24 = vmul.f32 0.5, %v1705_v20  ;;  %v1709_v25 = vadd.f32 %v1708_v23, %v1575_v4  ;;  %v4618_v20 = vld [vmem:[#allocation19 + $0x20] ss:$8 sps:$4 sm:$0xff]   ;;  %v4626_v23 = vld [vmem:[#allocation19 + $0x44] ss:$8 sps:$4 sm:$0xff]  }
 0x4ea   : > { %1717 = vst [vmem:[%s6434_s5 + $0x30] sm:$0xff] %v1707_v22  ;;  %v4633_v16 = vld [vmem:[#allocation19 + $0x70] ss:$8 sps:$4 sm:$0xff]  }
 0x4eb   : > { %v1735_v28 = vmul.f32 1.442695, %v1729_v24  ;;  %1718 = vst [vmem:[%s6434_s5 + $0x38] sm:$0xff] %v1709_v25  ;;  %v1730_v29 = vmul.f32 0.5, %v1709_v25  ;;  %v4624_v24 = vld [vmem:[#allocation19 + $0x40] ss:$8 sps:$4 sm:$0xff]  }
 0x4ec   : > { %v4629_v25 = vld [vmem:[#allocation19 + $0x54] ss:$8 sps:$4 sm:$0xff]   ;;  %s5418_s5 = sshll.u32 %s5695_s15, 4  ;;  %s5419_s5 = int_to_ptr.vmem [resolvable:$false] %s5418_s5 }
 0x4ed   : > { %4688 = vpow2.f32 %v1735_v28  ;;  %v1737_v31 = vmul.f32 1.442695, %v1730_v29  ;;  %v1891_v28 = vld [vmem:[#allocation15] sm:$0x3]  ;;  %s5420_s1 = scalar_lea.vmem %s5419_s5, 2048  ;;  %p5421_p12 = scmp.lt.s32.totalorder %s6496_s3, %s5419_s5 }
 0x4ee   : > { %v1896_v29 = vrot.slane %v1891_v28, %v6423_v0  ;;  %p5422_p8 = scmp.lt.s32.totalorder %s5420_s1, %s5414_s9 }
 0x4ef   : > { %v4685_v33 = vpop.eup %4684  ;;  %4690 = vpow2.f32 %v1737_v31 }
 0x4f0   : > { %v1739_v34 = vmul.f32 %v4685_v33, %v3911_v30  ;;  %v1900_v30 = vrot.slane %v1891_v28, %v6426_v2  ;;  %p5423_p11 = por %p5422_p8, %p5421_p12 }
 0x4f1   : > { %v4687_v35 = vpop.eup %4686 }
 0x4f2   : > { %v1740_v37 = vmul.f32 %v4687_v35, %v3912_v32  ;;  %v1743_v38 = vadd.f32 %v1739_v34, %v1693_v6  ;;  %p5424_p1 = pnand %p5423_p11, %p5417_p10 }
 0x4f4   : > { %v1744_v39 = vadd.f32 %v1740_v37, %v1697_v10  ;;  %v4607_v10 = vld [vmem:[#allocation16 + $0x18] sm:$0xff]  }
 0x4f6   : > { %v1747_v41 = vpack.c.bf16 %v1744_v39, %v1743_v38 }
 0x4f7   : > { %v4689_v43 = vpop.eup %4688 }
 0x4f8   : > { %4062 = vmatprep.mubr.bf16.mxu0 %v1747_v41  ;;  %v1741_v44 = vmul.f32 %v4689_v43, %v3915_v40 }
 0x4f9   : > { %v4691_v45 = vpop.eup %4690 }
 0x4fa   : > { %v1742_v46 = vmul.f32 %v4691_v45, %v3916_v42  ;;  %v1745_v47 = vadd.f32 %v1741_v44, %v1703_v18  ;;  %v4615_v18 = vld [vmem:[#allocation19 + $0x10] ss:$8 sps:$4 sm:$0xff]  }
 0x4fc   : > { %v1746_v48 = vadd.f32 %v1742_v46, %v1707_v22  ;;  %v4621_v22 = vld [vmem:[#allocation19 + $0x30] ss:$8 sps:$4 sm:$0xff]  }
 0x4fe   : > { %v1748_v49 = vpack.c.bf16 %v1746_v48, %v1745_v47 }
 0x500   : > { %4063 = vmatmul.mubr.bf16.vlgmr.msra.gmra.mrb[4].mxu0 %v1748_v49 }
 0x501   : > { %4067 = vmatpush3.bf16.msra.mxu0 %v4604_v7 }
 0x502   : > { %4068 = vmatprep.subr.bf16.mxu0 %v4605_v8 }
 0x505   : > { %4069 = vmatpush3.bf16.msra.mxu0 %v4605_v8 }
 0x506   : > { %4070 = vmatprep.subr.bf16.mxu0 %v4606_v9 }
 0x509   : > { %4071 = vmatpush3.bf16.msra.mxu0 %v4606_v9 }
 0x50a   : > { %4072 = vmatprep.subr.bf16.mxu0 %v4607_v10 }
 0x50d   : > { %4073 = vmatpush3.bf16.msra.mxu0 %v4607_v10 }
 0x50e   : > { %4074 = vmatprep.subr.bf16.mxu0 %v4608_v11 }
 0x511   : > { %4075 = vmatpush3.bf16.msra.mxu0 %v4608_v11 }
 0x512   : > { %4076 = vmatprep.subr.bf16.mxu0 %v4609_v12 }
 0x515   : > { %4077 = vmatpush3.bf16.msra.mxu0 %v4609_v12 }
 0x516   : > { %4078 = vmatprep.subr.bf16.mxu0 %v4610_v13 }
 0x519   : > { %4079 = vmatpush3.bf16.msra.mxu0 %v4610_v13  ;;  %v4632_v13 = vld [vmem:[#allocation19 + $0x64] ss:$8 sps:$4 sm:$0xff]  }
 0x51a   : > { %4080 = vmatprep.subr.bf16.mxu0 %v4611_v14 }
 0x51d   : > { %4081 = vmatpush3.bf16.msra.mxu0 %v4611_v14  ;;  %v4630_v14 = vld [vmem:[#allocation19 + $0x60] ss:$8 sps:$4 sm:$0xff]  }
 0x5d3   : > { %v4064_v55 = vpop.f32.mrb[4].mxu0 }
 0x5d4   : > { %v1863_v56 = vadd.f32 %v4064_v55, %v3778_v54  ;;  %v1854_v57 = vpop.f32.mrb[5].mxu0  ;;  %v3919_v55 = vunpack.c.l.bf16 %v3918_v52 }
 0x5d5   : > { %v1855_v58 = vadd.f32 %v3778_v54, %v1854_v57  ;;  %v4065_v59 = vpop.f32.mrb[6].mxu0  ;;  %v3920_v57 = vunpack.c.h.bf16 %v3918_v52 }
 0x5d6   : > { %v1866_v60 = vadd.f32 %v4065_v59, %v3778_v54  ;;  %v1857_v61 = vpop.f32.mrb[7].mxu0  ;;  %v1871_v63 = vmax.f32 %v1863_v56, 0.0 }
 0x5d7   : > { %v1858_v62 = vadd.f32 %v3778_v54, %v1857_v61  ;;  %v1869_v3 = vmax.f32 %v1855_v58, 0.0  ;;  %v3934_v61 = vld [vmem:[%s1400_s8 + $0x8] sm:$0xff]  }
 0x5d8   : > { %v1872_v1 = vmax.f32 %v1866_v60, 0.0 }
 0x5d9   : > { %v1870_v4 = vmax.f32 %v1858_v62, 0.0 }
 0x5da   : > { %v1874_v5 = vpack.c.bf16 %v1872_v1, %v1871_v63 }
 0x5db   : > { %v1873_v6 = vpack.c.bf16 %v1870_v4, %v1869_v3  ;;  %v3923_v3 = vunpack.c.l.bf16 %v3934_v61 }
 0x5dd   : > { %2016 = vmatmul.mubr.bf16.vlgmr.msra.gmra.mrb[8].mxu1 %v1873_v6 }
 0x5de   : > { %2025 = vmatprep.mubr.bf16.mxu1 %v5694_v26  ;;  %2309 = vmatpush1.bf16.msra.mxu1 %v4612_v15  ;;  %v4635_v15 = vld [vmem:[#allocation19 + $0x74] ss:$8 sps:$4 sm:$0xff]  }
 0x5df   : > { %2310 = vmatprep.subr.bf16.mxu1 %v4617_v17  ;;  %v3803_v17 = vld [vmem:[#allocation18] ss:$0 sm:$0xff] }
 0x5e2   : > { %2311 = vmatpush1.bf16.msra.mxu1 %v4615_v18 }
 0x5e3   : > { %2312 = vmatprep.subr.bf16.mxu1 %v4620_v19 }
 0x5e5   : > { %2026 = vmatmul.mubr.bf16.gmra.mrb[12].mxu1 %v1874_v5  ;;  %v3924_v5 = vunpack.c.h.bf16 %v3934_v61 }
 0x5e6   : > { %2340 = vmatprep.mubr.bf16.mxu1 %v5694_v26  ;;  %2313 = vmatpush1.bf16.msra.mxu1 %v4618_v20 }
 0x5e7   : > { %2314 = vmatprep.subr.bf16.mxu1 %v4623_v21 }
 0x5ea   : > { %2315 = vmatpush1.bf16.msra.mxu1 %v4621_v22 }
 0x5eb   : > { %2316 = vmatprep.subr.bf16.mxu1 %v4626_v23 }
 0x5ee   : > { %2317 = vmatpush1.bf16.msra.mxu1 %v4624_v24 }
 0x5ef   : > { %2318 = vmatprep.subr.bf16.mxu1 %v4629_v25 }
 0x5f2   : > { %2319 = vmatpush1.bf16.msra.mxu1 %v4627_v27 }
 0x5f3   : > { %2320 = vmatprep.subr.bf16.mxu1 %v4632_v13 }
 0x5f6   : > { %2321 = vmatpush1.bf16.msra.mxu1 %v4630_v14 }
 0x5f7   : > { %2322 = vmatprep.subr.bf16.mxu1 %v4635_v15  ;;  %v3935_v15 = vld [vmem:[%s1241_s10 + $0x8] sm:$0xff]  }
 0x5fa   : > { %2323 = vmatpush1.bf16.msra.mxu1 %v4633_v16 }
 0x6b0   : > { %v2017_v31 = vpop.f32.mrb[8].mxu1 }
 0x6b1   : > { %v2018_v32 = vadd.f32 %v2017_v31, %v1896_v29  ;;  %v2019_v33 = vpop.f32.mrb[9].mxu1 }
 0x6b2   : > { %v2020_v34 = vadd.f32 %v2019_v33, %v1900_v30  ;;  %v2021_v35 = vpop.f32.mrb[10].mxu1  ;;  %v4636_v33 = vld [vmem:[#allocation24] sm:$0xff]  }
 0x6b3   : > { %2036 = vst [vmem:[%s6454_s11] sm:$0xff] %v2018_v32  ;;  %v2022_v36 = vadd.f32 %v2021_v35, %v1896_v29  ;;  %v2023_v37 = vpop.f32.mrb[11].mxu1  ;;  %4086 = vmatprep.subr.bf16.mxu0 %v4636_v33  ;;  %v4638_v35 = vld [vmem:[#allocation24 + $0x10] sm:$0xff]  }
 0x6b4   : > { %2037 = vst [vmem:[%s6454_s11 + $0x8] sm:$0xff] %v2020_v34  ;;  %v2052_v38 = vmul.f32 0.5, %v2020_v34  ;;  %v2024_v39 = vadd.f32 %v2023_v37, %v1900_v30  ;;  %v4637_v34 = vld [vmem:[#allocation24 + $0x8] sm:$0xff]   ;;  %v4640_v37 = vld [vmem:[#allocation24 + $0x20] sm:$0xff]  }
 0x6b5   : > { %2038 = vst [vmem:[%s6454_s11 + $0x10] sm:$0xff] %v2022_v36 }
 0x6b6   : > { %v2056_v40 = vmul.f32 1.442695, %v2052_v38  ;;  %2039 = vst [vmem:[%s6454_s11 + $0x18] sm:$0xff] %v2024_v39  ;;  %v2053_v41 = vmul.f32 0.5, %v2024_v39  ;;  %v4641_v38 = vld [vmem:[#allocation24 + $0x28] sm:$0xff]   ;;  %v4642_v39 = vld [vmem:[#allocation24 + $0x30] sm:$0xff]  }
 0x6b8   : > { %4692 = vpow2.f32 %v2056_v40  ;;  %v2058_v42 = vmul.f32 1.442695, %v2053_v41  ;;  %v2027_v43 = vpop.f32.mrb[12].mxu1  ;;  %v4644_v40 = vld [vmem:[#allocation27] sm:$0xff]   ;;  %v4645_v41 = vld [vmem:[#allocation27 + $0x8] sm:$0xff]  }
 0x6b9   : > { %v2028_v44 = vadd.f32 %v2027_v43, %v1896_v29  ;;  %v2029_v45 = vpop.f32.mrb[13].mxu1  ;;  %4106 = vmatprep.subr.bf16.mxu1 %v4644_v40  ;;  %v4647_v43 = vld [vmem:[#allocation27 + $0x18] sm:$0xff]  }
 0x6ba   : > { %4694 = vpow2.f32 %v2058_v42  ;;  %v2030_v46 = vadd.f32 %v2029_v45, %v1900_v30  ;;  %v2031_v47 = vpop.f32.mrb[14].mxu1  ;;  %v4646_v42 = vld [vmem:[#allocation27 + $0x10] sm:$0xff]   ;;  %v4649_v45 = vld [vmem:[#allocation27 + $0x28] sm:$0xff]  }
 0x6bb   : > { %2040 = vst [vmem:[%s6454_s11 + $0x20] sm:$0xff] %v2028_v44  ;;  %v2032_v48 = vadd.f32 %v2031_v47, %v1896_v29  ;;  %v2033_v49 = vpop.f32.mrb[15].mxu1 }
 0x6bc   : > { %2041 = vst [vmem:[%s6454_s11 + $0x28] sm:$0xff] %v2030_v46  ;;  %v2054_v50 = vmul.f32 0.5, %v2030_v46  ;;  %v2034_v51 = vadd.f32 %v2033_v49, %v1900_v30  ;;  %v2216_v46 = vld [vmem:[#allocation21] sm:$0x3] }
 0x6bd   : > { %2042 = vst [vmem:[%s6454_s11 + $0x30] sm:$0xff] %v2032_v48  ;;  %v2221_v47 = vrot.slane %v2216_v46, %v6423_v0 }
 0x6be   : > { %v2060_v53 = vmul.f32 1.442695, %v2054_v50  ;;  %2043 = vst [vmem:[%s6454_s11 + $0x38] sm:$0xff] %v2034_v51  ;;  %v2055_v54 = vmul.f32 0.5, %v2034_v51 }
 0x6c0   : > { %4696 = vpow2.f32 %v2060_v53  ;;  %v2062_v56 = vmul.f32 1.442695, %v2055_v54 }
 0x6c2   : > { %v4693_v58 = vpop.eup %4692  ;;  %4698 = vpow2.f32 %v2062_v56 }
 0x6c3   : > { %v2064_v59 = vmul.f32 %v4693_v58, %v3919_v55 }
 0x6c4   : > { %v4695_v60 = vpop.eup %4694 }
 0x6c5   : > { %v2065_v62 = vmul.f32 %v4695_v60, %v3920_v57  ;;  %v2068_v63 = vadd.f32 %v2064_v59, %v2018_v32 }
 0x6c7   : > { %v2069_v1 = vadd.f32 %v2065_v62, %v2022_v36  ;;  %v4639_v36 = vld [vmem:[#allocation24 + $0x18] sm:$0xff]  }
 0x6c9   : > { %v2072_v4 = vpack.c.bf16 %v2069_v1, %v2068_v63 }
 0x6ca   : > { %v4697_v6 = vpop.eup %4696 }
 0x6cb   : > { %4082 = vmatprep.mubr.bf16.mxu0 %v2072_v4  ;;  %v2066_v7 = vmul.f32 %v4697_v6, %v3923_v3  ;;  %v3926_v6 = vld [vmem:[%s1241_s10] sm:$0xff]   ;;  %s3151_s10 = scalar_lea.sflag [#allocation42], %s6339_s24 }
 0x6cc   : > { %v4699_v8 = vpop.eup %4698 }
 0x6cd   : > { %v2067_v9 = vmul.f32 %v4699_v8, %v3924_v5  ;;  %v2070_v10 = vadd.f32 %v2066_v7, %v2028_v44  ;;  %v4648_v44 = vld [vmem:[#allocation27 + $0x20] sm:$0xff]  }
 0x6cf   : > { %v2071_v11 = vadd.f32 %v2067_v9, %v2032_v48  ;;  %v2225_v48 = vrot.slane %v2216_v46, %v6426_v2  ;;  %v3927_v9 = vunpack.c.l.bf16 %v3926_v6 }
 0x6d1   : > { %v2073_v12 = vpack.c.bf16 %v2071_v11, %v2070_v10  ;;  %v3928_v11 = vunpack.c.h.bf16 %v3926_v6 }
 0x6d3   : > { %4083 = vmatmul.mubr.bf16.vlgmr.msra.gmra.mrb[8].mxu0 %v2073_v12 }
 0x6d4   : > { %4087 = vmatpush3.bf16.msra.mxu0 %v4636_v33  ;;  %v4653_v33 = vld [vmem:[%s6796_s6 + $0x8] sm:$0xff]  }
 0x6d5   : > { %4088 = vmatprep.subr.bf16.mxu0 %v4637_v34 }
 0x6d8   : > { %4089 = vmatpush3.bf16.msra.mxu0 %v4637_v34  ;;  %v4654_v34 = vld [vmem:[%s6796_s6 + $0x10] sm:$0xff]  }
 0x6d9   : > { %4090 = vmatprep.subr.bf16.mxu0 %v4638_v35 }
 0x6dc   : > { %4091 = vmatpush3.bf16.msra.mxu0 %v4638_v35  ;;  %v4655_v35 = vld [vmem:[%s6796_s6 + $0x18] sm:$0xff]  }
 0x6dd   : > { %4092 = vmatprep.subr.bf16.mxu0 %v4639_v36 }
 0x6e0   : > { %4093 = vmatpush3.bf16.msra.mxu0 %v4639_v36  ;;  %v4656_v36 = vld [vmem:[%s6796_s6 + $0x20] sm:$0xff]  }
 0x6e1   : > { %4094 = vmatprep.subr.bf16.mxu0 %v4640_v37 }
 0x6e4   : > { %4095 = vmatpush3.bf16.msra.mxu0 %v4640_v37  ;;  %v4657_v37 = vld [vmem:[%s6796_s6 + $0x28] sm:$0xff]  }
 0x6e5   : > { %4096 = vmatprep.subr.bf16.mxu0 %v4641_v38 }
 0x6e8   : > { %4097 = vmatpush3.bf16.msra.mxu0 %v4641_v38  ;;  %v3828_v38 = vld [vmem:[#allocation25] ss:$0 sm:$0xff] }
 0x6e9   : > { %4098 = vmatprep.subr.bf16.mxu0 %v4642_v39 }
 0x6ec   : > { %4099 = vmatpush3.bf16.msra.mxu0 %v4642_v39 }
 0x7a6   : > { %v4084_v18 = vpop.f32.mrb[8].mxu0 }
 0x7a7   : > { %v2188_v19 = vadd.f32 %v4084_v18, %v3803_v17  ;;  %v2179_v20 = vpop.f32.mrb[9].mxu0 }
 0x7a8   : > { %v2180_v21 = vadd.f32 %v3803_v17, %v2179_v20  ;;  %v4085_v22 = vpop.f32.mrb[10].mxu0 }
 0x7a9   : > { %v2191_v23 = vadd.f32 %v4085_v22, %v3803_v17  ;;  %v2182_v24 = vpop.f32.mrb[11].mxu0  ;;  %v2196_v27 = vmax.f32 %v2188_v19, 0.0  ;;  %v3931_v19 = vunpack.c.l.bf16 %v3935_v15 }
 0x7aa   : > { %v2183_v25 = vadd.f32 %v3803_v17, %v2182_v24  ;;  %v2194_v29 = vmax.f32 %v2180_v21, 0.0  ;;  %v3932_v21 = vunpack.c.h.bf16 %v3935_v15  ;;  %v3846_v15 = vld [vmem:[#allocation30] ss:$0 sm:$0xff] }
 0x7ab   : > { %v2197_v28 = vmax.f32 %v2191_v23, 0.0 }
 0x7ac   : > { %v2195_v30 = vmax.f32 %v2183_v25, 0.0 }
 0x7ad   : > { %v2199_v31 = vpack.c.bf16 %v2197_v28, %v2196_v27 }
 0x7ae   : > { %v2198_v32 = vpack.c.bf16 %v2195_v30, %v2194_v29  ;;  %v4650_v30 = vld [vmem:[#allocation27 + $0x30] sm:$0xff]  }
 0x7b0   : > { %2341 = vmatmul.mubr.bf16.vlgmr.msra.gmra.mrb[16].mxu1 %v2198_v32  ;;  %v4652_v32 = vld [vmem:[%s6796_s6] sm:$0xff]  }
 0x7b1   : > { %2350 = vmatprep.mubr.bf16.mxu1 %v5694_v26  ;;  %v4643_v26 = vld [vmem:[#allocation24 + $0x38] sm:$0xff]   ;;  %4107 = vmatpush3.bf16.msra.mxu1 %v4644_v40 }
 0x7b2   : > { %4100 = vmatprep.subr.bf16.mxu0 %v4643_v26  ;;  %4108 = vmatprep.subr.bf16.mxu1 %v4645_v41 }
 0x7b3   : > { %4101 = vmatpush3.bf16.msra.mxu0 %v4643_v26 }
 0x7b4   : > { %4126 = vmatprep.subr.bf16.mxu0 %v4652_v32 }
 0x7b5   : > { %4109 = vmatpush3.bf16.msra.mxu1 %v4645_v41 }
 0x7b6   : > { %4110 = vmatprep.subr.bf16.mxu1 %v4646_v42 }
 0x7b8   : > { %2351 = vmatmul.mubr.bf16.gmra.mrb[20].mxu1 %v2199_v31  ;;  %v4651_v31 = vld [vmem:[#allocation27 + $0x38] sm:$0xff]  }
 0x7b9   : > { %4111 = vmatpush3.bf16.msra.mxu1 %v4646_v42 }
 0x7ba   : > { %4112 = vmatprep.subr.bf16.mxu1 %v4647_v43 }
 0x7bd   : > { %4113 = vmatpush3.bf16.msra.mxu1 %v4647_v43 }
 0x7be   : > { %4114 = vmatprep.subr.bf16.mxu1 %v4648_v44 }
 0x7c1   : > { %4115 = vmatpush3.bf16.msra.mxu1 %v4648_v44 }
 0x7c2   : > { %4116 = vmatprep.subr.bf16.mxu1 %v4649_v45 }
 0x7c5   : > { %4117 = vmatpush3.bf16.msra.mxu1 %v4649_v45 }
 0x7c6   : > { %4118 = vmatprep.subr.bf16.mxu1 %v4650_v30 }
 0x7c9   : > { %4119 = vmatpush3.bf16.msra.mxu1 %v4650_v30 }
 0x7ca   : > { %4120 = vmatprep.subr.bf16.mxu1 %v4651_v31 }
 0x7cd   : > { %4121 = vmatpush3.bf16.msra.mxu1 %v4651_v31  ;;  %v4674_v31 = vld [vmem:[#allocation34 + $0x30] sm:$0xff]  }
 0x883   : > { %v2342_v49 = vpop.f32.mrb[16].mxu1 }
 0x884   : > { %v2343_v50 = vadd.f32 %v2342_v49, %v2221_v47  ;;  %v2344_v51 = vpop.f32.mrb[17].mxu1 }
 0x885   : > { %v2345_v52 = vadd.f32 %v2344_v51, %v2225_v48  ;;  %v2346_v53 = vpop.f32.mrb[18].mxu1 }
 0x886   : > { %2361 = vst [vmem:[%s6469_s20] sm:$0xff] %v2343_v50  ;;  %v2347_v54 = vadd.f32 %v2346_v53, %v2221_v47  ;;  %v2348_v55 = vpop.f32.mrb[19].mxu1  ;;  %v4659_v53 = vld [vmem:[%s6796_s6 + $0x38] sm:$0xff]  }
 0x887   : > { %2362 = vst [vmem:[%s6469_s20 + $0x8] sm:$0xff] %v2345_v52  ;;  %v2377_v56 = vmul.f32 0.5, %v2345_v52  ;;  %v2349_v0 = vadd.f32 %v2348_v55, %v2225_v48  ;;  %v4658_v52 = vld [vmem:[%s6796_s6 + $0x30] sm:$0xff]   ;;  %v4661_v55 = vld [vmem:[#allocation31 + $0x8] sm:$0xff]  }
 0x888   : > { %2363 = vst [vmem:[%s6469_s20 + $0x10] sm:$0xff] %v2347_v54 }
 0x889   : > { %v2381_v2 = vmul.f32 1.442695, %v2377_v56  ;;  %2364 = vst [vmem:[%s6469_s20 + $0x18] sm:$0xff] %v2349_v0  ;;  %v2378_v57 = vmul.f32 0.5, %v2349_v0  ;;  %v4662_v56 = vld [vmem:[#allocation31 + $0x10] sm:$0xff]   ;;  %v4663_v0 = vld [vmem:[#allocation31 + $0x18] sm:$0xff]  }
 0x88b   : > { %4700 = vpow2.f32 %v2381_v2  ;;  %v2383_v58 = vmul.f32 1.442695, %v2378_v57  ;;  %v2352_v59 = vpop.f32.mrb[20].mxu1  ;;  %v4664_v2 = vld [vmem:[#allocation31 + $0x20] sm:$0xff]   ;;  %v4665_v57 = vld [vmem:[#allocation31 + $0x28] sm:$0xff]  }
 0x88c   : > { %v2353_v60 = vadd.f32 %v2352_v59, %v2221_v47  ;;  %v2354_v61 = vpop.f32.mrb[21].mxu1  ;;  %v3837_v59 = vld [vmem:[#allocation28] ss:$0 sm:$0xff] }
 0x88d   : > { %4702 = vpow2.f32 %v2383_v58  ;;  %v2355_v62 = vadd.f32 %v2354_v61, %v2225_v48  ;;  %v2356_v63 = vpop.f32.mrb[22].mxu1 }
 0x88e   : > { %2365 = vst [vmem:[%s6469_s20 + $0x20] sm:$0xff] %v2353_v60  ;;  %v2357_v1 = vadd.f32 %v2356_v63, %v2221_v47  ;;  %v2358_v3 = vpop.f32.mrb[23].mxu1 }
 0x88f   : > { %2366 = vst [vmem:[%s6469_s20 + $0x28] sm:$0xff] %v2355_v62  ;;  %v2379_v4 = vmul.f32 0.5, %v2355_v62  ;;  %v2359_v5 = vadd.f32 %v2358_v3, %v2225_v48 }
 0x890   : > { %2367 = vst [vmem:[%s6469_s20 + $0x30] sm:$0xff] %v2357_v1 }
 0x891   : > { %v2385_v7 = vmul.f32 1.442695, %v2379_v4  ;;  %2368 = vst [vmem:[%s6469_s20 + $0x38] sm:$0xff] %v2359_v5  ;;  %v2380_v8 = vmul.f32 0.5, %v2359_v5 }
 0x893   : > { %4704 = vpow2.f32 %v2385_v7  ;;  %v2387_v10 = vmul.f32 1.442695, %v2380_v8  ;;  %v4666_v7 = vld [vmem:[#allocation31 + $0x30] sm:$0xff]   ;;  %v4667_v8 = vld [vmem:[#allocation31 + $0x38] sm:$0xff]  }
 0x895   : > { %v4701_v12 = vpop.eup %4700  ;;  %4706 = vpow2.f32 %v2387_v10  ;;  %v4669_v10 = vld [vmem:[#allocation34 + $0x8] sm:$0xff]  }
 0x896   : > { %v2389_v13 = vmul.f32 %v4701_v12, %v3927_v9  ;;  %v4668_v9 = vld [vmem:[#allocation34] sm:$0xff]   ;;  %v4671_v12 = vld [vmem:[#allocation34 + $0x18] sm:$0xff]  }
 0x897   : > { %v4703_v14 = vpop.eup %4702 }
 0x898   : > { %v2390_v16 = vmul.f32 %v4703_v14, %v3928_v11  ;;  %v2393_v17 = vadd.f32 %v2389_v13, %v2343_v50  ;;  %v4670_v11 = vld [vmem:[#allocation34 + $0x10] sm:$0xff]   ;;  %v4672_v13 = vld [vmem:[#allocation34 + $0x20] sm:$0xff]   ;;  %v4673_v14 = vld [vmem:[#allocation34 + $0x28] sm:$0xff]  }
 0x89a   : > { %v2394_v18 = vadd.f32 %v2390_v16, %v2347_v54  ;;  %v4660_v54 = vld [vmem:[#allocation31] sm:$0xff]  }
 0x89b   : > { %4146 = vmatprep.subr.bf16.mxu1 %v4660_v54 }
 0x89c   : > { %v2397_v20 = vpack.c.bf16 %v2394_v18, %v2393_v17 }
 0x89d   : > { %v4705_v22 = vpop.eup %4704 }
 0x89e   : > { %4102 = vmatprep.mubr.bf16.mxu0 %v2397_v20  ;;  %v2391_v23 = vmul.f32 %v4705_v22, %v3931_v19 }
 0x89f   : > { %v4707_v24 = vpop.eup %4706 }
 0x8a0   : > { %v2392_v25 = vmul.f32 %v4707_v24, %v3932_v21  ;;  %v2395_v27 = vadd.f32 %v2391_v23, %v2353_v60 }
 0x8a2   : > { %v2396_v28 = vadd.f32 %v2392_v25, %v2357_v1 }
 0x8a4   : > { %v2398_v29 = vpack.c.bf16 %v2396_v28, %v2395_v27 }
 0x8a6   : > { %4103 = vmatmul.mubr.bf16.vlgmr.msra.gmra.mrb[12].mxu0 %v2398_v29 }
 0x8a7   : > { %4127 = vmatpush3.bf16.msra.mxu0 %v4652_v32  ;;  %v4675_v32 = vld [vmem:[#allocation34 + $0x38] sm:$0xff]  }
 0x8a8   : > { %4128 = vmatprep.subr.bf16.mxu0 %v4653_v33 }
 0x8ab   : > { %4129 = vmatpush3.bf16.msra.mxu0 %v4653_v33  ;;  %v4676_v33 = vld [vmem:[#allocation37] sm:$0xff]  }
 0x8ac   : > { %4130 = vmatprep.subr.bf16.mxu0 %v4654_v34 }
 0x8af   : > { %4131 = vmatpush3.bf16.msra.mxu0 %v4654_v34  ;;  %v4677_v34 = vld [vmem:[#allocation37 + $0x8] sm:$0xff]  }
 0x8b0   : > { %4132 = vmatprep.subr.bf16.mxu0 %v4655_v35 }
 0x8b3   : > { %4133 = vmatpush3.bf16.msra.mxu0 %v4655_v35  ;;  %v4678_v35 = vld [vmem:[#allocation37 + $0x10] sm:$0xff]  }
 0x8b4   : > { %4134 = vmatprep.subr.bf16.mxu0 %v4656_v36 }
 0x8b7   : > { %4135 = vmatpush3.bf16.msra.mxu0 %v4656_v36  ;;  %v4679_v36 = vld [vmem:[#allocation37 + $0x18] sm:$0xff]  }
 0x8b8   : > { %4136 = vmatprep.subr.bf16.mxu0 %v4657_v37 }
 0x8bb   : > { %4137 = vmatpush3.bf16.msra.mxu0 %v4657_v37  ;;  %v4680_v37 = vld [vmem:[#allocation37 + $0x20] sm:$0xff]  }
 0x8bc   : > { %4138 = vmatprep.subr.bf16.mxu0 %v4658_v52 }
 0x8bf   : > { %4139 = vmatpush3.bf16.msra.mxu0 %v4658_v52 }
 0x8c0   : > { %4140 = vmatprep.subr.bf16.mxu0 %v4659_v53 }
 0x8c3   : > { %4141 = vmatpush3.bf16.msra.mxu0 %v4659_v53 }
 0x8c4   : > { %4166 = vmatprep.subr.bf16.mxu0 %v4668_v9 }
 0x979   : > { %v4104_v39 = vpop.f32.mrb[12].mxu0 }
 0x97a   : > { %v2513_v26 = vadd.f32 %v4104_v39, %v3828_v38  ;;  %v2504_v40 = vpop.f32.mrb[13].mxu0 }
 0x97b   : > { %v2505_v41 = vadd.f32 %v3828_v38, %v2504_v40  ;;  %v4105_v42 = vpop.f32.mrb[14].mxu0 }
 0x97c   : > { %v2516_v43 = vadd.f32 %v4105_v42, %v3828_v38  ;;  %v2507_v44 = vpop.f32.mrb[15].mxu0  ;;  %v2521_v46 = vmax.f32 %v2513_v26, 0.0  ;;  %v3855_v26 = vld [vmem:[#allocation33] ss:$0 sm:$0xff] }
 0x97d   : > { %v2508_v45 = vadd.f32 %v3828_v38, %v2507_v44  ;;  %v2519_v48 = vmax.f32 %v2505_v41, 0.0  ;;  %v4681_v38 = vld [vmem:[#allocation37 + $0x28] sm:$0xff]  }
 0x97e   : > { %v2522_v47 = vmax.f32 %v2516_v43, 0.0 }
 0x97f   : > { %v2520_v49 = vmax.f32 %v2508_v45, 0.0 }
 0x980   : > { %v2524_v50 = vpack.c.bf16 %v2522_v47, %v2521_v46 }
 0x981   : > { %v2523_v51 = vpack.c.bf16 %v2520_v49, %v2519_v48  ;;  %v4682_v49 = vld [vmem:[#allocation37 + $0x30] sm:$0xff]  }
 0x983   : > { %4122 = vmatprep.mubr.bf16.mxu1 %v2523_v51  ;;  %v3864_v51 = vld [vmem:[#allocation36] ss:$0 sm:$0xff] }
 0x984   : > { %4123 = vmatmul.mubr.bf16.vlgmr.msra.gmra.mrb[24].mxu1 %v2524_v50  ;;  %v4683_v50 = vld [vmem:[#allocation37 + $0x38] sm:$0xff]  }
 0x985   : > { %4147 = vmatpush3.bf16.msra.mxu1 %v4660_v54 }
 0x986   : > { %4148 = vmatprep.subr.bf16.mxu1 %v4661_v55 }
 0x989   : > { %4149 = vmatpush3.bf16.msra.mxu1 %v4661_v55 }
 0x98a   : > { %4150 = vmatprep.subr.bf16.mxu1 %v4662_v56 }
 0x98d   : > { %4151 = vmatpush3.bf16.msra.mxu1 %v4662_v56 }
 0x98e   : > { %4152 = vmatprep.subr.bf16.mxu1 %v4663_v0 }
 0x991   : > { %4153 = vmatpush3.bf16.msra.mxu1 %v4663_v0 }
 0x992   : > { %4154 = vmatprep.subr.bf16.mxu1 %v4664_v2 }
 0x995   : > { %4155 = vmatpush3.bf16.msra.mxu1 %v4664_v2 }
 0x996   : > { %4156 = vmatprep.subr.bf16.mxu1 %v4665_v57 }
 0x999   : > { %4157 = vmatpush3.bf16.msra.mxu1 %v4665_v57 }
 0x99a   : > { %4158 = vmatprep.subr.bf16.mxu1 %v4666_v7 }
 0x99d   : > { %4159 = vmatpush3.bf16.msra.mxu1 %v4666_v7 }
 0x99e   : > { %4160 = vmatprep.subr.bf16.mxu1 %v4667_v8 }
 0x9a1   : > { %4161 = vmatpush3.bf16.msra.mxu1 %v4667_v8 }
 0x9a2   : > { %4186 = vmatprep.subr.bf16.mxu1 %v4676_v33 }
 0xa57   : > { %v4124_v58 = vpop.f32.mrb[24].mxu1 }
 0xa58   : > { %v2630_v60 = vpop.f32.mrb[25].mxu1  ;;  %v2639_v62 = vadd.f32 %v4124_v58, %v3837_v59 }
 0xa59   : > { %v4125_v61 = vpop.f32.mrb[26].mxu1  ;;  %v2631_v3 = vadd.f32 %v3837_v59, %v2630_v60 }
 0xa5a   : > { %v2642_v63 = vadd.f32 %v4125_v61, %v3837_v59  ;;  %v2633_v1 = vpop.f32.mrb[27].mxu1 }
 0xa5b   : > { %v2634_v4 = vadd.f32 %v3837_v59, %v2633_v1 }
 0xa5c   : > { %v2646_v5 = vpack.c.bf16 %v2642_v63, %v2639_v62 }
 0xa5d   : > { %v2645_v6 = vpack.c.bf16 %v2634_v4, %v2631_v3 }
 0xa5f   : > { %4142 = vmatprep.mubr.bf16.mxu0 %v2645_v6 }
 0xa60   : > { %4143 = vmatmul.mubr.bf16.vlgmr.msra.gmra.mrb[16].mxu0 %v2646_v5 }
 0xa61   : > { %4167 = vmatpush3.bf16.msra.mxu0 %v4668_v9 }
 0xa62   : > { %4168 = vmatprep.subr.bf16.mxu0 %v4669_v10 }
 0xa65   : > { %4169 = vmatpush3.bf16.msra.mxu0 %v4669_v10 }
 0xa66   : > { %4170 = vmatprep.subr.bf16.mxu0 %v4670_v11 }
 0xa69   : > { %4171 = vmatpush3.bf16.msra.mxu0 %v4670_v11 }
 0xa6a   : > { %4172 = vmatprep.subr.bf16.mxu0 %v4671_v12 }
 0xa6d   : > { %4173 = vmatpush3.bf16.msra.mxu0 %v4671_v12 }
 0xa6e   : > { %4174 = vmatprep.subr.bf16.mxu0 %v4672_v13 }
 0xa71   : > { %4175 = vmatpush3.bf16.msra.mxu0 %v4672_v13 }
 0xa72   : > { %4176 = vmatprep.subr.bf16.mxu0 %v4673_v14 }
 0xa75   : > { %4177 = vmatpush3.bf16.msra.mxu0 %v4673_v14 }
 0xa76   : > { %4178 = vmatprep.subr.bf16.mxu0 %v4674_v31 }
 0xa79   : > { %4179 = vmatpush3.bf16.msra.mxu0 %v4674_v31 }
 0xa7a   : > { %4180 = vmatprep.subr.bf16.mxu0 %v4675_v32 }
 0xa7d   : > { %4181 = vmatpush3.bf16.msra.mxu0 %v4675_v32 }
 0xb33   : > { %v4144_v16 = vpop.f32.mrb[16].mxu0 }
 0xb34   : > { %v2761_v17 = vadd.f32 %v4144_v16, %v3846_v15  ;;  %v2752_v18 = vpop.f32.mrb[17].mxu0 }
 0xb35   : > { %v2753_v19 = vadd.f32 %v3846_v15, %v2752_v18  ;;  %v4145_v20 = vpop.f32.mrb[18].mxu0 }
 0xb36   : > { %v2764_v21 = vadd.f32 %v4145_v20, %v3846_v15  ;;  %v2755_v22 = vpop.f32.mrb[19].mxu0  ;;  %v2769_v24 = vmax.f32 %v2761_v17, 0.0 }
 0xb37   : > { %v2756_v23 = vadd.f32 %v3846_v15, %v2755_v22  ;;  %v2767_v27 = vmax.f32 %v2753_v19, 0.0 }
 0xb38   : > { %v2770_v25 = vmax.f32 %v2764_v21, 0.0 }
 0xb39   : > { %v2768_v28 = vmax.f32 %v2756_v23, 0.0 }
 0xb3a   : > { %v2772_v29 = vpack.c.bf16 %v2770_v25, %v2769_v24 }
 0xb3b   : > { %v2771_v30 = vpack.c.bf16 %v2768_v28, %v2767_v27 }
 0xb3d   : > { %4162 = vmatprep.mubr.bf16.mxu1 %v2771_v30 }
 0xb3e   : > { %4163 = vmatmul.mubr.bf16.vlgmr.msra.gmra.mrb[28].mxu1 %v2772_v29 }
 0xb3f   : > { %4187 = vmatpush3.bf16.msra.mxu1 %v4676_v33 }
 0xb40   : > { %4188 = vmatprep.subr.bf16.mxu1 %v4677_v34 }
 0xb43   : > { %4189 = vmatpush3.bf16.msra.mxu1 %v4677_v34 }
 0xb44   : > { %4190 = vmatprep.subr.bf16.mxu1 %v4678_v35 }
 0xb47   : > { %4191 = vmatpush3.bf16.msra.mxu1 %v4678_v35 }
 0xb48   : > { %4192 = vmatprep.subr.bf16.mxu1 %v4679_v36 }
 0xb4b   : > { %4193 = vmatpush3.bf16.msra.mxu1 %v4679_v36 }
 0xb4c   : > { %4194 = vmatprep.subr.bf16.mxu1 %v4680_v37 }
 0xb4f   : > { %4195 = vmatpush3.bf16.msra.mxu1 %v4680_v37 }
 0xb50   : > { %4196 = vmatprep.subr.bf16.mxu1 %v4681_v38 }
 0xb53   : > { %4197 = vmatpush3.bf16.msra.mxu1 %v4681_v38 }
 0xb54   : > { %4198 = vmatprep.subr.bf16.mxu1 %v4682_v49 }
 0xb57   : > { %4199 = vmatpush3.bf16.msra.mxu1 %v4682_v49 }
 0xb58   : > { %4200 = vmatprep.subr.bf16.mxu1 %v4683_v50 }
 0xb5b   : > { %4201 = vmatpush3.bf16.msra.mxu1 %v4683_v50 }
 0xc11   : > { %v4164_v39 = vpop.f32.mrb[28].mxu1 }
 0xc12   : > { %v2878_v40 = vpop.f32.mrb[29].mxu1  ;;  %v2887_v42 = vadd.f32 %v4164_v39, %v3855_v26 }
 0xc13   : > { %v4165_v41 = vpop.f32.mrb[30].mxu1  ;;  %v2879_v45 = vadd.f32 %v3855_v26, %v2878_v40 }
 0xc14   : > { %v2890_v43 = vadd.f32 %v4165_v41, %v3855_v26  ;;  %v2881_v44 = vpop.f32.mrb[31].mxu1 }
 0xc15   : > { %v2882_v46 = vadd.f32 %v3855_v26, %v2881_v44 }
 0xc16   : > { %v2894_v47 = vpack.c.bf16 %v2890_v43, %v2887_v42 }
 0xc17   : > { %v2893_v48 = vpack.c.bf16 %v2882_v46, %v2879_v45 }
 0xc19   : > { %4182 = vmatprep.mubr.bf16.mxu0 %v2893_v48 }
 0xc1a   : > { %4183 = vmatmul.mubr.bf16.vlgmr.msra.gmra.mrb[20].mxu0 %v2894_v47 }
 0xced   : > { %v4184_v52 = vpop.f32.mrb[20].mxu0 }
 0xcee   : > { %v3009_v53 = vadd.f32 %v4184_v52, %v3864_v51  ;;  %v3000_v54 = vpop.f32.mrb[21].mxu0 }
 0xcef   : > { %v3001_v55 = vadd.f32 %v3864_v51, %v3000_v54  ;;  %v4185_v56 = vpop.f32.mrb[22].mxu0 }
 0xcf0   : > { %v3012_v0 = vadd.f32 %v4185_v56, %v3864_v51  ;;  %v3003_v2 = vpop.f32.mrb[23].mxu0  ;;  %v3017_v58 = vmax.f32 %v3009_v53, 0.0 }
 0xcf1   : > { %v3004_v57 = vadd.f32 %v3864_v51, %v3003_v2  ;;  %v3015_v60 = vmax.f32 %v3001_v55, 0.0 }
 0xcf2   : > { %v3018_v59 = vmax.f32 %v3012_v0, 0.0 }
 0xcf3   : > { %v3016_v61 = vmax.f32 %v3004_v57, 0.0 }
 0xcf4   : > { %v3020_v62 = vpack.c.bf16 %v3018_v59, %v3017_v58 }
 0xcf5   : > { %v3019_v63 = vpack.c.bf16 %v3016_v61, %v3015_v60 }
 0xcf7   : > { %4202 = vmatprep.mubr.bf16.mxu1 %v3019_v63 }
 0xcf8   : > { %4203 = vmatmul.mubr.bf16.vlgmr.msra.gmra.mrb[32].mxu1 %v3020_v62 }
 0xcf9   : > { %5427 = shalt.err (!%p5424_p1)
}
 0xcfa   : > { %s5428_s11 = scalar_lea.hbm %s6505_s28, 1024  ;;  %s5432_s12 = scalar_lea.hbm %s6721_s25, 2048 }
 0xcfb   : > { %p5429_p5 = scmp.ne.s32.totalorder %s6505_s28, %s5428_s11  ;;  %p5433_p13 = scmp.lt.u32.totalorder %s6505_s28, %s6721_s25 }
 0xcfc   : > { %p5434_p0 = scmp.lt.u32.totalorder %s5432_s12, %s5428_s11  ;;  %p5436_p2 = scmp.lt.u32.totalorder %s5428_s11, %s6505_s28 }
 0xcfd   : > { %p5430_p9 = pnand %p5429_p5, %p6797_p4 }
 0xcfe   : > { %p5435_p6 = por %p5434_p0, %p5433_p13 }
 0xcff   : > { %p5431_p7 = pneg %p5430_p9 }
 0xd00   : > { %p5437_p3 = por %p5436_p2, %p5435_p6 }
 0xd02   : > { %p5438_p10 = pnand %p5437_p3, %p5431_p7 }
 0xd04   : > { %5441 = shalt.err (!%p5438_p10)
}
 0xd05   : > { %s5696_s13 = smov 256   ;;  %s6798_s8 = sld [smem:[#allocation95_spill]] }
 0xd06   : > { %s6799_s20 = sld [smem:[#allocation93_spill]]  ;;  %s5697_s9 = smov 16  }
 0xd07   : > { %4301 = dma.vmem_to_hbm [thread:$0]  (%p6797_p4), %s6496_s3, 1024, %s6505_s28, %s3151_s10, %s5696_s13, %s5696_s13, %s5697_s9  }
 0xd08   : > { %s3146_s1 = scalar_lea.sflag [#allocation4], %s6342_s21  ;;  %s5442_s11 = scalar_lea.vmem %s6494_s19, 1024 }
 0xd09   : > { %p5443_p12 = scmp.ne.s32.totalorder %s6494_s19, %s5442_s11  ;;  %s5698_s12 = smov [#allocation40]  }
 0xd0a   : > { %s5446_s6 = sshll.u32 %s5698_s12, 4  ;;  %s5447_s6 = int_to_ptr.vmem [resolvable:$false] %s5446_s6 }
 0xd0b   : > { %s6532_s15 = scalar_lea.hbm %s6798_s8, %s6501_s7  ;;  %p5444_p8 = pnand %p5443_p12, %p6797_p4 }
 0xd0c   : > { %s6536_s5 = scalar_lea.hbm %s6799_s20, %s6501_s7  ;;  %s5448_s25 = scalar_lea.vmem %s5447_s6, 2048 }
 0xd0d   : > { %p5445_p11 = pneg %p5444_p8  ;;  %p5449_p1 = scmp.lt.s32.totalorder %s6494_s19, %s5447_s6 }
 0xd0e   : > { %p5450_p5 = scmp.lt.s32.totalorder %s5448_s25, %s5442_s11 }
 0xd10   : > { %p5451_p9 = por %p5450_p5, %p5449_p1 }
 0xd12   : > { %p5452_p7 = pnand %p5451_p9, %p5445_p11 }
 0xd14   : > { %5455 = shalt.err (!%p5452_p7)
}
 0xd15   : > { %s5456_s3 = scalar_lea.hbm %s6536_s5, 1024  ;;  %s5460_s7 = scalar_lea.hbm %s6799_s20, 2048 }
 0xd16   : > { %p5457_p13 = scmp.ne.s32.totalorder %s6536_s5, %s5456_s3  ;;  %p5461_p2 = scmp.lt.u32.totalorder %s6536_s5, %s6799_s20 }
 0xd17   : > { %p5462_p3 = scmp.lt.u32.totalorder %s5460_s7, %s5456_s3  ;;  %p5464_p12 = scmp.lt.u32.totalorder %s5456_s3, %s6536_s5 }
 0xd18   : > { %p5458_p0 = pnand %p5457_p13, %p6797_p4 }
 0xd19   : > { %p5463_p10 = por %p5462_p3, %p5461_p2 }
 0xd1a   : > { %p5459_p6 = pneg %p5458_p0 }
 0xd1b   : > { %p5465_p8 = por %p5464_p12, %p5463_p10 }
 0xd1d   : > { %p5466_p11 = pnand %p5465_p8, %p5459_p6 }
 0xd1f   : > { %5469 = shalt.err (!%p5466_p11)
}
 0xd20   : > { %4300 = dma.vmem_to_hbm [thread:$0]  (%p6797_p4), %s6494_s19, 1024, %s6536_s5, %s3146_s1, %s5696_s13, %s5696_s13, %s5697_s9  }
 0xd21   : > { %s5470_s25 = scalar_lea.vmem %s6498_s17, 1024  ;;  %s5699_s6 = smov [#allocation43]  }
 0xd22   : > { %p5471_p1 = scmp.ne.s32.totalorder %s6498_s17, %s5470_s25  ;;  %s5474_s28 = sshll.u32 %s5699_s6, 4  ;;  %s5475_s28 = int_to_ptr.vmem [resolvable:$false] %s5474_s28 }
 0xd23   : > { %s5476_s11 = scalar_lea.vmem %s5475_s28, 2048  ;;  %p5477_p7 = scmp.lt.s32.totalorder %s6498_s17, %s5475_s28 }
 0xd24   : > { %p5472_p5 = pnand %p5471_p1, %p6797_p4  ;;  %p5478_p13 = scmp.lt.s32.totalorder %s5476_s11, %s5470_s25 }
 0xd26   : > { %p5473_p9 = pneg %p5472_p5  ;;  %p5479_p0 = por %p5478_p13, %p5477_p7 }
 0xd28   : > { %p5480_p6 = pnand %p5479_p0, %p5473_p9 }
 0xd2a   : > { %5483 = shalt.err (!%p5480_p6)
}
 0xd2b   : > { %s5484_s19 = scalar_lea.hbm %s6532_s15, 1024  ;;  %s5488_s5 = scalar_lea.hbm %s6798_s8, 2048 }
 0xd2c   : > { %p5485_p2 = scmp.ne.s32.totalorder %s6532_s15, %s5484_s19  ;;  %p5489_p12 = scmp.lt.u32.totalorder %s6532_s15, %s6798_s8 }
 0xd2d   : > { %p5490_p8 = scmp.lt.u32.totalorder %s5488_s5, %s5484_s19  ;;  %p5492_p1 = scmp.lt.u32.totalorder %s5484_s19, %s6532_s15 }
 0xd2e   : > { %p5486_p3 = pnand %p5485_p2, %p6797_p4 }
 0xd2f   : > { %p5491_p11 = por %p5490_p8, %p5489_p12 }
 0xd30   : > { %p5487_p10 = pneg %p5486_p3 }
 0xd31   : > { %p5493_p5 = por %p5492_p1, %p5491_p11 }
 0xd33   : > { %p5494_p9 = pnand %p5493_p5, %p5487_p10 }
 0xd35   : > { %5497 = shalt.err (!%p5494_p9)
}
 0xd36   : > { %4302 = dma.vmem_to_hbm [thread:$0]  (%p6797_p4), %s6498_s17, 1024, %s6532_s15, %s3151_s10, %s5696_s13, %s5696_s13, %s5697_s9   ;;  %v3873_v1 = vld [vmem:[#allocation39] ss:$0 sm:$0xff] }
 0xd37   : > { %s3748_s1 = sshll.u32 %s6342_s21, 5  ;;  %s6800_s12 = sld [smem:[#allocation96_spill]] }
 0xd38   : > { %s1393_s3 = scalar_lea.vmem [#allocation44], %s3748_s1  ;;  %s3908_s25 = sshll.u32 %s5889_s2, 9 }
 0xd39   : > { %s3225_s7 = sshll.u32 %s1393_s3, 4  ;;  %s3161_s17 = scalar_lea.sflag [#allocation45], %s6342_s21  ;;  %s6585_s7 = int_to_ptr.vmem [resolvable:$true] %s3225_s7 }
 0xd3a   : > { %s5498_s10 = scalar_lea.vmem %s6585_s7, 512  ;;  %s5700_s2 = smov [#allocation44]  }
 0xd3b   : > { %p5499_p7 = scmp.ne.s32.totalorder %s6585_s7, %s5498_s10  ;;  %s5502_s13 = sshll.u32 %s5700_s2, 4  ;;  %s5503_s13 = int_to_ptr.vmem [resolvable:$false] %s5502_s13 }
 0xd3c   : > { %s5504_s9 = scalar_lea.vmem %s5503_s13, 1024  ;;  %p5505_p6 = scmp.lt.s32.totalorder %s6585_s7, %s5503_s13 }
 0xd3d   : > { %s6588_s24 = scalar_lea.hbm %s6800_s12, %s3908_s25  ;;  %p5500_p13 = pnand %p5499_p7, %p6797_p4 }
 0xd3e   : > { %p5506_p2 = scmp.lt.s32.totalorder %s5504_s9, %s5498_s10 }
 0xd3f   : > { %p5501_p0 = pneg %p5500_p13 }
 0xd40   : > { %p5507_p3 = por %p5506_p2, %p5505_p6 }
 0xd42   : > { %p5508_p10 = pnand %p5507_p3, %p5501_p0 }
 0xdcb   : > { %v4204_v3 = vpop.f32.mrb[32].mxu1 }
 0xdcc   : > { %v3135_v4 = vadd.f32 %v4204_v3, %v3873_v1  ;;  %v3126_v5 = vpop.f32.mrb[33].mxu1 }
 0xdcd   : > { %v3127_v6 = vadd.f32 %v3873_v1, %v3126_v5  ;;  %v4205_v7 = vpop.f32.mrb[34].mxu1 }
 0xdce   : > { %3143 = vst [vmem:[%s1393_s3 + $0x10] sm:$0xff] %v3135_v4  ;;  %v3138_v8 = vadd.f32 %v4205_v7, %v3873_v1  ;;  %v3129_v9 = vpop.f32.mrb[35].mxu1 }
 0xdcf   : > { %3141 = vst [vmem:[%s1393_s3] sm:$0xff] %v3127_v6  ;;  %v3130_v10 = vadd.f32 %v3873_v1, %v3129_v9 }
 0xdd0   : > { %3144 = vst [vmem:[%s1393_s3 + $0x18] sm:$0xff] %v3138_v8 }
 0xdd1   : > { %3142 = vst [vmem:[%s1393_s3 + $0x8] sm:$0xff] %v3130_v10 }
 0xdd2   : > { %5511 = shalt.err (!%p5508_p10)
}
 0xdd3   : > { %s5512_s15 = scalar_lea.hbm %s6588_s24, 512  ;;  %s5516_s6 = scalar_lea.hbm %s6800_s12, 1024 }
 0xdd4   : > { %p5513_p12 = scmp.ne.s32.totalorder %s6588_s24, %s5512_s15  ;;  %p5517_p1 = scmp.lt.u32.totalorder %s6588_s24, %s6800_s12 }
 0xdd5   : > { %p5518_p5 = scmp.lt.u32.totalorder %s5516_s6, %s5512_s15  ;;  %p5520_p7 = scmp.lt.u32.totalorder %s5512_s15, %s6588_s24 }
 0xdd6   : > { %p5514_p8 = pnand %p5513_p12, %p6797_p4 }
 0xdd7   : > { %p5519_p9 = por %p5518_p5, %p5517_p1 }
 0xdd8   : > { %p5515_p11 = pneg %p5514_p8 }
 0xdd9   : > { %p5521_p13 = por %p5520_p7, %p5519_p9 }
 0xddb   : > { %p5522_p0 = pnand %p5521_p13, %p5515_p11 }
 0xddd   : > { %5525 = shalt.err (!%p5522_p0)
}
 0xdde   : > { %s5701_s28 = smov 128   ;;  %s5702_s11 = smov 8  }
 0xddf   : > { %4303 = dma.vmem_to_hbm [thread:$0]  (%p6797_p4), %s6585_s7, 512, %s6588_s24, %s3161_s17, %s5701_s28, %s5701_s28, %s5702_s11  }
 0xde0 PF: > { %s3240_s19 = sand.u32 1, %s5620_s0   ;;  %p6801_p6 = scmp.ne.s32.totalorder %s6747_s14, 0 }
 0xde1   : > { %p6802_p2 = scmp.ge.s32.totalorder %s5632_s26, 2  ;;  %s3241_s5 = scalar_lea.sflag [#allocation4], %s3240_s19 }
 0xde3   : > { %p4386_p3 = pnand %p6802_p2, %p6801_p6 }
 0xde5   : > { %5607 = dma.done.wait (!%p4386_p3), %s3241_s5, 1024  }
 0xde6   : > { %5609 = vsyncadd (!%p4386_p3), %s3241_s5, 4294966272  ;;  %s6803_s1 = sadd.s32 4294967294, %s5632_s26  }
 0xde7   : > { %s3249_s3 = sand.u32 1, %s6803_s1  }
 0xde8   : > { %s3250_s25 = scalar_lea.sflag [#allocation42], %s3249_s3 }
 0xde9   : > { %5611 = dma.done.wait (!%p4386_p3), %s3250_s25, 2048  }
 0xdea   : > { %5613 = vsyncadd (!%p4386_p3), %s3250_s25, 4294965248  ;;  %s3268_s4 = scalar_lea.sflag [#allocation45], %s3240_s19 }
 0xdeb   : > { %5615 = dma.done.wait (!%p4386_p3), %s3268_s4, 512  }
 0xdec   : > { %5617 = vsyncadd (!%p4386_p3), %s3268_s4, 4294966784  ;;  %p96_p4 = scmp.ge.s32.totalorder %s6084_s16, 4   ;;  %s6804_s0 = smov %s5624_s22 }
 0xded   : > { %s6805_s22 = smov %s5628_s23  ;;  %s6806_s23 = smov %s6095_s18 }
 0xdee   : > { %s6807_s26 = smov %s6084_s16  ;;  %98 = sbr.rel (!%p96_p4) target bundleno = 90 (0x5a), region = 372 }
 0xdf5   :  { %3273 = vsyncpa [#allocation3], 1 }
 0xdf6   :  { %3275 = vsyncpa [#allocation3 + $0x1], 1 }
 0xdf7   :  { %3276 = vsyncpa [#allocation6], 1 }
 0xdf8   :  { %3277 = vsyncpa [#allocation9], 1 }
 0xdf9   :  { %3278 = vsyncpa [#allocation14], 1 }
 0xdfa   :  { %3279 = vsyncpa [#allocation17], 1 }
 0xdfb   :  { %3280 = vsyncpa [#allocation20], 1 }
 0xdfc   :  { %3281 = vsyncpa [#allocation23], 1 }
 0xdfd   :  { %3283 = vsyncpa [#allocation23 + $0x1], 1 }
 0xdfe   :  { %3284 = vsyncpa [#allocation26], 1 }
 0xdff   :  { %3285 = vsyncpa [#allocation29], 1 }
 0xe00   :  { %3286 = vsyncpa [#allocation32], 1 }
 0xe01   :  { %3287 = vsyncpa [#allocation35], 1 }
 0xe02   :  { %3288 = vsyncpa [#allocation38], 1 }
 0xe03   :  { %3289 = vsyncpa [#allocation4], 1 }
 0xe04   :  { %3291 = vsyncpa [#allocation4 + $0x1], 1 }
 0xe05   :  { %3292 = vsyncpa [#allocation42], 1 }
 0xe06   :  { %3294 = vsyncpa [#allocation42 + $0x1], 1 }
 0xe07   :  { %3295 = vsyncpa [#allocation45], 1 }
 0xe08   :  { %3297 = vsyncpa [#allocation45 + $0x1], 1 }

</bundles_post_ra>
